<compile_context>
chip_gen: v6e
topology: v6e:2x2x1
jax: 0.10.0
libtpu: 0.0.40
codegen_flags: <defaults>
</compile_context>

<pallas_src>
import functools

import jax
import jax.numpy as jnp
import numpy as np
from jax.experimental import pallas as pl
from jax.experimental.pallas import tpu as pltpu

EPS = 1e-5
LEAKY_SLOPE = 0.1


# ---------------------------------------------------------------------------
# helpers
# ---------------------------------------------------------------------------
def _phys_vmem_bytes():
    """Physical VMEM of the current TPU generation (v7x: 64 MiB, v5e/v6e:
    128 MiB); conservative 64 MiB fallback if the query is unavailable."""
    try:
        info = pltpu.get_tpu_info()
        for attr in ("vmem_capacity_bytes", "vmem_size_bytes", "vmem_bytes"):
            v = getattr(info, attr, None)
            if v:
                return int(v)
    except Exception:
        pass
    return 64 << 20


def _cparams(block_bytes, n_grid_axes=1):
    """Parallel grid axes + generation-aware VMEM budget: double-buffered
    per-step blocks + headroom, clamped to 3/4 of physical VMEM (~48 MiB on
    v7x, ~96 MiB on v5e/v6e)."""
    cap = (_phys_vmem_bytes() * 3) // 4
    limit = int(min(max(2 * int(block_bytes) + (8 << 20), 16 << 20), cap))
    return pltpu.CompilerParams(
        dimension_semantics=("parallel",) * n_grid_axes,
        vmem_limit_bytes=limit)


def _pick_row_tile(m, row_bytes, target_bytes=4 << 20, max_rows=32768):
    """Row tile sized so a per-step block is ~target_bytes (multi-MiB DMAs for
    a high HBM-roofline fraction) instead of a fixed small row count; multiple
    of 8 rows (sublane packing) and clamped to m.  Callers use a pl.cdiv grid,
    so m not divisible by the tile is handled by a masked partial last block."""
    t = int(target_bytes // max(int(row_bytes), 1))
    t = max(8, min(t, max_rows, m))
    return max(8, (t // 8) * 8)


# ---------------------------------------------------------------------------
# Kernel 1: fused CSP body = cv1 stem (1x1+BN+SiLU) + n Bottlenecks
#           (1x1+BN+SiLU -> 3x3+BN+SiLU -> optional residual)
#   - one image per grid step; every intermediate stays in VMEM
#   - 1-pixel halo lives in a zeroed VMEM scratch (no concat-built padding)
#   - 3x3 conv as a single im2col (H*W, 9C) @ (9C, C) MXU matmul
# ---------------------------------------------------------------------------
def _csp_body_kernel(*refs, H, W, c_, n_b, adds):
    x_ref = refs[0]
    ws_ref, ss_ref, bs_ref = refs[1:4]
    m_refs = refs[4:4 + 6 * n_b]
    o_ref = refs[4 + 6 * n_b]
    hp_ref = refs[5 + 6 * n_b]

    C1 = x_ref.shape[-1]
    x2d = x_ref[0].reshape(H * W, C1)

    # CSP cv1 stem: 1x1 conv + BN + SiLU — fused in, never touches HBM.
    t = jnp.dot(x2d, ws_ref[...], preferred_element_type=jnp.float32)
    t = t * ss_ref[...] + bs_ref[...]
    t = t * jax.nn.sigmoid(t)
    t2d = t.astype(jnp.bfloat16)

    if n_b:
        # Zero the halo scratch once per grid step; only interiors are written
        # below, so the border stays zero for every bottleneck in the chain.
        hp_ref[...] = jnp.zeros(hp_ref.shape, hp_ref.dtype)

    # TODO(synk): for large n_b switch this static unroll to stacked weights +
    # lax.fori_loop so live ranges stay bounded.
    for i in range(n_b):
        w1, s1, b1, w2, s2, b2 = m_refs[6 * i:6 * i + 6]

        # Bottleneck.cv1: 1x1 conv + BN + SiLU
        h = jnp.dot(t2d, w1[...], preferred_element_type=jnp.float32)
        h = h * s1[...] + b1[...]
        h = h * jax.nn.sigmoid(h)
        hp_ref[1:H + 1, 1:W + 1, :] = h.astype(jnp.bfloat16).reshape(H, W, c_)

        # im2col from the scratch halo: 9 static-sliced VMEM views -> 1 matmul.
        taps = [hp_ref[dy:dy + H, dx:dx + W, :]
                for dy in range(3) for dx in range(3)]
        patches = jnp.concatenate(taps, axis=-1).reshape(H * W, 9 * c_)

        # Bottleneck.cv2: 3x3 conv + BN + SiLU (+ residual)
        y = jnp.dot(patches, w2[...], preferred_element_type=jnp.float32)
        y = y * s2[...] + b2[...]
        y = y * jax.nn.sigmoid(y)
        if adds[i]:
            y = y + t2d.astype(jnp.float32)
        t2d = y.astype(jnp.bfloat16)

    o_ref[0] = t2d.reshape(H, W, c_)


def fused_csp_body(x_nhwc, p):
    N, H, W, C1 = x_nhwc.shape
    bf = jnp.bfloat16
    c_ = p["cv1_w"].shape[1]
    n_b = len(p["m"])
    adds = tuple(bool(bp["add"]) for bp in p["m"])

    ws = p["cv1_w"].astype(bf)
    operands = [x_nhwc, ws, p["cv1_s"], p["cv1_b"]]
    in_specs = [
        pl.BlockSpec((1, H, W, C1), lambda n: (n, 0, 0, 0)),
        pl.BlockSpec(ws.shape, lambda n: (0, 0)),
        pl.BlockSpec(p["cv1_s"].shape, lambda n: (0, 0)),
        pl.BlockSpec(p["cv1_b"].shape, lambda n: (0, 0)),
    ]
    w_bytes = 2 * ws.size
    for bp in p["m"]:
        w1 = bp["cv1_w"].astype(bf)
        w2 = bp["cv2_w"].astype(bf).reshape(9 * c_, c_)
        for a in (w1, bp["cv1_s"], bp["cv1_b"], w2, bp["cv2_s"], bp["cv2_b"]):
            operands.append(a)
            in_specs.append(pl.BlockSpec(a.shape, lambda n: (0, 0)))
        w_bytes += 2 * (w1.size + w2.size)

    # per-step VMEM estimate: x/out blocks, halo scratch, weights, f32 temps.
    blk = (2 * H * W * (C1 + c_) + 2 * (H + 2) * (W + 2) * c_ + w_bytes
           + 4 * H * W * (9 * c_ + 4 * c_))
    if 2 * blk + (8 << 20) > (_phys_vmem_bytes() * 3) // 4:
        # TODO(synk): add spatial row-halo tiling for production feature-map
        # sizes instead of one whole image per grid step.
        raise NotImplementedError(
            "feature map too large for per-image blocks; spatial halo tiling "
            "not implemented")

    return pl.pallas_call(
        functools.partial(_csp_body_kernel, H=H, W=W, c_=c_, n_b=n_b, adds=adds),
        grid=(N,),
        out_shape=jax.ShapeDtypeStruct((N, H, W, c_), bf),
        in_specs=in_specs,
        out_specs=pl.BlockSpec((1, H, W, c_), lambda n: (n, 0, 0, 0)),
        scratch_shapes=[pltpu.VMEM((H + 2, W + 2, c_), bf)],
        compiler_params=_cparams(blk),
    )(*operands)


# ---------------------------------------------------------------------------
# Kernel 2: fused CSP tail = cv3(y1), cv2(y2), BN(implicit concat) ->
#           LeakyReLU(0.1) -> cv4 1x1 + BN + SiLU, row-tiled, bf16 out
# ---------------------------------------------------------------------------
def _csp_tail_kernel(t_ref, x_ref, w3_ref, w2_ref, w41_ref, w42_ref,
                     s1_ref, b1_ref, s2_ref, b2_ref, s4_ref, b4_ref, o_ref):
    y1 = jnp.dot(t_ref[...], w3_ref[...], preferred_element_type=jnp.float32)
    y2 = jnp.dot(x_ref[...], w2_ref[...], preferred_element_type=jnp.float32)
    a1 = y1 * s1_ref[...] + b1_ref[...]
    a2 = y2 * s2_ref[...] + b2_ref[...]
    a1 = jnp.where(a1 > 0, a1, LEAKY_SLOPE * a1)
    a2 = jnp.where(a2 > 0, a2, LEAKY_SLOPE * a2)
    # TODO(synk): once channels are 128-lane padded, merge w41/w42 into one
    # (2c_, c2) weight and do a single K=2c_ matmul.
    z = jnp.dot(a1.astype(jnp.bfloat16), w41_ref[...],
                preferred_element_type=jnp.float32)
    z = z + jnp.dot(a2.astype(jnp.bfloat16), w42_ref[...],
                    preferred_element_type=jnp.float32)
    z = z * s4_ref[...] + b4_ref[...]
    o_ref[...] = (z * jax.nn.sigmoid(z)).astype(o_ref.dtype)


def csp_tail(t2d, x2d, p, c_):
    # TODO(synk): for production channel counts pad c_/2c_/c2 to 128-lane
    # multiples for fully dense vst (critical on v5e's single store slot);
    # channels here are tiny so padding would only inflate HBM traffic.
    M, C1 = x2d.shape
    c2 = p["cv4_w"].shape[1]
    bf = jnp.bfloat16
    w3 = p["cv3_w"].astype(bf)
    w2 = p["cv2_w"].astype(bf)
    w41 = p["cv4_w"][:c_].astype(bf)
    w42 = p["cv4_w"][c_:].astype(bf)
    s1, s2 = p["bn_s"][:, :c_], p["bn_s"][:, c_:]
    b1, b2 = p["bn_b"][:, :c_], p["bn_b"][:, c_:]
    s4, b4 = p["cv4_s"], p["cv4_b"]

    # byte-targeted row tile: in-blocks + out-block + f32 temporaries per row
    row_bytes = 2 * (c_ + C1) + 2 * c2 + 4 * (2 * c_ + 2 * c2)
    tm = _pick_row_tile(M, row_bytes)
    blk = tm * row_bytes + 2 * (w3.size + w2.size + w41.size + w42.size) \
        + 4 * (s1.size + b1.size + s2.size + b2.size + s4.size + b4.size)
    return pl.pallas_call(
        _csp_tail_kernel,
        grid=(pl.cdiv(M, tm),),
        out_shape=jax.ShapeDtypeStruct((M, c2), bf),
        in_specs=[
            pl.BlockSpec((tm, c_), lambda i: (i, 0)),   # t tile
            pl.BlockSpec((tm, C1), lambda i: (i, 0)),   # x tile
            pl.BlockSpec(w3.shape, lambda i: (0, 0)),
            pl.BlockSpec(w2.shape, lambda i: (0, 0)),
            pl.BlockSpec(w41.shape, lambda i: (0, 0)),
            pl.BlockSpec(w42.shape, lambda i: (0, 0)),
            pl.BlockSpec(s1.shape, lambda i: (0, 0)),
            pl.BlockSpec(b1.shape, lambda i: (0, 0)),
            pl.BlockSpec(s2.shape, lambda i: (0, 0)),
            pl.BlockSpec(b2.shape, lambda i: (0, 0)),
            pl.BlockSpec(s4.shape, lambda i: (0, 0)),
            pl.BlockSpec(b4.shape, lambda i: (0, 0)),
        ],
        out_specs=pl.BlockSpec((tm, c2), lambda i: (i, 0)),
        # TODO(synk): pipeline_mode=pl.Buffered(3) on the t/x tiles only if a
        # trace still shows exposed DMA after the larger byte-targeted tiles.
        compiler_params=_cparams(blk),
    )(t2d, x2d, w3, w2, w41, w42, s1, b1, s2, b2, s4, b4)


# ---------------------------------------------------------------------------
# Parameters (deterministic, synthetic) — shapes follow BottleneckCSP.__init__
# ---------------------------------------------------------------------------
def make_params(key, c1, c2, n=1, shortcut=True, e=0.5):
    c_ = int(c2 * e)
    keys = iter(jax.random.split(key, 128))

    def w1x1(cin, cout):
        return jax.random.normal(next(keys), (cin, cout), jnp.float32) / np.sqrt(cin)

    def w3x3(cin, cout):
        return jax.random.normal(next(keys), (3, 3, cin, cout), jnp.float32) / np.sqrt(9 * cin)

    def bn(c):
        gamma = 1.0 + 0.1 * jax.random.normal(next(keys), (c,), jnp.float32)
        beta = 0.1 * jax.random.normal(next(keys), (c,), jnp.float32)
        mean = 0.1 * jax.random.normal(next(keys), (c,), jnp.float32)
        var = 1.0 + 0.1 * jnp.abs(jax.random.normal(next(keys), (c,), jnp.float32))
        s = gamma / jnp.sqrt(var + EPS)
        b = beta - mean * s
        return s.reshape(1, c), b.reshape(1, c)

    p = {}
    p["cv1_w"] = w1x1(c1, c_)
    p["cv1_s"], p["cv1_b"] = bn(c_)
    p["cv2_w"] = w1x1(c1, c_)          # plain Conv2d, no BN/act
    p["cv3_w"] = w1x1(c_, c_)          # plain Conv2d, no BN/act
    p["cv4_w"] = w1x1(2 * c_, c2)
    p["cv4_s"], p["cv4_b"] = bn(c2)
    p["bn_s"], p["bn_b"] = bn(2 * c_)  # BN applied to the concat
    m = []
    for _ in range(n):
        bp = {}
        bp["cv1_w"] = w1x1(c_, c_)
        bp["cv1_s"], bp["cv1_b"] = bn(c_)
        bp["cv2_w"] = w3x3(c_, c_)
        bp["cv2_s"], bp["cv2_b"] = bn(c_)
        bp["add"] = bool(shortcut)     # c1 == c2 == c_ inside self.m
        m.append(bp)
    p["m"] = m
    return p


# ---------------------------------------------------------------------------
# Full BottleneckCSP forward (Pallas kernels for all hot paths)
# ---------------------------------------------------------------------------
def bottleneck_csp_forward(x_nchw, p):
    bf = jnp.bfloat16
    x = jnp.transpose(x_nchw, (0, 2, 3, 1)).astype(bf)   # NCHW -> NHWC bf16
    N, H, W, C1 = x.shape
    M = N * H * W
    c_ = p["cv1_w"].shape[1]

    # cv1 stem + all Bottlenecks: one fused per-image kernel, no HBM t trips.
    t = fused_csp_body(x, p)

    # fused tail: cv3(t), cv2(x), BN(concat)+LeakyReLU, cv4+BN+SiLU (bf16 out)
    out2d = csp_tail(t.reshape(M, c_), x.reshape(M, C1), p, c_)

    c2 = out2d.shape[1]
    out = out2d.reshape(N, H, W, c2)
    # NHWC -> NCHW relayout and f32 upcast fuse into one XLA pass.
    return jnp.transpose(out, (0, 3, 1, 2)).astype(jnp.float32)


# ---------------------------------------------------------------------------
# Plain-JAX references.
#   bf16_storage=True  : same precision policy as the kernels (tight check)
#   bf16_storage=False : pure-f32 module semantics (loose check; difference is
#                        only bf16 operand/storage rounding)
# ---------------------------------------------------------------------------
def ref_forward(x_nchw, p, bf16_storage=False):
    f32 = jnp.float32
    sdt = jnp.bfloat16 if bf16_storage else f32
    cast = lambda a: a.astype(sdt)
    silu = lambda z: z * jax.nn.sigmoid(z)
    leaky = lambda z: jnp.where(z > 0, z, LEAKY_SLOPE * z)

    def dot1x1(a, w):
        y = jnp.dot(cast(a).reshape(-1, a.shape[-1]), cast(w),
                    preferred_element_type=f32)
        return y.reshape(a.shape[:-1] + (w.shape[-1],))

    def conv3(a, w):
        return jax.lax.conv_general_dilated(
            cast(a), cast(w), (1, 1), 'SAME',
            dimension_numbers=('NHWC', 'HWIO', 'NHWC'),
            preferred_element_type=f32)

    x = jnp.transpose(x_nchw, (0, 2, 3, 1)).astype(f32)
    c_ = p["cv1_w"].shape[1]

    t = cast(silu(dot1x1(x, p["cv1_w"]) * p["cv1_s"] + p["cv1_b"]))
    for bp in p["m"]:
        h = cast(silu(dot1x1(t, bp["cv1_w"]) * bp["cv1_s"] + bp["cv1_b"]))
        y = silu(conv3(h, bp["cv2_w"]) * bp["cv2_s"] + bp["cv2_b"])
        t = cast(t.astype(f32) + y) if bp["add"] else cast(y)

    a1 = leaky(dot1x1(t, p["cv3_w"]) * p["bn_s"][:, :c_] + p["bn_b"][:, :c_])
    a2 = leaky(dot1x1(x, p["cv2_w"]) * p["bn_s"][:, c_:] + p["bn_b"][:, c_:])
    z = dot1x1(a1, p["cv4_w"][:c_]) + dot1x1(a2, p["cv4_w"][c_:])
    z = silu(z * p["cv4_s"] + p["cv4_b"])
    z = cast(z).astype(f32)            # mirror the kernels' bf16 output store
    return jnp.transpose(z, (0, 3, 1, 2))


if __name__ == "__main__":
    key = jax.random.PRNGKey(0)
    kx, kp = jax.random.split(key)

    N, C1, H, W = 2, 8, 16, 16
    C2 = 8
    x = jax.random.normal(kx, (N, C1, H, W), jnp.float32)
    params = make_params(kp, C1, C2, n=1, shortcut=True, e=0.5)

    out = jax.block_until_ready(bottleneck_csp_forward(x, params))
    assert out.shape == (N, C2, H, W) and out.dtype == jnp.float32

    # Tight check vs a precision-matched (bf16 operands / f32 accumulation)
    # plain-JAX reference.
    ref_matched = jax.block_until_ready(ref_forward(x, params, bf16_storage=True))
    np.testing.assert_allclose(np.asarray(out), np.asarray(ref_matched),
                               rtol=2e-2, atol=2e-2)

    # Loose check vs the pure-f32 module semantics (difference is bf16
    # operand/storage rounding only).
    ref_f32 = jax.block_until_ready(ref_forward(x, params, bf16_storage=False))
    np.testing.assert_allclose(np.asarray(out), np.asarray(ref_f32),
                               rtol=5e-2, atol=5e-2)

    print("KERNEL_OK")
</pallas_src>

<mosaic_0001>
module attributes {stable_mosaic.version = 11 : i64} {
  func.func @_csp_body_kernel(%arg0: i32, %arg1: memref<1x16x16x8xbf16, #tpu.memory_space<vmem>>, %arg2: memref<8x4xbf16, #tpu.memory_space<vmem>>, %arg3: memref<1x4xf32, #tpu.memory_space<vmem>>, %arg4: memref<1x4xf32, #tpu.memory_space<vmem>>, %arg5: memref<4x4xbf16, #tpu.memory_space<vmem>>, %arg6: memref<1x4xf32, #tpu.memory_space<vmem>>, %arg7: memref<1x4xf32, #tpu.memory_space<vmem>>, %arg8: memref<36x4xbf16, #tpu.memory_space<vmem>>, %arg9: memref<1x4xf32, #tpu.memory_space<vmem>>, %arg10: memref<1x4xf32, #tpu.memory_space<vmem>>, %arg11: memref<1x16x16x4xbf16, #tpu.memory_space<vmem>>, %arg12: memref<18x18x4xbf16, #tpu.memory_space<vmem>>) attributes {dimension_semantics = [#tpu.dimension_semantics<parallel>], iteration_bounds = array<i64: 2>, scalar_prefetch = 0 : i64, scratch_operands = 1 : i64, tpu.core_type = #tpu.core_type<tc>, window_params = [{transform_indices = @transform_0, window_bounds = array<i64: 1, 16, 16, 8>}, {pipeline_mode = #tpu.pipeline_mode<synchronous>, transform_indices = @transform_1, window_bounds = array<i64: 8, 4>}, {pipeline_mode = #tpu.pipeline_mode<synchronous>, transform_indices = @transform_2, window_bounds = array<i64: 1, 4>}, {pipeline_mode = #tpu.pipeline_mode<synchronous>, transform_indices = @transform_3, window_bounds = array<i64: 1, 4>}, {pipeline_mode = #tpu.pipeline_mode<synchronous>, transform_indices = @transform_4, window_bounds = array<i64: 4, 4>}, {pipeline_mode = #tpu.pipeline_mode<synchronous>, transform_indices = @transform_5, window_bounds = array<i64: 1, 4>}, {pipeline_mode = #tpu.pipeline_mode<synchronous>, transform_indices = @transform_6, window_bounds = array<i64: 1, 4>}, {pipeline_mode = #tpu.pipeline_mode<synchronous>, transform_indices = @transform_7, window_bounds = array<i64: 36, 4>}, {pipeline_mode = #tpu.pipeline_mode<synchronous>, transform_indices = @transform_8, window_bounds = array<i64: 1, 4>}, {pipeline_mode = #tpu.pipeline_mode<synchronous>, transform_indices = @transform_9, window_bounds = array<i64: 1, 4>}, {transform_indices = @transform_10, window_bounds = array<i64: 1, 16, 16, 4>}]} {
    %c0 = arith.constant 0 : index
    %c0_0 = arith.constant 0 : index
    %c0_1 = arith.constant 0 : index
    %c0_2 = arith.constant 0 : index
    %0 = vector.load %arg1[%c0, %c0_0, %c0_1, %c0_2] : memref<1x16x16x8xbf16, #tpu.memory_space<vmem>>, vector<1x16x16x8xbf16>
    %1 = vector.shape_cast %0 : vector<1x16x16x8xbf16> to vector<16x16x8xbf16>
    %2 = vector.shape_cast %1 : vector<16x16x8xbf16> to vector<256x8xbf16>
    %c0_3 = arith.constant 0 : index
    %c0_4 = arith.constant 0 : index
    %3 = vector.load %arg2[%c0_3, %c0_4] : memref<8x4xbf16, #tpu.memory_space<vmem>>, vector<8x4xbf16>
    %cst = arith.constant dense<0.000000e+00> : vector<256x4xf32>
    %4 = tpu.matmul %2, %3, %cst {dimension_numbers = #tpu.dot_dimension_numbers<[1], [0], [0], [1], [0, 0, 1, 1], [], []>} : vector<256x8xbf16>, vector<8x4xbf16>, vector<256x4xf32> -> vector<256x4xf32>
    %c0_5 = arith.constant 0 : index
    %c0_6 = arith.constant 0 : index
    %5 = vector.load %arg3[%c0_5, %c0_6] : memref<1x4xf32, #tpu.memory_space<vmem>>, vector<1x4xf32>
    %6 = vector.broadcast %5 : vector<1x4xf32> to vector<256x4xf32>
    %7 = arith.mulf %4, %6 : vector<256x4xf32>
    %c0_7 = arith.constant 0 : index
    %c0_8 = arith.constant 0 : index
    %8 = vector.load %arg4[%c0_7, %c0_8] : memref<1x4xf32, #tpu.memory_space<vmem>>, vector<1x4xf32>
    %9 = vector.broadcast %8 : vector<1x4xf32> to vector<256x4xf32>
    %10 = arith.addf %7, %9 : vector<256x4xf32>
    %11 = arith.negf %10 : vector<256x4xf32>
    %12 = math.exp %11 : vector<256x4xf32>
    %cst_9 = arith.constant 1.000000e+00 : f32
    %13 = vector.broadcast %cst_9 : f32 to vector<256x4xf32>
    %14 = arith.addf %13, %12 : vector<256x4xf32>
    %15 = arith.divf %13, %14 : vector<256x4xf32>
    %16 = arith.mulf %10, %15 : vector<256x4xf32>
    %17 = arith.truncf %16 : vector<256x4xf32> to vector<256x4xbf16>
    %cst_10 = arith.constant 0.000000e+00 : bf16
    %18 = vector.broadcast %cst_10 : bf16 to vector<18x18x4xbf16>
    %c0_11 = arith.constant 0 : index
    %c0_12 = arith.constant 0 : index
    %c0_13 = arith.constant 0 : index
    %19 = vector.load %arg12[%c0_11, %c0_12, %c0_13] : memref<18x18x4xbf16, #tpu.memory_space<vmem>>, vector<18x18x4xbf16>
    tpu.vector_store %arg12[%c0_11, %c0_12, %c0_13], %18 {strides = array<i32>} : memref<18x18x4xbf16, #tpu.memory_space<vmem>>, vector<18x18x4xbf16>,
    %c0_14 = arith.constant 0 : index
    %c0_15 = arith.constant 0 : index
    %20 = vector.load %arg5[%c0_14, %c0_15] : memref<4x4xbf16, #tpu.memory_space<vmem>>, vector<4x4xbf16>
    %cst_16 = arith.constant dense<0.000000e+00> : vector<256x4xf32>
    %21 = tpu.matmul %17, %20, %cst_16 {dimension_numbers = #tpu.dot_dimension_numbers<[1], [0], [0], [1], [0, 0, 1, 1], [], []>} : vector<256x4xbf16>, vector<4x4xbf16>, vector<256x4xf32> -> vector<256x4xf32>
    %c0_17 = arith.constant 0 : index
    %c0_18 = arith.constant 0 : index
    %22 = vector.load %arg6[%c0_17, %c0_18] : memref<1x4xf32, #tpu.memory_space<vmem>>, vector<1x4xf32>
    %23 = vector.broadcast %22 : vector<1x4xf32> to vector<256x4xf32>
    %24 = arith.mulf %21, %23 : vector<256x4xf32>
    %c0_19 = arith.constant 0 : index
    %c0_20 = arith.constant 0 : index
    %25 = vector.load %arg7[%c0_19, %c0_20] : memref<1x4xf32, #tpu.memory_space<vmem>>, vector<1x4xf32>
    %26 = vector.broadcast %25 : vector<1x4xf32> to vector<256x4xf32>
    %27 = arith.addf %24, %26 : vector<256x4xf32>
    %28 = arith.negf %27 : vector<256x4xf32>
    %29 = math.exp %28 : vector<256x4xf32>
    %cst_21 = arith.constant 1.000000e+00 : f32
    %30 = vector.broadcast %cst_21 : f32 to vector<256x4xf32>
    %31 = arith.addf %30, %29 : vector<256x4xf32>
    %32 = arith.divf %30, %31 : vector<256x4xf32>
    %33 = arith.mulf %27, %32 : vector<256x4xf32>
    %34 = arith.truncf %33 : vector<256x4xf32> to vector<256x4xbf16>
    %35 = vector.shape_cast %34 : vector<256x4xbf16> to vector<16x16x4xbf16>
    %c1 = arith.constant 1 : index
    %c1_22 = arith.constant 1 : index
    %c0_23 = arith.constant 0 : index
    %36 = vector.load %arg12[%c1, %c1_22, %c0_23] : memref<18x18x4xbf16, #tpu.memory_space<vmem>>, vector<16x16x4xbf16>
    tpu.vector_store %arg12[%c1, %c1_22, %c0_23], %35 {strides = array<i32>} : memref<18x18x4xbf16, #tpu.memory_space<vmem>>, vector<16x16x4xbf16>,
    %c0_24 = arith.constant 0 : index
    %c0_25 = arith.constant 0 : index
    %c0_26 = arith.constant 0 : index
    %37 = vector.load %arg12[%c0_24, %c0_25, %c0_26] : memref<18x18x4xbf16, #tpu.memory_space<vmem>>, vector<16x16x4xbf16>
    %c0_27 = arith.constant 0 : index
    %c1_28 = arith.constant 1 : index
    %c0_29 = arith.constant 0 : index
    %38 = vector.load %arg12[%c0_27, %c1_28, %c0_29] : memref<18x18x4xbf16, #tpu.memory_space<vmem>>, vector<16x16x4xbf16>
    %c0_30 = arith.constant 0 : index
    %c2 = arith.constant 2 : index
    %c0_31 = arith.constant 0 : index
    %39 = vector.load %arg12[%c0_30, %c2, %c0_31] : memref<18x18x4xbf16, #tpu.memory_space<vmem>>, vector<16x16x4xbf16>
    %c1_32 = arith.constant 1 : index
    %c0_33 = arith.constant 0 : index
    %c0_34 = arith.constant 0 : index
    %40 = vector.load %arg12[%c1_32, %c0_33, %c0_34] : memref<18x18x4xbf16, #tpu.memory_space<vmem>>, vector<16x16x4xbf16>
    %c1_35 = arith.constant 1 : index
    %c1_36 = arith.constant 1 : index
    %c0_37 = arith.constant 0 : index
    %41 = vector.load %arg12[%c1_35, %c1_36, %c0_37] : memref<18x18x4xbf16, #tpu.memory_space<vmem>>, vector<16x16x4xbf16>
    %c1_38 = arith.constant 1 : index
    %c2_39 = arith.constant 2 : index
    %c0_40 = arith.constant 0 : index
    %42 = vector.load %arg12[%c1_38, %c2_39, %c0_40] : memref<18x18x4xbf16, #tpu.memory_space<vmem>>, vector<16x16x4xbf16>
    %c2_41 = arith.constant 2 : index
    %c0_42 = arith.constant 0 : index
    %c0_43 = arith.constant 0 : index
    %43 = vector.load %arg12[%c2_41, %c0_42, %c0_43] : memref<18x18x4xbf16, #tpu.memory_space<vmem>>, vector<16x16x4xbf16>
    %c2_44 = arith.constant 2 : index
    %c1_45 = arith.constant 1 : index
    %c0_46 = arith.constant 0 : index
    %44 = vector.load %arg12[%c2_44, %c1_45, %c0_46] : memref<18x18x4xbf16, #tpu.memory_space<vmem>>, vector<16x16x4xbf16>
    %c2_47 = arith.constant 2 : index
    %c2_48 = arith.constant 2 : index
    %c0_49 = arith.constant 0 : index
    %45 = vector.load %arg12[%c2_47, %c2_48, %c0_49] : memref<18x18x4xbf16, #tpu.memory_space<vmem>>, vector<16x16x4xbf16>
    %46 = tpu.concatenate %37, %38, %39, %40, %41, %42, %43, %44, %45 in 2 : vector<16x16x4xbf16>, vector<16x16x4xbf16>, vector<16x16x4xbf16>, vector<16x16x4xbf16>, vector<16x16x4xbf16>, vector<16x16x4xbf16>, vector<16x16x4xbf16>, vector<16x16x4xbf16>, vector<16x16x4xbf16> -> vector<16x16x36xbf16>
    %47 = vector.shape_cast %46 : vector<16x16x36xbf16> to vector<256x36xbf16>
    %c0_50 = arith.constant 0 : index
    %c0_51 = arith.constant 0 : index
    %48 = vector.load %arg8[%c0_50, %c0_51] : memref<36x4xbf16, #tpu.memory_space<vmem>>, vector<36x4xbf16>
    %cst_52 = arith.constant dense<0.000000e+00> : vector<256x4xf32>
    %49 = tpu.matmul %47, %48, %cst_52 {dimension_numbers = #tpu.dot_dimension_numbers<[1], [0], [0], [1], [0, 0, 1, 1], [], []>} : vector<256x36xbf16>, vector<36x4xbf16>, vector<256x4xf32> -> vector<256x4xf32>
    %c0_53 = arith.constant 0 : index
    %c0_54 = arith.constant 0 : index
    %50 = vector.load %arg9[%c0_53, %c0_54] : memref<1x4xf32, #tpu.memory_space<vmem>>, vector<1x4xf32>
    %51 = vector.broadcast %50 : vector<1x4xf32> to vector<256x4xf32>
    %52 = arith.mulf %49, %51 : vector<256x4xf32>
    %c0_55 = arith.constant 0 : index
    %c0_56 = arith.constant 0 : index
    %53 = vector.load %arg10[%c0_55, %c0_56] : memref<1x4xf32, #tpu.memory_space<vmem>>, vector<1x4xf32>
    %54 = vector.broadcast %53 : vector<1x4xf32> to vector<256x4xf32>
    %55 = arith.addf %52, %54 : vector<256x4xf32>
    %56 = arith.negf %55 : vector<256x4xf32>
    %57 = math.exp %56 : vector<256x4xf32>
    %cst_57 = arith.constant 1.000000e+00 : f32
    %58 = vector.broadcast %cst_57 : f32 to vector<256x4xf32>
    %59 = arith.addf %58, %57 : vector<256x4xf32>
    %60 = arith.divf %58, %59 : vector<256x4xf32>
    %61 = arith.mulf %55, %60 : vector<256x4xf32>
    %62 = arith.extf %17 : vector<256x4xbf16> to vector<256x4xf32>
    %63 = arith.addf %61, %62 : vector<256x4xf32>
    %64 = arith.truncf %63 : vector<256x4xf32> to vector<256x4xbf16>
    %65 = vector.shape_cast %64 : vector<256x4xbf16> to vector<16x16x4xbf16>
    %c0_58 = arith.constant 0 : index
    %c0_59 = arith.constant 0 : index
    %c0_60 = arith.constant 0 : index
    %c0_61 = arith.constant 0 : index
    %66 = vector.load %arg11[%c0_58, %c0_59, %c0_60, %c0_61] : memref<1x16x16x4xbf16, #tpu.memory_space<vmem>>, vector<1x16x16x4xbf16>
    %67 = vector.shape_cast %66 : vector<1x16x16x4xbf16> to vector<16x16x4xbf16>
    %68 = vector.shape_cast %65 : vector<16x16x4xbf16> to vector<1x16x16x4xbf16>
    tpu.vector_store %arg11[%c0_58, %c0_59, %c0_60, %c0_61], %68 {strides = array<i32>} : memref<1x16x16x4xbf16, #tpu.memory_space<vmem>>, vector<1x16x16x4xbf16>,
    return
  }
  func.func @transform_0(%arg0: i32) -> (i32, i32, i32, i32) {
    %c0_i32 = arith.constant 0 : i32
    %c0_i32_0 = arith.constant 0 : i32
    %c0_i32_1 = arith.constant 0 : i32
    %c0_i32_2 = arith.constant 0 : i32
    return %arg0, %c0_i32, %c0_i32_0, %c0_i32_1 : i32, i32, i32, i32
  }
  func.func @transform_1(%arg0: i32) -> (i32, i32) {
    %c0_i32 = arith.constant 0 : i32
    %c0_i32_0 = arith.constant 0 : i32
    %c0_i32_1 = arith.constant 0 : i32
    return %c0_i32, %c0_i32_0 : i32, i32
  }
  func.func @transform_2(%arg0: i32) -> (i32, i32) {
    %c0_i32 = arith.constant 0 : i32
    %c0_i32_0 = arith.constant 0 : i32
    %c0_i32_1 = arith.constant 0 : i32
    return %c0_i32, %c0_i32_0 : i32, i32
  }
  func.func @transform_3(%arg0: i32) -> (i32, i32) {
    %c0_i32 = arith.constant 0 : i32
    %c0_i32_0 = arith.constant 0 : i32
    %c0_i32_1 = arith.constant 0 : i32
    return %c0_i32, %c0_i32_0 : i32, i32
  }
  func.func @transform_4(%arg0: i32) -> (i32, i32) {
    %c0_i32 = arith.constant 0 : i32
    %c0_i32_0 = arith.constant 0 : i32
    %c0_i32_1 = arith.constant 0 : i32
    return %c0_i32, %c0_i32_0 : i32, i32
  }
  func.func @transform_5(%arg0: i32) -> (i32, i32) {
    %c0_i32 = arith.constant 0 : i32
    %c0_i32_0 = arith.constant 0 : i32
    %c0_i32_1 = arith.constant 0 : i32
    return %c0_i32, %c0_i32_0 : i32, i32
  }
  func.func @transform_6(%arg0: i32) -> (i32, i32) {
    %c0_i32 = arith.constant 0 : i32
    %c0_i32_0 = arith.constant 0 : i32
    %c0_i32_1 = arith.constant 0 : i32
    return %c0_i32, %c0_i32_0 : i32, i32
  }
  func.func @transform_7(%arg0: i32) -> (i32, i32) {
    %c0_i32 = arith.constant 0 : i32
    %c0_i32_0 = arith.constant 0 : i32
    %c0_i32_1 = arith.constant 0 : i32
    return %c0_i32, %c0_i32_0 : i32, i32
  }
  func.func @transform_8(%arg0: i32) -> (i32, i32) {
    %c0_i32 = arith.constant 0 : i32
    %c0_i32_0 = arith.constant 0 : i32
    %c0_i32_1 = arith.constant 0 : i32
    return %c0_i32, %c0_i32_0 : i32, i32
  }
  func.func @transform_9(%arg0: i32) -> (i32, i32) {
    %c0_i32 = arith.constant 0 : i32
    %c0_i32_0 = arith.constant 0 : i32
    %c0_i32_1 = arith.constant 0 : i32
    return %c0_i32, %c0_i32_0 : i32, i32
  }
  func.func @transform_10(%arg0: i32) -> (i32, i32, i32, i32) {
    %c0_i32 = arith.constant 0 : i32
    %c0_i32_0 = arith.constant 0 : i32
    %c0_i32_1 = arith.constant 0 : i32
    %c0_i32_2 = arith.constant 0 : i32
    return %arg0, %c0_i32, %c0_i32_0, %c0_i32_1 : i32, i32, i32, i32
  }
}

</mosaic_0001>

<bundles_post_ra>
// kernel: tpu_custom_call.1
= control target key start
LH: loop header
LB: loop body
LE: loop exit
PB: predicated region body
PF: predicated region fallthrough
CT: control target
= control target key end

     0   :  { %s6131_s13 = smov 0   ;;  %s8272_s0 = inlined_call_operand.vmem [shape: bf16[2,16,16,8], index: 0, kind: input, shape index: {}]   ;;  %s8273_s1 = inlined_call_operand.vmem [shape: bf16[8,4], index: 1, kind: input, shape index: {}]   ;;  %s8274_s2 = inlined_call_operand.vmem [shape: f32[1,4], index: 2, kind: input, shape index: {}]   ;;  %s8275_s3 = inlined_call_operand.vmem [shape: f32[1,4], index: 3, kind: input, shape index: {}]   ;;  %s8276_s4 = inlined_call_operand.vmem [shape: bf16[4,4], index: 4, kind: input, shape index: {}]   ;;  %s8277_s5 = inlined_call_operand.vmem [shape: f32[1,4], index: 5, kind: input, shape index: {}]   ;;  %s8278_s6 = inlined_call_operand.vmem [shape: f32[1,4], index: 6, kind: input, shape index: {}]   ;;  %s8279_s7 = inlined_call_operand.vmem [shape: bf16[36,4], index: 7, kind: input, shape index: {}]   ;;  %s8280_s8 = inlined_call_operand.vmem [shape: f32[1,4], index: 8, kind: input, shape index: {}]   ;;  %s8281_s9 = inlined_call_operand.vmem [shape: f32[1,4], index: 9, kind: input, shape index: {}]   ;;  %s8282_s10 = inlined_call_operand.vmem [shape: bf16[2,16,16,4], index: 10, kind: output, shape index: {}]  }
   0x1 LB: > { %s4875_s14 = sadd.s32 4294967295, %s6065_s13   ;;  %p4879_p0 = scmp.ge.s32.totalorder %s6065_s13, 1  ;;  %s6065_s13 = sphi %s6131_s13, %s20_s13  }
   0x2   : > { %p312_p1 = scmp.lt.s32.totalorder %s6065_s13, 3 }
   0x4   : > { %p313_p2 = pnand %p4879_p0, %p312_p1 }
   0x6   : > { %316 = sbr.rel (%p313_p2) target bundleno = 1152 (0x480), region = 60 }
   0xb   : > { %v393_v0 = vld [vmem:[%s8273_s1] sm:$0xf]  ;;  %vm523_vm0 = vcmask 1043456   ;;  %p350_p3 = scmp.lt.s32.totalorder %s4875_s14, 1  ;;  %vm474_vm1 = vcmask 64512   ;;  %vm1112_vm2 = vcmask 1041408  }
   0xc   : > { %5490 = vmatprep.subr.msk.bf16.mxu0 %vm523_vm0, %v393_v0  ;;  %v525_v1 = vsel %vm523_vm0, %v393_v0, 0  ;;  %5491 = vmatprep.subr.msk.bf16.mxu1 %vm523_vm0, %v393_v0  ;;  %v1062_v18 = vld [vmem:[%s8276_s4] sm:$0x3]  ;;  %vm1006_vm3 = vcmask 27648   ;;  %v6067_v20 = vmov 0   ;;  %vm1063_vm4 = vcmask 31744  }
   0xd   : > { %5383 = vmatpush3.bf16.msra.mxu0 %v525_v1  ;;  %s8348_s14 = smov (!%p350_p3, %s4875_s14), 1  ;;  %5489 = vmatpush3.bf16.msra.mxu1 %v525_v1  ;;  %v1114_v19 = vsel %vm1112_vm2, %v1062_v18, 0  ;;  %1014 = vst.msk [vmem:[#allocation2 + $0x18] sm:$0xf] %vm1006_vm3, %v6067_v20  ;;  %1007 = vst.msk [vmem:[#allocation2] sm:$0xf] %vm1006_vm3, %v6067_v20 }
   0xe   : > { %s5263_s17 = sshll.u32 %s8348_s14, 7  ;;  %5492 = vmatprep.subr.msk.bf16.mxu1 %vm1112_vm2, %v1062_v18  ;;  %1008 = vst.msk [vmem:[#allocation2 + $0x4] sm:$0xf] %vm1006_vm3, %v6067_v20  ;;  %1011 = vst.msk [vmem:[#allocation2 + $0xc] sm:$0xf] %vm1006_vm3, %v6067_v20  ;;  %vm1009_vm5 = vcmask 24576  }
   0xf   : > { %s6150_s20 = scalar_lea.vmem %s8272_s0, %s5263_s17  ;;  %1012 = vst.msk [vmem:[#allocation2 + $0x10] sm:$0xf] %vm1006_vm3, %v6067_v20  ;;  %1015 = vst.msk [vmem:[#allocation2 + $0x1c] sm:$0xf] %vm1006_vm3, %v6067_v20  ;;  %v6264_v21 = vld [vmem:[%s8274_s2] ss:$0 sm:$0xff] }
  0x10   : > { %v5511_v2 = vld [vmem:[%s6150_s20] sm:$0xff]   ;;  %v5512_v3 = vld [vmem:[%s6150_s20 + $0x8] sm:$0xff]   ;;  %v5513_v4 = vld [vmem:[%s6150_s20 + $0x10] sm:$0xff]   ;;  %1017 = vst.msk [vmem:[#allocation2 + $0x24] sm:$0xf] %vm1006_vm3, %v6067_v20  ;;  %s6068_s27 = smov 24  }
  0x11   : > { %5384 = vmatprep.mubr.msk.bf16.mxu0 %vm474_vm1, %v5511_v2  ;;  %v5514_v5 = vld [vmem:[%s6150_s20 + $0x18] sm:$0xff]   ;;  %v5515_v6 = vld [vmem:[%s6150_s20 + $0x20] sm:$0xff]   ;;  %v5520_v8 = vld [vmem:[%s6150_s20 + $0x48] sm:$0xff]   ;;  %1018 = vst.msk [vmem:[#allocation2 + $0x28] sm:$0xf] %vm1006_vm3, %v6067_v20  ;;  %vm2710_vm6 = vcmask 1046528  }
  0x12   : > { %5385 = vmatmul.mubr.msk.bf16.vlgmr.msra.gmra.mxu0 %vm474_vm1, %v5512_v3  ;;  %v5519_v7 = vld [vmem:[%s6150_s20 + $0x40] sm:$0xff]   ;;  %v5521_v9 = vld [vmem:[%s6150_s20 + $0x50] sm:$0xff]   ;;  %v5516_v10 = vld [vmem:[%s6150_s20 + $0x28] sm:$0xff]   ;;  %1020 = vst.msk [vmem:[#allocation2 + $0x30] sm:$0xf] %vm1006_vm3, %v6067_v20  ;;  %s6069_s28 = smov 8  }
  0x13   : > { %5388 = vmatprep.mubr.msk.bf16.mxu0 %vm474_vm1, %v5513_v4  ;;  %5400 = vmatprep.mubr.msk.bf16.mxu1 %vm474_vm1, %v5519_v7  ;;  %v5522_v11 = vld [vmem:[%s6150_s20 + $0x58] sm:$0xff]   ;;  %v5517_v12 = vld [vmem:[%s6150_s20 + $0x30] sm:$0xff]   ;;  %v5523_v13 = vld [vmem:[%s6150_s20 + $0x60] sm:$0xff]   ;;  %1021 = vst.msk [vmem:[#allocation2 + $0x34] sm:$0xf] %vm1006_vm3, %v6067_v20  ;;  %s6070_s29 = smov 4  }
  0x14   : > { %5401 = vmatmul.mubr.msk.bf16.vlgmr.msra.gmra.mxu1 %vm474_vm1, %v5520_v8  ;;  %v5518_v14 = vld [vmem:[%s6150_s20 + $0x38] sm:$0xff]   ;;  %v5524_v15 = vld [vmem:[%s6150_s20 + $0x68] sm:$0xff]   ;;  %v5525_v16 = vld [vmem:[%s6150_s20 + $0x70] sm:$0xff]   ;;  %1023 = vst.msk [vmem:[#allocation2 + $0x3c] sm:$0xf] %vm1006_vm3, %v6067_v20  ;;  %s6071_s16 = smov 12  }
  0x15   : > { %5404 = vmatprep.mubr.msk.bf16.mxu1 %vm474_vm1, %v5521_v9  ;;  %v5526_v17 = vld [vmem:[%s6150_s20 + $0x78] sm:$0xff]   ;;  %5417 = vmatpush3.bf16.msra.mxu1 %v1114_v19  ;;  %1024 = vst.msk [vmem:[#allocation2 + $0x40] sm:$0xf] %vm1006_vm3, %v6067_v20  ;;  %1026 = vst.msk [vmem:[#allocation2 + $0x48] sm:$0xf] %vm1006_vm3, %v6067_v20  ;;  %s6072_s18 = smov 20  }
  0x16   : > { %1027 = vst.msk [vmem:[#allocation2 + $0x4c] sm:$0xf] %vm1006_vm3, %v6067_v20  ;;  %1029 = vst.msk [vmem:[#allocation2 + $0x54] sm:$0xf] %vm1006_vm3, %v6067_v20  ;;  %v6269_v23 = vld [vmem:[%s8275_s3] ss:$0 sm:$0xff] }
  0x17   : > { %1030 = vst.msk [vmem:[#allocation2 + $0x58] sm:$0xf] %vm1006_vm3, %v6067_v20  ;;  %1032 = vst.msk [vmem:[#allocation2 + $0x60] sm:$0xf] %vm1006_vm3, %v6067_v20  ;;  %vm2437_vm7 = vsmask.f32 7424 }
  0x18   : > { %1033 = vst.msk [vmem:[#allocation2 + $0x64] sm:$0xf] %vm1006_vm3, %v6067_v20  ;;  %1035 = vst.msk [vmem:[#allocation2 + $0x6c] sm:$0xf] %vm1006_vm3, %v6067_v20  ;;  %vm2000_vm8 = vsmask.f32 7938 }
  0x19   : > { %1036 = vst.msk [vmem:[#allocation2 + $0x70] sm:$0xf] %vm1006_vm3, %v6067_v20  ;;  %1038 = vst.msk [vmem:[#allocation2 + $0x78] sm:$0xf] %vm1006_vm3, %v6067_v20  ;;  %vm1675_vm9 = vsmask.f32 256 }
  0x1a   : > { %5389 = vmatmul.mubr.msk.bf16.gmra.mxu0 %vm474_vm1, %v5514_v5  ;;  %1039 = vst.msk [vmem:[#allocation2 + $0x7c] sm:$0xf] %vm1006_vm3, %v6067_v20  ;;  %1041 = vst.msk [vmem:[#allocation2 + $0x84] sm:$0xf] %vm1006_vm3, %v6067_v20  ;;  %vm1676_vm10 = vsmask.f32 4368 }
  0x1b   : > { %5392 = vmatprep.mubr.msk.bf16.mxu0 %vm474_vm1, %v5515_v6  ;;  %1042 = vst.msk [vmem:[#allocation2 + $0x88] sm:$0xf] %vm1006_vm3, %v6067_v20  ;;  %1044 = vst.msk [vmem:[#allocation2 + $0x90] sm:$0xf] %vm1006_vm3, %v6067_v20  ;;  %s6073_s19 = smov 32   ;;  %s6074_s20 = smov 16  }
  0x1c   : > { %5405 = vmatmul.mubr.msk.bf16.gmra.mxu1 %vm474_vm1, %v5522_v11  ;;  %1045 = vst.msk [vmem:[#allocation2 + $0x94] sm:$0xf] %vm1006_vm3, %v6067_v20  ;;  %1047 = vst.msk [vmem:[#allocation2 + $0x9c] sm:$0xf] %vm1006_vm3, %v6067_v20  ;;  %s6075_s21 = smov 28   ;;  %vm3879_vm14 = vcmask 97280  }
  0x1d   : > { %5408 = vmatprep.mubr.msk.bf16.mxu1 %vm474_vm1, %v5523_v13  ;;  %1048 = vst.msk [vmem:[#allocation2 + $0xa0] sm:$0xf] %vm1006_vm3, %v6067_v20  ;;  %1050 = vst.msk [vmem:[#allocation2 + $0xa8] sm:$0xf] %vm1006_vm3, %v6067_v20  ;;  %vm3912_vm15 = vcmask 130048   ;;  %vm3945_vm0 = vcmask 162816  }
  0x1e   : > { %1051 = vst.msk [vmem:[#allocation2 + $0xac] sm:$0xf] %vm1006_vm3, %v6067_v20  ;;  %1053 = vst.msk [vmem:[#allocation2 + $0xb4] sm:$0xf] %vm1006_vm3, %v6067_v20 }
  0x1f   : > { %1054 = vst.msk [vmem:[#allocation2 + $0xb8] sm:$0xf] %vm1006_vm3, %v6067_v20  ;;  %1056 = vst.msk [vmem:[#allocation2 + $0xc0] sm:$0xf] %vm1006_vm3, %v6067_v20 }
  0x20   : > { %1057 = vst.msk [vmem:[#allocation2 + $0xc4] sm:$0xf] %vm1006_vm3, %v6067_v20  ;;  %1059 = vst.msk [vmem:[#allocation2 + $0xcc] sm:$0xf] %vm1006_vm3, %v6067_v20 }
  0x21   : > { %1060 = vst.msk [vmem:[#allocation2 + $0xd0] sm:$0xf] %vm1006_vm3, %v6067_v20  ;;  %vm6716_vm11 = vmand %vm1006_vm3, %vm2000_vm8  ;;  %vm4044_vm8 = vcmask 261120  }
  0x22   : > { %5393 = vmatmul.mubr.msk.bf16.gmra.mxu0 %vm474_vm1, %v5516_v10  ;;  %1016 = vst.msk [vmem:[#allocation2 + $0x20] sm:$0x1] %vm1009_vm5, %v6067_v20  ;;  %1010 = vst.msk [vmem:[#allocation2 + $0x8] sm:$0x1] %vm1009_vm5, %v6067_v20 }
  0x23   : > { %5396 = vmatprep.mubr.msk.bf16.mxu0 %vm474_vm1, %v5517_v12  ;;  %1013 = vst.msk [vmem:[#allocation2 + $0x14] sm:$0x1] %vm1009_vm5, %v6067_v20  ;;  %1019 = vst.msk [vmem:[#allocation2 + $0x2c] sm:$0x1] %vm1009_vm5, %v6067_v20 }
  0x24   : > { %5409 = vmatmul.mubr.msk.bf16.gmra.mxu1 %vm474_vm1, %v5524_v15  ;;  %1022 = vst.msk [vmem:[#allocation2 + $0x38] sm:$0x1] %vm1009_vm5, %v6067_v20  ;;  %1025 = vst.msk [vmem:[#allocation2 + $0x44] sm:$0x1] %vm1009_vm5, %v6067_v20 }
  0x25   : > { %5412 = vmatprep.mubr.msk.bf16.mxu1 %vm474_vm1, %v5525_v16  ;;  %1028 = vst.msk [vmem:[#allocation2 + $0x50] sm:$0x1] %vm1009_vm5, %v6067_v20  ;;  %1031 = vst.msk [vmem:[#allocation2 + $0x5c] sm:$0x1] %vm1009_vm5, %v6067_v20 }
  0x26   : > { %1034 = vst.msk [vmem:[#allocation2 + $0x68] sm:$0x1] %vm1009_vm5, %v6067_v20  ;;  %1037 = vst.msk [vmem:[#allocation2 + $0x74] sm:$0x1] %vm1009_vm5, %v6067_v20 }
  0x27   : > { %1040 = vst.msk [vmem:[#allocation2 + $0x80] sm:$0x1] %vm1009_vm5, %v6067_v20  ;;  %1043 = vst.msk [vmem:[#allocation2 + $0x8c] sm:$0x1] %vm1009_vm5, %v6067_v20 }
  0x28   : > { %1046 = vst.msk [vmem:[#allocation2 + $0x98] sm:$0x1] %vm1009_vm5, %v6067_v20  ;;  %1049 = vst.msk [vmem:[#allocation2 + $0xa4] sm:$0x1] %vm1009_vm5, %v6067_v20 }
  0x29   : > { %1052 = vst.msk [vmem:[#allocation2 + $0xb0] sm:$0x1] %vm1009_vm5, %v6067_v20  ;;  %1055 = vst.msk [vmem:[#allocation2 + $0xbc] sm:$0x1] %vm1009_vm5, %v6067_v20 }
  0x2a   : > { %5397 = vmatmul.mubr.msk.bf16.gmra.mxu0 %vm474_vm1, %v5518_v14  ;;  %1058 = vst.msk [vmem:[#allocation2 + $0xc8] sm:$0x1] %vm1009_vm5, %v6067_v20  ;;  %1061 = vst.msk [vmem:[#allocation2 + $0xd4] sm:$0x1] %vm1009_vm5, %v6067_v20 }
  0x2b   : > { %vm6726_vm12 = vmor %vm1675_vm9, %vm1676_vm10 }
  0x2c   : > { %5413 = vmatmul.mubr.msk.bf16.gmra.mxu1 %vm474_vm1, %v5526_v17  ;;  %vm6732_vm13 = vmand %vm1009_vm5, %vm1675_vm9  ;;  %vm4011_vm5 = vcmask 228352   ;;  %vm4097_vm9 = vcmask 293888  }
  0xd2   : > { %v5386_v22 = vpop.f32.mrf.mxu0 }
  0xd3   : > { %v697_v24 = vmul.f32 %v5386_v22, %v6264_v21 }
  0xd4   : > { %v561_v25 = vpop.f32.mrf.mxu0  ;;  %v5402_v37 = vpop.f32.mrf.mxu1 }
  0xd5   : > { %v6273_v26 = vadd.f32 %v6269_v23, %v697_v24  ;;  %v695_v27 = vmul.f32 %v6264_v21, %v561_v25  ;;  %v713_v42 = vmul.f32 %v5402_v37, %v6264_v21 }
  0xd6   : > { %v5387_v28 = vpop.f32.mrf.mxu0  ;;  %v625_v43 = vpop.f32.mrf.mxu1 }
  0xd7   : > { %v4920_v29 = vmul.f32 -1.442695, %v6273_v26  ;;  %v6278_v30 = vadd.f32 %v6269_v23, %v695_v27  ;;  %v698_v31 = vmul.f32 %v5387_v28, %v6264_v21  ;;  %v6298_v48 = vadd.f32 %v6269_v23, %v713_v42 }
  0xd8   : > { %v564_v32 = vpop.f32.mrf.mxu0  ;;  %v711_v49 = vmul.f32 %v6264_v21, %v625_v43  ;;  %v5403_v50 = vpop.f32.mrf.mxu1 }
  0xd9   : > { %5672 = vpow2.f32 %v4920_v29  ;;  %v4918_v33 = vmul.f32 -1.442695, %v6278_v30  ;;  %v6283_v34 = vadd.f32 %v6269_v23, %v698_v31  ;;  %v696_v35 = vmul.f32 %v6264_v21, %v564_v32 }
  0xda   : > { %v5390_v36 = vpop.f32.mrf.mxu0  ;;  %v4936_v55 = vmul.f32 -1.442695, %v6298_v48  ;;  %v6308_v56 = vadd.f32 %v6269_v23, %v711_v49  ;;  %v714_v57 = vmul.f32 %v5403_v50, %v6264_v21  ;;  %v628_v58 = vpop.f32.mrf.mxu1 }
  0xdb   : > { %5674 = vpow2.f32 %v4918_v33  ;;  %v4921_v38 = vmul.f32 -1.442695, %v6283_v34  ;;  %v6288_v39 = vadd.f32 %v6269_v23, %v696_v35  ;;  %v701_v40 = vmul.f32 %v5390_v36, %v6264_v21 }
  0xdc   : > { %v577_v41 = vpop.f32.mrf.mxu0  ;;  %v4934_v63 = vmul.f32 -1.442695, %v6308_v56  ;;  %v6318_v0 = vadd.f32 %v6269_v23, %v714_v57  ;;  %v712_v1 = vmul.f32 %v6264_v21, %v628_v58  ;;  %v6321_v2 = vpop.f32.mrf.mxu1 }
  0xdd   : > { %5676 = vpow2.f32 %v4921_v38  ;;  %v4919_v44 = vmul.f32 -1.442695, %v6288_v39  ;;  %v6294_v45 = vadd.f32 %v6269_v23, %v701_v40  ;;  %v699_v46 = vmul.f32 %v6264_v21, %v577_v41 }
  0xde   : > { %v5391_v47 = vpop.f32.mrf.mxu0  ;;  %v4937_v7 = vmul.f32 -1.442695, %v6318_v0  ;;  %v6330_v8 = vadd.f32 %v6269_v23, %v712_v1  ;;  %v6332_v9 = vpop.f32.mrf.mxu1 }
  0xdf   : > { %5678 = vpow2.f32 %v4919_v44  ;;  %v4924_v51 = vmul.f32 -1.442695, %v6294_v45  ;;  %v6303_v52 = vadd.f32 %v6269_v23, %v699_v46  ;;  %v702_v53 = vmul.f32 %v5391_v47, %v6264_v21 }
  0xe0   : > { %v580_v54 = vpop.f32.mrf.mxu0  ;;  %v4935_v15 = vmul.f32 -1.442695, %v6330_v8  ;;  %v6340_v16 = vpop.f32.mrf.mxu1 }
  0xe1   : > { %5680 = vpow2.f32 %v4924_v51  ;;  %v4922_v59 = vmul.f32 -1.442695, %v6303_v52  ;;  %v6313_v60 = vadd.f32 %v6269_v23, %v702_v53  ;;  %v700_v61 = vmul.f32 %v6264_v21, %v580_v54 }
  0xe2   : > { %v5394_v62 = vpop.f32.mrf.mxu0  ;;  %5682 = vpow2.f32 %v4936_v55  ;;  %v6347_v27 = vpop.f32.mrf.mxu1 }
  0xe3   : > { %5684 = vpow2.f32 %v4922_v59  ;;  %v4925_v3 = vmul.f32 -1.442695, %v6313_v60  ;;  %v6325_v4 = vadd.f32 %v6269_v23, %v700_v61  ;;  %v705_v5 = vmul.f32 %v5394_v62, %v6264_v21 }
  0xe4   : > { %v593_v6 = vpop.f32.mrf.mxu0  ;;  %5686 = vpow2.f32 %v4934_v63  ;;  %v6354_v36 = vpop.f32.mrf.mxu1 }
  0xe5   : > { %5688 = vpow2.f32 %v4925_v3  ;;  %v4923_v10 = vmul.f32 -1.442695, %v6325_v4  ;;  %v6336_v11 = vadd.f32 %v6269_v23, %v705_v5  ;;  %v703_v12 = vmul.f32 %v6264_v21, %v593_v6 }
  0xe6   : > { %v5673_v13 = vpop.eup %5672  ;;  %v5395_v14 = vpop.f32.mrf.mxu0  ;;  %5690 = vpow2.f32 %v4937_v7 }
  0xe7   : > { %v864_v17 = vadd.f32 1.0, %v5673_v13  ;;  %5692 = vpow2.f32 %v4923_v10  ;;  %v4928_v18 = vmul.f32 -1.442695, %v6336_v11  ;;  %v6344_v19 = vadd.f32 %v6269_v23, %v703_v12  ;;  %v6361_v44 = vpop.f32.mrf.mxu1 }
  0xe8   : > { %v5675_v22 = vpop.eup %5674  ;;  %v706_v24 = vmul.f32 %v5395_v14, %v6264_v21  ;;  %v596_v25 = vpop.f32.mrf.mxu0  ;;  %5694 = vpow2.f32 %v4935_v15  ;;  %v717_v12 = vmul.f32 %v6321_v2, %v6264_v21  ;;  %v715_v13 = vmul.f32 %v6264_v21, %v6332_v9 }
  0xe9   : > { %5696 = vrcp.f32 %v864_v17  ;;  %v862_v28 = vadd.f32 1.0, %v5675_v22  ;;  %v4926_v29 = vmul.f32 -1.442695, %v6344_v19  ;;  %v704_v31 = vmul.f32 %v6264_v21, %v596_v25  ;;  %v6370_v59 = vpop.f32.mrf.mxu1 }
  0xea   : > { %v5677_v32 = vpop.eup %5676  ;;  %5698 = vpow2.f32 %v4928_v18  ;;  %v6352_v33 = vadd.f32 %v6269_v23, %v706_v24  ;;  %v5398_v35 = vpop.f32.mrf.mxu0  ;;  %v6390_v9 = vadd.f32 %v6269_v23, %v717_v12 }
  0xeb   : > { %5700 = vrcp.f32 %v862_v28  ;;  %v865_v37 = vadd.f32 1.0, %v5677_v32  ;;  %v6357_v38 = vadd.f32 %v6269_v23, %v704_v31  ;;  %v709_v40 = vmul.f32 %v5398_v35, %v6264_v21  ;;  %v660_v22 = vpop.f32.mrf.mxu1 }
  0xec   : > { %v5679_v41 = vpop.eup %5678  ;;  %5702 = vpow2.f32 %v4926_v29  ;;  %v4929_v42 = vmul.f32 -1.442695, %v6352_v33  ;;  %v609_v43 = vpop.f32.mrf.mxu0  ;;  %v6393_v35 = vadd.f32 %v6269_v23, %v715_v13 }
  0xed   : > { %5704 = vrcp.f32 %v865_v37  ;;  %v863_v46 = vadd.f32 1.0, %v5679_v41  ;;  %v4927_v47 = vmul.f32 -1.442695, %v6357_v38  ;;  %v6365_v49 = vadd.f32 %v6269_v23, %v709_v40  ;;  %v5414_v31 = vpop.f32.mrf.mxu1 }
  0xee   : > { %v5681_v50 = vpop.eup %5680  ;;  %5706 = vpow2.f32 %v4929_v42  ;;  %v707_v51 = vmul.f32 %v6264_v21, %v609_v43  ;;  %v5399_v53 = vpop.f32.mrf.mxu0  ;;  %v718_v41 = vmul.f32 %v6340_v16, %v6264_v21  ;;  %v4938_v16 = vmul.f32 -1.442695, %v6393_v35 }
  0xef   : > { %v5683_v54 = vpop.eup %5682  ;;  %5708 = vrcp.f32 %v863_v46  ;;  %v868_v55 = vadd.f32 1.0, %v5681_v50  ;;  %v4932_v57 = vmul.f32 -1.442695, %v6365_v49  ;;  %v710_v58 = vmul.f32 %v5399_v53, %v6264_v21  ;;  %v673_v53 = vpop.f32.mrf.mxu1 }
  0xf0   : > { %v5685_v61 = vpop.eup %5684  ;;  %5710 = vpow2.f32 %v4927_v47  ;;  %v6373_v62 = vadd.f32 %v6269_v23, %v707_v51  ;;  %v612_v63 = vpop.f32.mrf.mxu0  ;;  %v880_v2 = vadd.f32 1.0, %v5683_v54  ;;  %v716_v46 = vmul.f32 %v6264_v21, %v6347_v27 }
  0xf1   : > { %v5687_v1 = vpop.eup %5686  ;;  %5712 = vrcp.f32 %v868_v55  ;;  %v866_v3 = vadd.f32 1.0, %v5685_v61  ;;  %v6376_v5 = vadd.f32 %v6269_v23, %v710_v58  ;;  %v708_v6 = vmul.f32 %v6264_v21, %v612_v63 }
  0xf2   : > { %v5689_v7 = vpop.eup %5688  ;;  %5714 = vpow2.f32 %v4932_v57  ;;  %v4930_v10 = vmul.f32 -1.442695, %v6373_v62  ;;  %v878_v40 = vadd.f32 1.0, %v5687_v1  ;;  %v721_v51 = vmul.f32 %v6354_v36, %v6264_v21 }
  0xf3   : > { %v5691_v14 = vpop.eup %5690  ;;  %5716 = vrcp.f32 %v866_v3  ;;  %v869_v15 = vadd.f32 1.0, %v5689_v7  ;;  %v4933_v17 = vmul.f32 -1.442695, %v6376_v5  ;;  %v6386_v18 = vadd.f32 %v6269_v23, %v708_v6 }
  0xf4   : > { %v5693_v24 = vpop.eup %5692  ;;  %5718 = vpow2.f32 %v4930_v10  ;;  %v881_v50 = vadd.f32 1.0, %v5691_v14  ;;  %v4940_v57 = vmul.f32 -1.442695, %v6390_v9  ;;  %v6404_v27 = vadd.f32 %v6269_v23, %v718_v41  ;;  %v5415_v14 = vpop.f32.mrf.mxu1 }
  0xf5   : > { %v5695_v25 = vpop.eup %5694  ;;  %5720 = vrcp.f32 %v869_v15  ;;  %v867_v28 = vadd.f32 1.0, %v5693_v24  ;;  %v4931_v29 = vmul.f32 -1.442695, %v6386_v18  ;;  %v719_v63 = vmul.f32 %v6264_v21, %v6361_v44 }
  0xf6   : > { %v5697_v32 = vpop.eup %5696  ;;  %5722 = vpow2.f32 %v4933_v17  ;;  %v879_v61 = vadd.f32 1.0, %v5695_v25  ;;  %v6410_v6 = vadd.f32 %v6269_v23, %v716_v46  ;;  %v6415_v13 = vadd.f32 %v6269_v23, %v721_v51  ;;  %v676_v41 = vpop.f32.mrf.mxu1 }
  0xf7   : > { %v5699_v37 = vpop.eup %5698  ;;  %5724 = vrcp.f32 %v867_v28  ;;  %v960_v44 = vmul.f32 %v5697_v32, %v6273_v26  ;;  %v722_v17 = vmul.f32 %v6370_v59, %v6264_v21  ;;  %v4941_v26 = vmul.f32 -1.442695, %v6404_v27 }
  0xf8   : > { %v5701_v42 = vpop.eup %5700  ;;  %v872_v43 = vadd.f32 1.0, %v5699_v37  ;;  %5726 = vpow2.f32 %v4931_v29  ;;  %v4939_v59 = vmul.f32 -1.442695, %v6410_v6  ;;  %v4944_v37 = vmul.f32 -1.442695, %v6415_v13 }
  0xf9   : > { %v5703_v47 = vpop.eup %5702  ;;  %5728 = vrcp.f32 %v880_v2  ;;  %v958_v10 = vmul.f32 %v5701_v42, %v6278_v30  ;;  %v6423_v30 = vadd.f32 %v6269_v23, %v719_v63  ;;  %v723_v46 = vmul.f32 %v6264_v21, %v673_v53 }
  0xfa   : > { %v5705_v54 = vpop.eup %5704  ;;  %5730 = vrcp.f32 %v872_v43  ;;  %v870_v55 = vadd.f32 1.0, %v5703_v47  ;;  %v6437_v43 = vadd.f32 %v6269_v23, %v722_v17 }
  0xfb   : > { %v5707_v58 = vpop.eup %5706  ;;  %5732 = vrcp.f32 %v878_v40  ;;  %v961_v36 = vmul.f32 %v5705_v54, %v6283_v34  ;;  %v725_v40 = vmul.f32 %v5414_v31, %v6264_v21  ;;  %v726_v31 = vmul.f32 %v5415_v14, %v6264_v21 }
  0xfc   : > { %v5709_v1 = vpop.eup %5708  ;;  %5734 = vrcp.f32 %v870_v55  ;;  %v873_v3 = vadd.f32 1.0, %v5707_v58  ;;  %v724_v58 = vmul.f32 %v6264_v21, %v676_v41 }
  0xfd   : > { %v5711_v7 = vpop.eup %5710  ;;  %v959_v12 = vmul.f32 %v5709_v1, %v6288_v39  ;;  %5736 = vrcp.f32 %v881_v50  ;;  %v720_v39 = vmul.f32 %v6264_v21, %v660_v22  ;;  %v6426_v29 = vpack.c.bf16 %v961_v36, %v960_v44 }
  0xfe   : > { %v5713_v15 = vpop.eup %5712  ;;  %5738 = vrcp.f32 %v873_v3  ;;  %v871_v34 = vadd.f32 1.0, %v5711_v7  ;;  %v4942_v50 = vmul.f32 -1.442695, %v6423_v30  ;;  %v6468_v14 = vadd.f32 %v6269_v23, %v724_v58 }
  0xff   : > { %v5715_v24 = vpop.eup %5714  ;;  %v6420_v25 = vpack.c.bf16 %v959_v12, %v958_v10  ;;  %5740 = vrcp.f32 %v879_v61  ;;  %v6442_v51 = vadd.f32 %v6269_v23, %v720_v39  ;;  %v964_v36 = vmul.f32 %v5713_v15, %v6294_v45 }
 0x100   : > { %v5717_v28 = vpop.eup %5716  ;;  %5742 = vrcp.f32 %v871_v34  ;;  %v876_v2 = vadd.f32 1.0, %v5715_v24 }
 0x101   : > { %v5719_v32 = vpop.eup %5718  ;;  %5418 = vmatprep.mubr.msk.bf16.mxu1 %vm1063_vm4, %v6420_v25  ;;  %5744 = vpow2.f32 %v4940_v57  ;;  %v962_v63 = vmul.f32 %v5717_v28, %v6303_v52  ;;  %v4945_v52 = vmul.f32 -1.442695, %v6437_v43  ;;  %v4943_v45 = vmul.f32 -1.442695, %v6442_v51 }
 0x102   : > { %v5721_v22 = vpop.eup %5720  ;;  %5746 = vrcp.f32 %v876_v2  ;;  %v874_v42 = vadd.f32 1.0, %v5719_v32  ;;  %5419 = vmatmul.mubr.msk.bf16.vlgmr.msra.gmra.mxu1 %vm1063_vm4, %v6426_v29  ;;  %v4947_v28 = vmul.f32 -1.442695, %v6468_v14 }
 0x103   : > { %v5723_v47 = vpop.eup %5722  ;;  %5748 = vpow2.f32 %v4938_v16  ;;  %v965_v55 = vmul.f32 %v5721_v22, %v6313_v60  ;;  %v6450_v16 = vadd.f32 %v6269_v23, %v725_v40  ;;  %v6456_v60 = vadd.f32 %v6269_v23, %v723_v46 }
 0x104   : > { %v5725_v54 = vpop.eup %5724  ;;  %5750 = vrcp.f32 %v874_v42  ;;  %v877_v57 = vadd.f32 1.0, %v5723_v47 }
 0x105   : > { %v5727_v61 = vpop.eup %5726  ;;  %v963_v53 = vmul.f32 %v5725_v54, %v6325_v4  ;;  %5752 = vpow2.f32 %v4941_v26  ;;  %v6462_v4 = vadd.f32 %v6269_v23, %v726_v31  ;;  %v6464_v12 = vpack.c.bf16 %v965_v55, %v964_v36 }
 0x106   : > { %v6452_v1 = vpop.eup %5728  ;;  %5754 = vrcp.f32 %v877_v57  ;;  %v875_v3 = vadd.f32 1.0, %v5727_v61  ;;  %v4948_v44 = vmul.f32 -1.442695, %v6450_v16  ;;  %v4946_v17 = vmul.f32 -1.442695, %v6456_v60 }
 0x107   : > { %v5731_v7 = vpop.eup %5730  ;;  %v6458_v21 = vpack.c.bf16 %v963_v53, %v962_v63  ;;  %5756 = vpow2.f32 %v4939_v59  ;;  %v4949_v39 = vmul.f32 -1.442695, %v6462_v4 }
 0x108   : > { %v5733_v10 = vpop.eup %5732  ;;  %5758 = vrcp.f32 %v875_v3  ;;  %v968_v41 = vmul.f32 %v5731_v7, %v6336_v11 }
 0x109   : > { %v5735_v15 = vpop.eup %5734  ;;  %5422 = vmatprep.mubr.msk.bf16.mxu1 %vm1063_vm4, %v6458_v21  ;;  %5760 = vpow2.f32 %v4944_v37  ;;  %v974_v58 = vmul.f32 %v5733_v10, %v6308_v56 }
 0x10a   : > { %v5737_v34 = vpop.eup %5736  ;;  %5423 = vmatmul.mubr.msk.bf16.gmra.mxu1 %vm1063_vm4, %v6464_v12  ;;  %5762 = vpow2.f32 %v4942_v50  ;;  %v966_v59 = vmul.f32 %v5735_v15, %v6344_v19 }
 0x10b   : > { %v5739_v24 = vpop.eup %5738  ;;  %5764 = vpow2.f32 %v4945_v52 }
 0x10c   : > { %v5741_v23 = vpop.eup %5740  ;;  %5766 = vpow2.f32 %v4943_v45  ;;  %v969_v26 = vmul.f32 %v5739_v24, %v6352_v33  ;;  %v977_v24 = vmul.f32 %v5737_v34, %v6318_v0 }
 0x10d   : > { %v5743_v2 = vpop.eup %5742  ;;  %5768 = vpow2.f32 %v4948_v44  ;;  %v975_v61 = vmul.f32 %v5741_v23, %v6330_v8 }
 0x10e   : > { %v5745_v32 = vpop.eup %5744  ;;  %v967_v37 = vmul.f32 %v5743_v2, %v6357_v38  ;;  %5770 = vpow2.f32 %v4946_v17  ;;  %v6484_v50 = vpack.c.bf16 %v969_v26, %v968_v41  ;;  %v976_v17 = vmul.f32 %v6452_v1, %v6298_v48 }
 0x10f   : > { %v5747_v40 = vpop.eup %5746  ;;  %v884_v22 = vadd.f32 1.0, %v5745_v32  ;;  %5772 = vpow2.f32 %v4949_v39 }
 0x110   : > { %v5749_v42 = vpop.eup %5748  ;;  %v6482_v46 = vpack.c.bf16 %v967_v37, %v966_v59  ;;  %5774 = vpow2.f32 %v4947_v28  ;;  %8308 = vst [vmem:[#allocation4_spill] sm:$0xff] %v6484_v50  ;;  %v972_v38 = vmul.f32 %v5747_v40, %v6365_v49  ;;  %v6511_v59 = vpack.c.bf16 %v977_v24, %v976_v17 }
 0x111   : > { %v5751_v47 = vpop.eup %5750  ;;  %v882_v33 = vadd.f32 1.0, %v5749_v42  ;;  %5776 = vrcp.f32 %v884_v22 }
 0x112   : > { %8307 = vst [vmem:[#allocation3_spill] sm:$0xff] %v6482_v46  ;;  %v5753_v31 = vpop.eup %5752  ;;  %5426 = vmatprep.mubr.msk.bf16.mxu1 %vm1063_vm4, %v6482_v46  ;;  %v970_v55 = vmul.f32 %v5751_v47, %v6373_v62  ;;  %v6500_v62 = vpack.c.bf16 %v975_v61, %v974_v58  ;;  %8312 = vst [vmem:[#allocation8_spill] sm:$0xff] %v6511_v59 }
 0x113   : > { %v5755_v19 = vpop.eup %5754  ;;  %5427 = vmatmul.mubr.msk.bf16.gmra.mxu1 %vm1063_vm4, %v6484_v50  ;;  %5778 = vrcp.f32 %v882_v33  ;;  %v885_v11 = vadd.f32 1.0, %v5753_v31 }
 0x114   : > { %v5757_v54 = vpop.eup %5756  ;;  %v973_v57 = vmul.f32 %v5755_v19, %v6376_v5  ;;  %8311 = vst [vmem:[#allocation7_spill] sm:$0xff] %v6500_v62 }
 0x115   : > { %v5759_v63 = vpop.eup %5758  ;;  %5780 = vrcp.f32 %v885_v11  ;;  %v883_v53 = vadd.f32 1.0, %v5757_v54 }
 0x116   : > { %v5761_v36 = vpop.eup %5760  ;;  %v971_v49 = vmul.f32 %v5759_v63, %v6386_v18  ;;  %v6496_v7 = vpack.c.bf16 %v973_v57, %v972_v38 }
 0x117   : > { %v5763_v3 = vpop.eup %5762  ;;  %5782 = vrcp.f32 %v883_v53  ;;  %v888_v52 = vadd.f32 1.0, %v5761_v36  ;;  %v2275_v53 = vld [vmem:[#allocation2 + $0xcc] sm:$0xf]  ;;  %v2276_v36 = vld [vmem:[#allocation2 + $0xd0] sm:$0xf] }
 0x118   : > { %8309 = vst [vmem:[#allocation5_spill] sm:$0xff] %v6496_v7  ;;  %v5765_v45 = vpop.eup %5764  ;;  %v6498_v15 = vpack.c.bf16 %v971_v49, %v970_v55  ;;  %v886_v5 = vadd.f32 1.0, %v5763_v3  ;;  %v6590_v3 = vcombine.low %v2275_v53, %v2276_v36 }
 0x119   : > { %v5767_v56 = vpop.eup %5766  ;;  %5784 = vrcp.f32 %v888_v52  ;;  %v889_v8 = vadd.f32 1.0, %v5765_v45  ;;  %v2164_v52 = vld [vmem:[#allocation2] sm:$0xe]  ;;  %v5529_v45 = vld [vmem:[#allocation2 + $0x8] ss:$0 sps:$4 sm:$0x11]  }
 0x11a   : > { %8310 = vst [vmem:[#allocation6_spill] sm:$0xff] %v6498_v15  ;;  %v5769_v10 = vpop.eup %5768  ;;  %5430 = vmatprep.mubr.msk.bf16.mxu1 %vm1063_vm4, %v6498_v15  ;;  %5786 = vrcp.f32 %v886_v5  ;;  %v887_v18 = vadd.f32 1.0, %v5767_v56  ;;  %3413 = vrot.lane.b32.xlu1 %v6590_v3, %s6068_s27  ;;  %v2446_v20 = vshll.u32 %v5529_v45, 16 }
 0x11b   : > { %v5771_v44 = vpop.eup %5770  ;;  %5431 = vmatmul.mubr.msk.bf16.gmra.mxu1 %vm1063_vm4, %v6496_v7  ;;  %5788 = vrcp.f32 %v889_v8  ;;  %v892_v2 = vadd.f32 1.0, %v5769_v10 }
 0x11c   : > { %v5773_v39 = vpop.eup %5772  ;;  %5434 = vmatprep.mubr.msk.bf16.mxu1 %vm1063_vm4, %v6500_v62  ;;  %5790 = vrcp.f32 %v887_v18  ;;  %v890_v23 = vadd.f32 1.0, %v5771_v44  ;;  %v2712_v18 = vrot.slane %v5529_v45, 1  ;;  %v2448_v17 = vrot.slane %v2446_v20, 1 }
 0x11d   : > { %v5775_v28 = vpop.eup %5774  ;;  %v893_v48 = vadd.f32 1.0, %v5773_v39 }
 0x11e   : > { %5792 = vrcp.f32 %v890_v23  ;;  %v891_v26 = vadd.f32 1.0, %v5775_v28  ;;  %v5777_v32 = vpop.eup %5776  ;;  %v6602_v23 = vld [vmem:[%s8277_s5] ss:$0 sm:$0xff] }
 0x11f   : > { %v980_v34 = vmul.f32 %v5777_v32, %v6390_v9 }
 0x120   : > { %v5779_v1 = vpop.eup %5778  ;;  %5794 = vrcp.f32 %v891_v26 }
 0x121   : > { %5796 = vrcp.f32 %v892_v2  ;;  %v978_v37 = vmul.f32 %v5779_v1, %v6393_v35  ;;  %v6607_v2 = vld [vmem:[%s8278_s6] ss:$0 sm:$0xff] }
 0x122   : > { %v5781_v0 = vpop.eup %5780  ;;  %5798 = vrcp.f32 %v893_v48 }
 0x123   : > { %v981_v40 = vmul.f32 %v5781_v0, %v6404_v27  ;;  %5435 = vmatmul.mubr.msk.bf16.gmra.mxu1 %vm1063_vm4, %v6511_v59 }
 0x124   : > { %v5783_v41 = vpop.eup %5782 }
 0x125   : > { %v979_v22 = vmul.f32 %v5783_v41, %v6410_v6  ;;  %v6519_v33 = vpack.c.bf16 %v981_v40, %v980_v34 }
 0x126   : > { %v5785_v42 = vpop.eup %5784 }
 0x127   : > { %v5787_v47 = vpop.eup %5786  ;;  %8313 = vst [vmem:[#allocation9_spill] sm:$0xff] %v6519_v33  ;;  %v6521_v31 = vpack.c.bf16 %v979_v22, %v978_v37  ;;  %v984_v11 = vmul.f32 %v5785_v42, %v6415_v13 }
 0x128   : > { %v5789_v19 = vpop.eup %5788  ;;  %v982_v9 = vmul.f32 %v5787_v47, %v6423_v30 }
 0x129   : > { %8314 = vst [vmem:[#allocation10_spill] sm:$0xff] %v6521_v31  ;;  %v5791_v38 = vpop.eup %5790  ;;  %5438 = vmatprep.mubr.msk.bf16.mxu1 %vm1063_vm4, %v6521_v31  ;;  %v985_v6 = vmul.f32 %v5789_v19, %v6437_v43 }
 0x12a   : > { %v983_v35 = vmul.f32 %v5791_v38, %v6442_v51 }
 0x12b   : > { %v5793_v27 = vpop.eup %5792  ;;  %5439 = vmatmul.mubr.msk.bf16.gmra.mxu1 %vm1063_vm4, %v6519_v33  ;;  %v6537_v51 = vpack.c.bf16 %v985_v6, %v984_v11 }
 0x12c   : > { %v6531_v54 = vpack.c.bf16 %v983_v35, %v982_v9  ;;  %v986_v55 = vmul.f32 %v5793_v27, %v6456_v60 }
 0x12d   : > { %v5795_v57 = vpop.eup %5794  ;;  %8316 = vst [vmem:[#allocation12_spill] sm:$0xff] %v6537_v51 }
 0x12e   : > { %8315 = vst [vmem:[#allocation11_spill] sm:$0xff] %v6531_v54  ;;  %v987_v30 = vmul.f32 %v5795_v57, %v6468_v14  ;;  %5442 = vmatprep.mubr.msk.bf16.mxu1 %vm1063_vm4, %v6531_v54  ;;  %v5797_v58 = vpop.eup %5796 }
 0x12f   : > { %v5799_v61 = vpop.eup %5798  ;;  %v988_v43 = vmul.f32 %v5797_v58, %v6450_v16  ;;  %v2117_v16 = vld [vmem:[#allocation2 + $0x4] sm:$0xf] }
 0x130   : > { %v6539_v13 = vpack.c.bf16 %v987_v30, %v986_v55  ;;  %v989_v63 = vmul.f32 %v5799_v61, %v6462_v4  ;;  %v2116_v4 = vld [vmem:[#allocation2] sm:$0xf]  ;;  %v5064_v5 = vcombine.low %v2164_v52, %v2117_v16 }
 0x131   : > { %v6587_v14 = vcombine.low %v2116_v4, %v2117_v16 }
 0x132   : > { %8317 = vst [vmem:[#allocation13_spill] sm:$0xff] %v6539_v13  ;;  %v6547_v60 = vpack.c.bf16 %v989_v63, %v988_v43  ;;  %v2711_v10 = vrot.slane %v5064_v5, 1 }
 0x133   : > { %5443 = vmatmul.mubr.msk.bf16.gmra.mxu1 %vm1063_vm4, %v6537_v51  ;;  %v2441_v49 = vshll.u32 %v6587_v14, 16  ;;  %v2439_v56 = vshrl.u32 %v6587_v14, 16 }
 0x134   : > { %5446 = vmatprep.mubr.msk.bf16.mxu1 %vm1063_vm4, %v6539_v13  ;;  %8318 = vst [vmem:[#allocation14_spill] sm:$0xff] %v6547_v60  ;;  %v2713_v24 = vsel %vm2710_vm6, %v2711_v10, %v2712_v18 }
 0x135   : > { %v2443_v8 = vrot.slane %v2441_v49, 1  ;;  %2759 = vrot.lane.b32.xlu1 %v2713_v24, %s6069_s28 }
 0x137   : > { %v2444_v44 = vor.u32 %v2443_v8, %v2439_v56 }
 0x139   : > { %v2449_v39 = vsel %vm2437_vm7, %v2444_v44, %v2448_v17 }
 0x13a   : > { %2630 = vrot.lane.b32.xlu0 %v2449_v39, %s6070_s29 }
 0x13b   : > { %5447 = vmatmul.mubr.msk.bf16.gmra.mxu1 %vm1063_vm4, %v6547_v60 }
 0x1c2   : > { %v5420_v28 = vpop.f32.mrf.mxu1 }
 0x1c3   : > { %v1286_v26 = vmul.f32 %v5420_v28, %v6602_v23 }
 0x1c4   : > { %v1150_v32 = vpop.f32.mrf.mxu1 }
 0x1c5   : > { %v6611_v48 = vadd.f32 %v6607_v2, %v1286_v26  ;;  %v1284_v1 = vmul.f32 %v6602_v23, %v1150_v32 }
 0x1c6   : > { %v5421_v0 = vpop.f32.mrf.mxu1 }
 0x1c7   : > { %v4970_v34 = vmul.f32 -1.442695, %v6611_v48  ;;  %v6616_v37 = vadd.f32 %v6607_v2, %v1284_v1  ;;  %v1287_v40 = vmul.f32 %v5421_v0, %v6602_v23 }
 0x1c8   : > { %v1153_v41 = vpop.f32.mrf.mxu1 }
 0x1c9   : > { %5800 = vpow2.f32 %v4970_v34  ;;  %v4968_v22 = vmul.f32 -1.442695, %v6616_v37  ;;  %v6621_v42 = vadd.f32 %v6607_v2, %v1287_v40  ;;  %v1285_v47 = vmul.f32 %v6602_v23, %v1153_v41 }
 0x1ca   : > { %v5424_v19 = vpop.f32.mrf.mxu1 }
 0x1cb   : > { %5802 = vpow2.f32 %v4968_v22  ;;  %v4971_v9 = vmul.f32 -1.442695, %v6621_v42  ;;  %v6626_v38 = vadd.f32 %v6607_v2, %v1285_v47  ;;  %v1290_v35 = vmul.f32 %v5424_v19, %v6602_v23 }
 0x1cc   : > { %v1166_v27 = vpop.f32.mrf.mxu1 }
 0x1cd   : > { %5804 = vpow2.f32 %v4971_v9  ;;  %v4969_v11 = vmul.f32 -1.442695, %v6626_v38  ;;  %v6631_v6 = vadd.f32 %v6607_v2, %v1290_v35  ;;  %v1288_v55 = vmul.f32 %v6602_v23, %v1166_v27 }
 0x1ce   : > { %v5425_v57 = vpop.f32.mrf.mxu1 }
 0x1cf   : > { %5806 = vpow2.f32 %v4969_v11  ;;  %v4974_v30 = vmul.f32 -1.442695, %v6631_v6  ;;  %v6636_v58 = vadd.f32 %v6607_v2, %v1288_v55  ;;  %v1291_v61 = vmul.f32 %v5425_v57, %v6602_v23 }
 0x1d0   : > { %v1169_v43 = vpop.f32.mrf.mxu1 }
 0x1d1   : > { %5808 = vpow2.f32 %v4974_v30  ;;  %v4972_v63 = vmul.f32 -1.442695, %v6636_v58  ;;  %v6641_v16 = vadd.f32 %v6607_v2, %v1291_v61  ;;  %v1289_v4 = vmul.f32 %v6602_v23, %v1169_v43 }
 0x1d3   : > { %5810 = vpow2.f32 %v4972_v63  ;;  %v4975_v53 = vmul.f32 -1.442695, %v6641_v16  ;;  %v6646_v36 = vadd.f32 %v6607_v2, %v1289_v4  ;;  %v5428_v49 = vpop.f32.mrf.mxu1 }
 0x1d4   : > { %v1294_v52 = vmul.f32 %v5428_v49, %v6602_v23 }
 0x1d5   : > { %5812 = vpow2.f32 %v4975_v53  ;;  %v4973_v45 = vmul.f32 -1.442695, %v6646_v36  ;;  %v1182_v5 = vpop.f32.mrf.mxu1 }
 0x1d6   : > { %v5801_v56 = vpop.eup %5800  ;;  %v6651_v8 = vadd.f32 %v6607_v2, %v1294_v52  ;;  %v1292_v20 = vmul.f32 %v6602_v23, %v1182_v5 }
 0x1d7   : > { %v1453_v10 = vadd.f32 1.0, %v5801_v56  ;;  %5814 = vpow2.f32 %v4973_v45  ;;  %v5429_v18 = vpop.f32.mrf.mxu1 }
 0x1d8   : > { %v5803_v44 = vpop.eup %5802  ;;  %v4978_v17 = vmul.f32 -1.442695, %v6651_v8  ;;  %v6656_v24 = vadd.f32 %v6607_v2, %v1292_v20  ;;  %v1295_v39 = vmul.f32 %v5429_v18, %v6602_v23 }
 0x1d9   : > { %5816 = vrcp.f32 %v1453_v10  ;;  %v1451_v28 = vadd.f32 1.0, %v5803_v44  ;;  %v1185_v26 = vpop.f32.mrf.mxu1 }
 0x1da   : > { %v5805_v32 = vpop.eup %5804  ;;  %5818 = vpow2.f32 %v4978_v17  ;;  %v4976_v1 = vmul.f32 -1.442695, %v6656_v24  ;;  %v6661_v0 = vadd.f32 %v6607_v2, %v1295_v39  ;;  %v1293_v34 = vmul.f32 %v6602_v23, %v1185_v26 }
 0x1db   : > { %5820 = vrcp.f32 %v1451_v28  ;;  %v1454_v40 = vadd.f32 1.0, %v5805_v32  ;;  %v5432_v41 = vpop.f32.mrf.mxu1 }
 0x1dc   : > { %v5807_v22 = vpop.eup %5806  ;;  %5822 = vpow2.f32 %v4976_v1  ;;  %v4979_v47 = vmul.f32 -1.442695, %v6661_v0  ;;  %v6666_v19 = vadd.f32 %v6607_v2, %v1293_v34  ;;  %v1298_v9 = vmul.f32 %v5432_v41, %v6602_v23 }
 0x1dd   : > { %5824 = vrcp.f32 %v1454_v40  ;;  %v1452_v35 = vadd.f32 1.0, %v5807_v22  ;;  %v1198_v27 = vpop.f32.mrf.mxu1 }
 0x1de   : > { %v5809_v11 = vpop.eup %5808  ;;  %5826 = vpow2.f32 %v4979_v47  ;;  %v4977_v55 = vmul.f32 -1.442695, %v6666_v19  ;;  %v6671_v57 = vadd.f32 %v6607_v2, %v1298_v9  ;;  %v1296_v30 = vmul.f32 %v6602_v23, %v1198_v27 }
 0x1df   : > { %5828 = vrcp.f32 %v1452_v35  ;;  %v1457_v61 = vadd.f32 1.0, %v5809_v11  ;;  %v5433_v43 = vpop.f32.mrf.mxu1 }
 0x1e0   : > { %v5811_v63 = vpop.eup %5810  ;;  %5830 = vpow2.f32 %v4977_v55  ;;  %v4982_v4 = vmul.f32 -1.442695, %v6671_v57  ;;  %v6676_v53 = vadd.f32 %v6607_v2, %v1296_v30  ;;  %v1299_v49 = vmul.f32 %v5433_v43, %v6602_v23 }
 0x1e1   : > { %5832 = vrcp.f32 %v1457_v61  ;;  %v1455_v52 = vadd.f32 1.0, %v5811_v63  ;;  %v1201_v45 = vpop.f32.mrf.mxu1 }
 0x1e2   : > { %v5813_v5 = vpop.eup %5812  ;;  %v4980_v56 = vmul.f32 -1.442695, %v6676_v53  ;;  %v6681_v20 = vadd.f32 %v6607_v2, %v1299_v49  ;;  %v1297_v10 = vmul.f32 %v6602_v23, %v1201_v45 }
 0x1e3   : > { %5834 = vrcp.f32 %v1455_v52  ;;  %v1458_v18 = vadd.f32 1.0, %v5813_v5  ;;  %v5436_v44 = vpop.f32.mrf.mxu1 }
 0x1e4   : > { %v5815_v17 = vpop.eup %5814  ;;  %5836 = vpow2.f32 %v4982_v4  ;;  %v4983_v39 = vmul.f32 -1.442695, %v6681_v20  ;;  %v6686_v28 = vadd.f32 %v6607_v2, %v1297_v10  ;;  %v1302_v26 = vmul.f32 %v5436_v44, %v6602_v23 }
 0x1e5   : > { %5838 = vrcp.f32 %v1458_v18  ;;  %v1456_v32 = vadd.f32 1.0, %v5815_v17  ;;  %v1214_v1 = vpop.f32.mrf.mxu1 }
 0x1e6   : > { %v5817_v34 = vpop.eup %5816  ;;  %5840 = vpow2.f32 %v4980_v56  ;;  %v4981_v40 = vmul.f32 -1.442695, %v6686_v28  ;;  %v6691_v41 = vadd.f32 %v6607_v2, %v1302_v26  ;;  %v1300_v22 = vmul.f32 %v6602_v23, %v1214_v1 }
 0x1e7   : > { %v5819_v47 = vpop.eup %5818  ;;  %v1549_v9 = vmul.f32 %v5817_v34, %v6611_v48  ;;  %5842 = vrcp.f32 %v1456_v32  ;;  %v5437_v35 = vpop.f32.mrf.mxu1 }
 0x1e8   : > { %v5821_v27 = vpop.eup %5820  ;;  %v1461_v11 = vadd.f32 1.0, %v5819_v47  ;;  %5844 = vpow2.f32 %v4983_v39  ;;  %v6696_v55 = vadd.f32 %v6607_v2, %v1300_v22  ;;  %v1303_v63 = vmul.f32 %v5437_v35, %v6602_v23 }
 0x1e9   : > { %v5823_v30 = vpop.eup %5822  ;;  %v5267_v61 = vpack.c.bf16 %v1549_v9, %v1549_v9  ;;  %v1547_v43 = vmul.f32 %v5821_v27, %v6616_v37  ;;  %5846 = vpow2.f32 %v4981_v40  ;;  %v1217_v4 = vpop.f32.mrf.mxu1  ;;  %v6701_v52 = vmul.f32 -1.442695, %v6691_v41  ;;  %v2011_v9 = vld [vmem:[#allocation2 + $0x18] sm:$0xf] }
 0x1ea   : > { %v5825_v48 = vpop.eup %5824  ;;  %5848 = vrcp.f32 %v1461_v11  ;;  %v1459_v49 = vadd.f32 1.0, %v5823_v30  ;;  %v1301_v45 = vmul.f32 %v6602_v23, %v1217_v4  ;;  %v6706_v44 = vmul.f32 -1.442695, %v6696_v55 }
 0x1eb   : > { %v5827_v5 = vpop.eup %5826  ;;  %v1696_v56 = vshrl.u32 %v5267_v61, 16  ;;  %v5265_v10 = vpack.c.bf16 %v1547_v43, %v1547_v43  ;;  %v1550_v18 = vmul.f32 %v5825_v48, %v6621_v42  ;;  %v1699_v17 = vshll.u32 %v5267_v61, 16  ;;  %v2002_v48 = vld [vmem:[#allocation2 + $0xc] sm:$0xf] }
 0x1ec   : > { %v5829_v37 = vpop.eup %5828  ;;  %5850 = vrcp.f32 %v1459_v49  ;;  %v1462_v39 = vadd.f32 1.0, %v5827_v5  ;;  %v6709_v26 = vadd.f32 %v6607_v2, %v1303_v63  ;;  %v6712_v22 = vadd.f32 %v6607_v2, %v1301_v45 }
 0x1ed   : > { %v5831_v32 = vpop.eup %5830  ;;  %v1698_v1 = vrot.slane %v1696_v56, 7  ;;  %v1679_v34 = vshrl.u32 %v5265_v10, 16  ;;  %v5268_v40 = vpack.c.bf16 %v1550_v18, %v1550_v18  ;;  %v1682_v35 = vshll.u32 %v5265_v10, 16 }
 0x1ee   : > { %v5833_v47 = vpop.eup %5832  ;;  %v1548_v27 = vmul.f32 %v5829_v37, %v6626_v38  ;;  %5852 = vrcp.f32 %v1462_v39  ;;  %v1460_v11 = vadd.f32 1.0, %v5831_v32  ;;  %v2015_v39 = vld [vmem:[#allocation2 + $0x20] sm:$0x1] }
 0x1ef   : > { %v1701_v30 = vor.u32 %v1699_v17, %v1698_v1  ;;  %v1702_v61 = vrot.slane %v1698_v1, 4  ;;  %v1681_v43 = vrot.slane %v1679_v34, 7  ;;  %v1704_v63 = vshrl.u32 %v5268_v40, 16 }
 0x1f0   : > { %v5835_v4 = vpop.eup %5834  ;;  %v1707_v49 = vshll.u32 %v5268_v40, 16  ;;  %v5266_v45 = vpack.c.bf16 %v1548_v27, %v1548_v27  ;;  %v1553_v5 = vmul.f32 %v5833_v47, %v6631_v6  ;;  %5854 = vrcp.f32 %v1460_v11 }
 0x1f1   : > { %v5837_v56 = vpop.eup %5836  ;;  %v2012_v18 = vsel %vm6716_vm11, %v1701_v30, %v2011_v9  ;;  %v1684_v10 = vor.u32 %v1682_v35, %v1681_v43  ;;  %v1685_v13 = vrot.slane %v1681_v43, 4  ;;  %v1706_v37 = vrot.slane %v1704_v63, 7 }
 0x1f2   : > { %v5839_v17 = vpop.eup %5838  ;;  %2013 = vst [vmem:[#allocation2 + $0x18] sm:$0xf] %v2012_v18  ;;  %v1687_v32 = vshrl.u32 %v5266_v45, 16  ;;  %v1690_v1 = vshll.u32 %v5266_v45, 16  ;;  %v5271_v34 = vpack.c.bf16 %v1553_v5, %v1553_v5  ;;  %v1551_v40 = vmul.f32 %v5835_v4, %v6636_v58  ;;  %v2008_v45 = vld [vmem:[#allocation2 + $0x14] sm:$0x1] }
 0x1f3   : > { %v6737_v47 = vpop.eup %5840  ;;  %v2003_v9 = vsel %vm6716_vm11, %v1684_v10, %v2002_v48  ;;  %v1709_v35 = vor.u32 %v1707_v49, %v1706_v37  ;;  %v1711_v27 = vrot.slane %v1706_v37, 4  ;;  %v1554_v11 = vmul.f32 %v5839_v17, %v6641_v16 }
 0x1f4   : > { %v5843_v30 = vpop.eup %5842  ;;  %2004 = vst [vmem:[#allocation2 + $0xc] sm:$0xf] %v2003_v9  ;;  %v1689_v43 = vrot.slane %v1687_v32, 7  ;;  %v1730_v63 = vshrl.u32 %v5271_v34, 16  ;;  %v1733_v18 = vshll.u32 %v5271_v34, 16  ;;  %v5269_v60 = vpack.c.bf16 %v1551_v40, %v1551_v40 }
 0x1f5   : > { %v6742_v54 = vpop.eup %5844  ;;  %v1710_v58 = vsel %vm6726_vm12, %v1702_v61, %v1709_v35  ;;  %v2016_v4 = vsel %vm6732_vm13, %v1711_v27, %v2015_v39  ;;  %v5272_v48 = vpack.c.bf16 %v1554_v11, %v1554_v11  ;;  %v1552_v49 = vmul.f32 %v5843_v30, %v6646_v36  ;;  %v2025_v34 = vld [vmem:[#allocation2 + $0x30] sm:$0xf] }
 0x1f6   : > { %v6749_v5 = vpop.eup %5846  ;;  %2014 = vst.msk [vmem:[#allocation2 + $0x1c] sm:$0xf] %vm1006_vm3, %v1710_v58  ;;  %2017 = vst [vmem:[#allocation2 + $0x20] sm:$0x1] %v2016_v4  ;;  %v1692_v16 = vor.u32 %v1690_v1, %v1689_v43  ;;  %v1694_v10 = vrot.slane %v1689_v43, 4  ;;  %v1732_v37 = vrot.slane %v1730_v63, 7 }
 0x1f7   : > { %v1713_v17 = vshrl.u32 %v5269_v60, 16  ;;  %v5849_v32 = vpop.eup %5848  ;;  %v1716_v40 = vshll.u32 %v5269_v60, 16  ;;  %v1738_v61 = vshrl.u32 %v5272_v48, 16  ;;  %v5270_v9 = vpack.c.bf16 %v1552_v49, %v1552_v49  ;;  %v2018_v4 = vld [vmem:[#allocation2 + $0x24] sm:$0xf] }
 0x1f8   : > { %v6753_v39 = vmul.f32 -1.442695, %v6709_v26  ;;  %v1693_v36 = vsel %vm6726_vm12, %v1685_v13, %v1692_v16  ;;  %v2009_v35 = vsel %vm6732_vm13, %v1694_v10, %v2008_v45  ;;  %v1735_v27 = vor.u32 %v1733_v18, %v1732_v37  ;;  %v2029_v49 = vld [vmem:[#allocation2 + $0x38] sm:$0x1] }
 0x1f9   : > { %v1741_v11 = vshll.u32 %v5272_v48, 16  ;;  %v5851_v1 = vpop.eup %5850  ;;  %2005 = vst.msk [vmem:[#allocation2 + $0x10] sm:$0xf] %vm1006_vm3, %v1693_v36  ;;  %2010 = vst [vmem:[#allocation2 + $0x14] sm:$0x1] %v2009_v35  ;;  %v1736_v30 = vrot.slane %v1732_v37, 4  ;;  %v1557_v13 = vmul.f32 %v5849_v32, %v6651_v8 }
 0x1fa   : > { %v1715_v43 = vrot.slane %v1713_v17, 7  ;;  %v1740_v60 = vrot.slane %v1738_v61, 7  ;;  %v1721_v63 = vshrl.u32 %v5270_v9, 16  ;;  %v2026_v58 = vsel %vm6716_vm11, %v1735_v27, %v2025_v34 }
 0x1fb   : > { %v1555_v16 = vmul.f32 %v5851_v1, %v6656_v24  ;;  %v1465_v45 = vadd.f32 1.0, %v5837_v56  ;;  %v5853_v18 = vpop.eup %5852  ;;  %2027 = vst [vmem:[#allocation2 + $0x30] sm:$0xf] %v2026_v58  ;;  %v1724_v35 = vshll.u32 %v5270_v9, 16  ;;  %v5275_v17 = vpack.c.bf16 %v1557_v13, %v1557_v13  ;;  %v2022_v56 = vld [vmem:[#allocation2 + $0x2c] sm:$0x1] }
 0x1fc   : > { %v1718_v48 = vor.u32 %v1716_v40, %v1715_v43  ;;  %v1743_v10 = vor.u32 %v1741_v11, %v1740_v60  ;;  %v1745_v36 = vrot.slane %v1740_v60, 4  ;;  %v1723_v37 = vrot.slane %v1721_v63, 7 }
 0x1fd   : > { %v5273_v61 = vpack.c.bf16 %v1555_v16, %v1555_v16  ;;  %v1558_v51 = vmul.f32 %v5853_v18, %v6661_v0  ;;  %v5855_v31 = vpop.eup %5854  ;;  %5856 = vrcp.f32 %v1465_v45  ;;  %v1719_v32 = vrot.slane %v1715_v43, 4  ;;  %v2039_v43 = vld [vmem:[#allocation2 + $0x48] sm:$0xf]  ;;  %v2032_v16 = vld [vmem:[#allocation2 + $0x3c] sm:$0xf] }
 0x1fe   : > { %v2019_v34 = vsel %vm6716_vm11, %v1718_v48, %v2018_v4  ;;  %v1744_v8 = vsel %vm6726_vm12, %v1736_v30, %v1743_v10  ;;  %v2030_v24 = vsel %vm6732_vm13, %v1745_v36, %v2029_v49  ;;  %v1726_v40 = vor.u32 %v1724_v35, %v1723_v37  ;;  %v5440_v10 = vpop.f32.mrf.mxu1 }
 0x1ff   : > { %2020 = vst [vmem:[#allocation2 + $0x24] sm:$0xf] %v2019_v34  ;;  %2028 = vst.msk [vmem:[#allocation2 + $0x34] sm:$0xf] %vm1006_vm3, %v1744_v8  ;;  %v1728_v9 = vrot.slane %v1723_v37, 4  ;;  %v1764_v0 = vshrl.u32 %v5275_v17, 16  ;;  %v5276_v1 = vpack.c.bf16 %v1558_v51, %v1558_v51  ;;  %v1556_v60 = vmul.f32 %v5855_v31, %v6666_v19 }
 0x200   : > { %2031 = vst [vmem:[#allocation2 + $0x38] sm:$0x1] %v2030_v24  ;;  %v1767_v27 = vshll.u32 %v5275_v17, 16  ;;  %v1747_v11 = vshrl.u32 %v5273_v61, 16  ;;  %v1727_v30 = vsel %vm6726_vm12, %v1719_v32, %v1726_v40  ;;  %v1463_v4 = vadd.f32 1.0, %v6737_v47 }
 0x201   : > { %v2023_v63 = vsel %vm6732_vm13, %v1728_v9, %v2022_v56  ;;  %v1766_v58 = vrot.slane %v1764_v0, 7  ;;  %2021 = vst.msk [vmem:[#allocation2 + $0x28] sm:$0xf] %vm1006_vm3, %v1727_v30  ;;  %v1750_v13 = vshll.u32 %v5273_v61, 16  ;;  %v1772_v45 = vshrl.u32 %v5276_v1, 16 }
 0x202   : > { %2024 = vst [vmem:[#allocation2 + $0x2c] sm:$0x1] %v2023_v63  ;;  %v1749_v49 = vrot.slane %v1747_v11, 7  ;;  %v5274_v51 = vpack.c.bf16 %v1556_v60, %v1556_v60  ;;  %v1775_v31 = vshll.u32 %v5276_v1, 16  ;;  %v2043_v19 = vld [vmem:[#allocation2 + $0x50] sm:$0x1]  ;;  %5858 = vrcp.f32 %v1463_v4 }
 0x203   : > { %v1769_v18 = vor.u32 %v1767_v27, %v1766_v58  ;;  %v1466_v48 = vadd.f32 1.0, %v6742_v54  ;;  %v1770_v36 = vrot.slane %v1766_v58, 4  ;;  %v1774_v37 = vrot.slane %v1772_v45, 7  ;;  %v6780_v47 = vld [vmem:[#allocation2 + $0x1c] sm:$0xf] }
 0x204   : > { %v1752_v35 = vor.u32 %v1750_v13, %v1749_v49  ;;  %v1755_v17 = vshrl.u32 %v5274_v51, 16  ;;  %v1758_v61 = vshll.u32 %v5274_v51, 16  ;;  %v2036_v8 = vld [vmem:[#allocation2 + $0x44] sm:$0x1]  ;;  %v1464_v24 = vadd.f32 1.0, %v6749_v5  ;;  %v1230_v5 = vpop.f32.mrf.mxu1 }
 0x205   : > { %v2040_v34 = vsel %vm6716_vm11, %v1769_v18, %v2039_v43  ;;  %5860 = vrcp.f32 %v1466_v48  ;;  %v2245_v56 = vld [vmem:[#allocation2 + $0x18] sm:$0xf]  ;;  %v1777_v32 = vor.u32 %v1775_v31, %v1774_v37  ;;  %v1779_v40 = vrot.slane %v1774_v37, 4  ;;  %v2183_v27 = vld [vmem:[#allocation2 + $0x1c] sm:$0xf] }
 0x206   : > { %2041 = vst [vmem:[#allocation2 + $0x48] sm:$0xf] %v2040_v34  ;;  %v2033_v54 = vsel %vm6716_vm11, %v1752_v35, %v2032_v16  ;;  %v1757_v9 = vrot.slane %v1755_v17, 7  ;;  %v2293_v0 = vld [vmem:[#allocation2 + $0x18] sm:$0xe]  ;;  %v1753_v11 = vrot.slane %v1749_v49, 4  ;;  %5862 = vrcp.f32 %v1464_v24 }
 0x207   : > { %2034 = vst [vmem:[#allocation2 + $0x3c] sm:$0xf] %v2033_v54  ;;  %v4985_v1 = vmul.f32 -1.442695, %v6712_v22  ;;  %v6789_v60 = vcombine.low %v2245_v56, %v6780_v47  ;;  %v1778_v63 = vsel %vm6726_vm12, %v1770_v36, %v1777_v32  ;;  %v2044_v58 = vsel %vm6732_vm13, %v1779_v40, %v2043_v19  ;;  %v2182_v13 = vld [vmem:[#allocation2 + $0x18] sm:$0xf] }
 0x208   : > { %v6791_v30 = vld [vmem:[#allocation2 + $0x20] ss:$0 sps:$4 sm:$0x11]   ;;  %v1760_v43 = vor.u32 %v1758_v61, %v1757_v9  ;;  %v1762_v4 = vrot.slane %v1757_v9, 4  ;;  %v2229_v49 = vld [vmem:[#allocation2 + $0x18] sm:$0xe]  ;;  %5864 = vpow2.f32 %v6701_v52  ;;  %v5160_v16 = vcombine.low %v2293_v0, %v6780_v47  ;;  %v5441_v47 = vpop.f32.mrf.mxu1 }
 0x209   : > { %2042 = vst.msk [vmem:[#allocation2 + $0x4c] sm:$0xf] %vm1006_vm3, %v1778_v63  ;;  %2045 = vst [vmem:[#allocation2 + $0x50] sm:$0x1] %v2044_v58  ;;  %3383 = vrot.lane.b32.xlu0 %v6789_v60, %s6068_s27  ;;  %v6802_v45 = vcombine.low %v2182_v13, %v2183_v27  ;;  %v5113_v51 = vcombine.low %v2229_v49, %v2183_v27  ;;  %v6804_v18 = vld [vmem:[#allocation2 + $0x10] sm:$0xf]  ;;  %5866 = vpow2.f32 %v6706_v44 }
 0x20a   : > { %v1761_v31 = vsel %vm6726_vm12, %v1753_v11, %v1760_v43  ;;  %v2037_v19 = vsel %vm6732_vm13, %v1762_v4, %v2036_v8  ;;  %v1306_v52 = vmul.f32 %v5440_v10, %v6602_v23  ;;  %v2180_v48 = vld [vmem:[#allocation2 + $0xc] sm:$0xf]  ;;  %v6812_v36 = vld [vmem:[#allocation2 + $0x10] sm:$0xf]  ;;  %v5857_v35 = vpop.eup %5856  ;;  %5868 = vpow2.f32 %v6753_v39  ;;  %v1233_v58 = vpop.f32.mrf.mxu1 }
 0x20b   : > { %2035 = vst.msk [vmem:[#allocation2 + $0x40] sm:$0xf] %vm1006_vm3, %v1761_v31  ;;  %2038 = vst [vmem:[#allocation2 + $0x44] sm:$0x1] %v2037_v19  ;;  %2873 = vrot.lane.b32.xlu1 %v6802_v45, %s6071_s16  ;;  %v3226_v37 = vrot.slane %v5113_v51, 1  ;;  %v3227_v17 = vrot.slane %v6791_v30, 1  ;;  %v1561_v10 = vmul.f32 %v5857_v35, %v6671_v57  ;;  %5870 = vpow2.f32 %v4985_v1 }
 0x20c   : > { %v6819_v44 = vld [vmem:[#allocation2 + $0x20] ss:$0 sps:$4 sm:$0x11]   ;;  %v6823_v34 = vadd.f32 %v6607_v2, %v1306_v52  ;;  %v6826_v61 = vcombine.low %v2180_v48, %v6804_v18  ;;  %v6828_v39 = vld [vmem:[#allocation2 + $0x14] ss:$0 sps:$4 sm:$0x11]   ;;  %v1304_v56 = vmul.f32 %v6602_v23, %v1230_v5  ;;  %v1307_v54 = vmul.f32 %v5441_v47, %v6602_v23 }
 0x20d   : > { %v3228_v24 = vsel %vm2710_vm6, %v3226_v37, %v3227_v17  ;;  %v5279_v32 = vpack.c.bf16 %v1561_v10, %v1561_v10  ;;  %v2966_v57 = vshll.u32 %v6802_v45, 16  ;;  %v3735_v9 = vrot.slane %v5160_v16, 1  ;;  %v2165_v0 = vld [vmem:[#allocation2 + $0xc] sm:$0xe]  ;;  %v2121_v16 = vld [vmem:[#allocation2 + $0x1c] sm:$0xf] }
 0x20e   : > { %v4990_v40 = vmul.f32 -1.442695, %v6823_v34  ;;  %2871 = vrot.lane.b32.xlu0 %v6826_v61, %s6071_s16  ;;  %v6839_v27 = vld [vmem:[#allocation2 + $0xc] sm:$0xe]  ;;  %v6842_v11 = vadd.f32 %v6607_v2, %v1304_v56  ;;  %v6845_v1 = vadd.f32 %v6607_v2, %v1307_v54  ;;  %v3736_v5 = vrot.slane %v6819_v44, 1 }
 0x20f   : > { %3273 = vrot.lane.b32.xlu1 %v3228_v24, %s6072_s18  ;;  %v5065_v63 = vcombine.low %v2165_v0, %v6812_v36  ;;  %v5859_v43 = vpop.eup %5858  ;;  %v1798_v4 = vshrl.u32 %v5279_v32, 16  ;;  %v2715_v49 = vrot.slane %v6828_v39, 1  ;;  %v2120_v48 = vld [vmem:[#allocation2 + $0x18] sm:$0xf]  ;;  %v1801_v17 = vshll.u32 %v5279_v32, 16 }
 0x210   : > { %5872 = vpow2.f32 %v4990_v40  ;;  %v1559_v51 = vmul.f32 %v5859_v43, %v6676_v53  ;;  %v4988_v31 = vmul.f32 -1.442695, %v6842_v11  ;;  %v4991_v19 = vmul.f32 -1.442695, %v6845_v1  ;;  %v2053_v53 = vld [vmem:[#allocation2 + $0x60] sm:$0xf] }
 0x211   : > { %v3737_v52 = vsel %vm2710_vm6, %v3735_v9, %v3736_v5  ;;  %v6856_v37 = vrot.slane %v1798_v4, 7  ;;  %v2714_v47 = vrot.slane %v5065_v63, 1  ;;  %v1305_v10 = vmul.f32 %v6602_v23, %v1233_v58  ;;  %v6860_v24 = vld [vmem:[#allocation2 + $0x20] ss:$0 sps:$4 sm:$0x11]  }
 0x212   : > { %v5861_v35 = vpop.eup %5860  ;;  %3783 = vrot.lane.b32.xlu0 %v3737_v52, %s6073_s19  ;;  %v5277_v56 = vpack.c.bf16 %v1559_v51, %v1559_v51  ;;  %5874 = vpow2.f32 %v4988_v31  ;;  %v6863_v40 = vcombine.low %v2120_v48, %v2121_v16  ;;  %v2166_v4 = vld [vmem:[#allocation2 + $0x18] sm:$0xe] }
 0x213   : > { %v1562_v54 = vmul.f32 %v5861_v35, %v6681_v20  ;;  %v5863_v9 = vpop.eup %5862  ;;  %v1803_v0 = vor.u32 %v1801_v17, %v6856_v37  ;;  %v1804_v32 = vrot.slane %v6856_v37, 4  ;;  %5876 = vpow2.f32 %v4991_v19  ;;  %v2046_v35 = vld [vmem:[#allocation2 + $0x54] sm:$0xf] }
 0x214   : > { %v2716_v5 = vsel %vm2710_vm6, %v2714_v47, %v2715_v49  ;;  %v1781_v63 = vshrl.u32 %v5277_v56, 16  ;;  %v1784_v43 = vshll.u32 %v5277_v56, 16  ;;  %v1560_v58 = vmul.f32 %v5863_v9, %v6686_v28 }
 0x215   : > { %v5280_v23 = vpack.c.bf16 %v1562_v54, %v1562_v54  ;;  %2761 = vrot.lane.b32.xlu1 %v2716_v5, %s6069_s28  ;;  %v5865_v20 = vpop.eup %5864  ;;  %v2054_v51 = vsel %vm6716_vm11, %v1803_v0, %v2053_v53  ;;  %v6873_v31 = vadd.f32 %v6607_v2, %v1305_v10  ;;  %v5066_v52 = vcombine.low %v2166_v4, %v2121_v16  ;;  %v2057_v16 = vld [vmem:[#allocation2 + $0x68] sm:$0x1] }
 0x216   : > { %v2718_v19 = vrot.slane %v6860_v24, 1  ;;  %v5867_v48 = vpop.eup %5866  ;;  %2055 = vst [vmem:[#allocation2 + $0x60] sm:$0xf] %v2054_v51  ;;  %v1783_v49 = vrot.slane %v1781_v63, 7  ;;  %v5278_v28 = vpack.c.bf16 %v1560_v58, %v1560_v58  ;;  %v1469_v56 = vadd.f32 1.0, %v5865_v20 }
 0x217   : > { %v1806_v37 = vshrl.u32 %v5280_v23, 16  ;;  %v1809_v17 = vshll.u32 %v5280_v23, 16  ;;  %v5869_v47 = vpop.eup %5868  ;;  %v1467_v54 = vadd.f32 1.0, %v5867_v48  ;;  %v4989_v9 = vmul.f32 -1.442695, %v6873_v31 }
 0x218   : > { %v2717_v5 = vrot.slane %v5066_v52, 1  ;;  %v5871_v53 = vpop.eup %5870  ;;  %v1786_v0 = vor.u32 %v1784_v43, %v1783_v49  ;;  %v1787_v2 = vrot.slane %v1783_v49, 4  ;;  %v1789_v4 = vshrl.u32 %v5278_v28, 16  ;;  %v6879_v48 = vld [vmem:[#allocation2 + $0x14] ss:$0 sps:$4 sm:$0x11]  }
 0x219   : > { %v1808_v10 = vrot.slane %v1806_v37, 7  ;;  %v1792_v8 = vshll.u32 %v5278_v28, 16  ;;  %5878 = vrcp.f32 %v1469_v56  ;;  %v1470_v51 = vadd.f32 1.0, %v5869_v47  ;;  %v2050_v52 = vld [vmem:[#allocation2 + $0x5c] sm:$0x1] }
 0x21a   : > { %v1468_v63 = vadd.f32 1.0, %v5871_v53  ;;  %v2047_v23 = vsel %vm6716_vm11, %v1786_v0, %v2046_v35  ;;  %v1791_v20 = vrot.slane %v1789_v4, 7  ;;  %5880 = vrcp.f32 %v1467_v54 }
 0x21b   : > { %v1811_v58 = vor.u32 %v1809_v17, %v1808_v10  ;;  %v1813_v13 = vrot.slane %v1808_v10, 4  ;;  %2048 = vst [vmem:[#allocation2 + $0x54] sm:$0xf] %v2047_v23  ;;  %v2719_v43 = vsel %vm2710_vm6, %v2717_v5, %v2718_v19  ;;  %v2964_v49 = vshrl.u32 %v6802_v45, 16 }
 0x21c   : > { %v2968_v37 = vrot.slane %v2966_v57, 1  ;;  %v1794_v17 = vor.u32 %v1792_v8, %v1791_v20  ;;  %v1796_v56 = vrot.slane %v1791_v20, 4  ;;  %2763 = vrot.lane.b32.xlu0 %v2719_v43, %s6069_s28  ;;  %5882 = vrcp.f32 %v1470_v51  ;;  %v2231_v20 = vld [vmem:[#allocation2 + $0x30] sm:$0xe] }
 0x21d   : > { %v5873_v28 = vpop.eup %5872  ;;  %v1812_v47 = vsel %vm6726_vm12, %v1804_v32, %v1811_v58  ;;  %v2058_v35 = vsel %vm6732_vm13, %v1813_v13, %v2057_v16  ;;  %v2971_v45 = vshll.u32 %v6791_v30, 16  ;;  %5884 = vrcp.f32 %v1468_v63  ;;  %v2118_v13 = vld [vmem:[#allocation2 + $0xc] sm:$0xf] }
 0x21e   : > { %2056 = vst.msk [vmem:[#allocation2 + $0x64] sm:$0xf] %vm1006_vm3, %v1812_v47  ;;  %2059 = vst [vmem:[#allocation2 + $0x68] sm:$0x1] %v2058_v35  ;;  %v1473_v19 = vadd.f32 1.0, %v5873_v28  ;;  %v2969_v54 = vor.u32 %v2968_v37, %v2964_v49  ;;  %v1795_v57 = vsel %vm6726_vm12, %v1787_v2, %v1794_v17  ;;  %v2051_v32 = vsel %vm6732_vm13, %v1796_v56, %v2050_v52 }
 0x21f   : > { %v8325_v8 = vcombine.low %v6839_v27, %v6804_v18  ;;  %v5875_v53 = vpop.eup %5874  ;;  %2049 = vst.msk [vmem:[#allocation2 + $0x58] sm:$0xf] %vm1006_vm3, %v1795_v57  ;;  %2052 = vst [vmem:[#allocation2 + $0x5c] sm:$0x1] %v2051_v32  ;;  %v6901_v0 = vcombine.low %v2118_v13, %v6812_v36  ;;  %v2973_v30 = vrot.slane %v2971_v45, 1  ;;  %v3224_v2 = vrot.slane %v6879_v48, 1 }
 0x220   : > { %5886 = vrcp.f32 %v1473_v19  ;;  %v5877_v10 = vpop.eup %5876  ;;  %v1471_v16 = vadd.f32 1.0, %v5875_v53  ;;  %v2465_v4 = vshll.u32 %v6863_v40, 16  ;;  %v2470_v51 = vshll.u32 %v6860_v24, 16  ;;  %v2186_v18 = vld [vmem:[#allocation2 + $0x30] sm:$0xf] }
 0x221   : > { %v3223_v5 = vrot.slane %v8325_v8, 1  ;;  %5888 = vpow2.f32 %v4989_v9  ;;  %v2187_v27 = vld [vmem:[#allocation2 + $0x34] sm:$0xf]  ;;  %v1474_v63 = vadd.f32 1.0, %v5877_v10  ;;  %v2974_v23 = vsel %vm2437_vm7, %v2969_v54, %v2973_v30  ;;  %v2249_v47 = vld [vmem:[#allocation2 + $0x30] sm:$0xf] }
 0x222   : > { %v2463_v36 = vshrl.u32 %v6863_v40, 16  ;;  %v6909_v52 = vld [vmem:[#allocation2 + $0x34] sm:$0xf]  ;;  %5890 = vrcp.f32 %v1471_v16  ;;  %3145 = vrot.lane.b32.xlu1 %v2974_v23, %s6074_s20  ;;  %v2467_v9 = vrot.slane %v2465_v4, 1  ;;  %v3464_v24 = vshrl.u32 %v6789_v60, 16 }
 0x223   : > { %v3225_v58 = vsel %vm2710_vm6, %v3223_v5, %v3224_v2  ;;  %v8326_v43 = vshll.u32 %v6789_v60, 16  ;;  %5892 = vrcp.f32 %v1474_v63  ;;  %v3471_v37 = vshll.u32 %v6819_v44, 16  ;;  %v6919_v35 = vld [vmem:[#allocation2 + $0x28] sm:$0xf]  ;;  %v6921_v45 = vld [vmem:[#allocation2 + $0x30] sm:$0xe] }
 0x224   : > { %3271 = vrot.lane.b32.xlu0 %v3225_v58, %s6072_s18  ;;  %v6917_v28 = vcombine.low %v2186_v18, %v2187_v27  ;;  %v2468_v17 = vor.u32 %v2467_v9, %v2463_v36  ;;  %v2472_v56 = vrot.slane %v2470_v51, 1  ;;  %v5115_v54 = vcombine.low %v2231_v20, %v2187_v27  ;;  %v6923_v57 = vld [vmem:[#allocation2 + $0x38] ss:$0 sps:$4 sm:$0x11]   ;;  %v2247_v8 = vld [vmem:[#allocation2 + $0x24] sm:$0xf] }
 0x225   : > { %v3468_v49 = vrot.slane %v8326_v43, 1  ;;  %v2954_v32 = vshll.u32 %v6826_v61, 16  ;;  %v3473_v60 = vrot.slane %v3471_v37, 1  ;;  %v6927_v13 = vcombine.low %v2249_v47, %v6909_v52  ;;  %v6942_v27 = vld [vmem:[#allocation2 + $0x28] sm:$0xf] }
 0x226   : > { %v5162_v44 = vcombine.low %v6921_v45, %v6909_v52  ;;  %v5879_v5 = vpop.eup %5878  ;;  %v2473_v53 = vsel %vm2437_vm7, %v2468_v17, %v2472_v56  ;;  %v2990_v30 = vshll.u32 %v6917_v28, 16  ;;  %v6934_v2 = vcombine.low %v2247_v8, %v6919_v35  ;;  %v2168_v45 = vld [vmem:[#allocation2 + $0x30] sm:$0xe] }
 0x227   : > { %v3469_v19 = vor.u32 %v3468_v49, %v3464_v24  ;;  %v2453_v10 = vshll.u32 %v6901_v0, 16  ;;  %v1565_v16 = vmul.f32 %v5879_v5, %v6691_v41  ;;  %2634 = vrot.lane.b32.xlu1 %v2473_v53, %s6070_s29  ;;  %v2451_v51 = vshrl.u32 %v6901_v0, 16  ;;  %v5881_v63 = vpop.eup %5880  ;;  %v6948_v49 = vld [vmem:[#allocation2 + $0x24] sm:$0xe] }
 0x228   : > { %v2458_v18 = vshll.u32 %v6828_v39, 16  ;;  %v3232_v58 = vrot.slane %v5115_v54, 1  ;;  %v3233_v36 = vrot.slane %v6923_v57, 1  ;;  %v2952_v41 = vshrl.u32 %v6826_v61, 16 }
 0x229   : > { %v3474_v4 = vsel %vm2437_vm7, %v3469_v19, %v3473_v60  ;;  %v2455_v23 = vrot.slane %v2453_v10, 1  ;;  %v5283_v20 = vpack.c.bf16 %v1565_v16, %v1565_v16  ;;  %v1563_v9 = vmul.f32 %v5881_v63, %v6696_v55  ;;  %v5883_v39 = vpop.eup %5882  ;;  %v2067_v63 = vld [vmem:[#allocation2 + $0x78] sm:$0xf] }
 0x22a   : > { %3655 = vrot.lane.b32.xlu0 %v3474_v4, %s6075_s21  ;;  %v2460_v24 = vrot.slane %v2458_v18, 1  ;;  %v2956_v43 = vrot.slane %v2954_v32, 1  ;;  %v3234_v47 = vsel %vm2710_vm6, %v3232_v58, %v3233_v36  ;;  %v2959_v17 = vshll.u32 %v6879_v48, 16  ;;  %v5885_v19 = vpop.eup %5884 }
 0x22b   : > { %v2456_v37 = vor.u32 %v2455_v23, %v2451_v51  ;;  %v5067_v56 = vcombine.low %v6948_v49, %v6942_v27  ;;  %v1832_v54 = vshrl.u32 %v5283_v20, 16  ;;  %v1835_v60 = vshll.u32 %v5283_v20, 16  ;;  %2877 = vrot.lane.b32.xlu1 %v6917_v28, %s6071_s16 }
 0x22c   : > { %v5281_v61 = vpack.c.bf16 %v1563_v9, %v1563_v9  ;;  %v1566_v8 = vmul.f32 %v5883_v39, %v6709_v26  ;;  %v1564_v32 = vmul.f32 %v5885_v19, %v6712_v22  ;;  %v2957_v5 = vor.u32 %v2956_v43, %v2952_v41 }
 0x22d   : > { %v5887_v55 = vpop.eup %5886  ;;  %v2461_v48 = vsel %vm2437_vm7, %v2456_v37, %v2460_v24  ;;  %v2961_v53 = vrot.slane %v2959_v17, 1  ;;  %v1834_v16 = vrot.slane %v1832_v54, 7  ;;  %v2060_v24 = vld [vmem:[#allocation2 + $0x6c] sm:$0xf] }
 0x22e   : > { %3387 = vrot.lane.b32.xlu0 %v6927_v13, %s6068_s27  ;;  %v5889_v10 = vpop.eup %5888  ;;  %v1815_v4 = vshrl.u32 %v5281_v61, 16  ;;  %v1818_v51 = vshll.u32 %v5281_v61, 16  ;;  %v5284_v18 = vpack.c.bf16 %v1566_v8, %v1566_v8  ;;  %v5282_v26 = vpack.c.bf16 %v1564_v32, %v1564_v32  ;;  %v2071_v32 = vld [vmem:[#allocation2 + $0x80] sm:$0x1] }
 0x22f   : > { %v1569_v23 = vmul.f32 %v5887_v55, %v6823_v34  ;;  %v1472_v58 = vadd.f32 1.0, %v5889_v10  ;;  %v2962_v36 = vsel %vm2437_vm7, %v2957_v5, %v2961_v53  ;;  %v5891_v22 = vpop.eup %5890  ;;  %v1837_v20 = vor.u32 %v1835_v60, %v1834_v16  ;;  %3385 = vrot.lane.b32.xlu1 %v6934_v2, %s6068_s27  ;;  %v5444_v55 = vpop.f32.mrf.mxu1 }
 0x230   : > { %v1838_v9 = vrot.slane %v1834_v16, 4  ;;  %v1817_v39 = vrot.slane %v1815_v4, 7  ;;  %v1840_v19 = vshrl.u32 %v5284_v18, 16  ;;  %v5893_v41 = vpop.eup %5892  ;;  %v1843_v43 = vshll.u32 %v5284_v18, 16 }
 0x231   : > { %v1823_v37 = vshrl.u32 %v5282_v26, 16  ;;  %v1826_v17 = vshll.u32 %v5282_v26, 16  ;;  %v5287_v54 = vpack.c.bf16 %v1569_v23, %v1569_v23  ;;  %v2068_v34 = vsel %vm6716_vm11, %v1837_v20, %v2067_v63 }
 0x232   : > { %2632 = vrot.lane.b32.xlu0 %v2461_v48, %s6070_s29  ;;  %v1820_v61 = vor.u32 %v1818_v51, %v1817_v39  ;;  %v1821_v8 = vrot.slane %v1817_v39, 4  ;;  %v1842_v60 = vrot.slane %v1840_v19, 7  ;;  %2069 = vst [vmem:[#allocation2 + $0x78] sm:$0xf] %v2068_v34  ;;  %v1567_v16 = vmul.f32 %v5891_v22, %v6842_v11  ;;  %v2064_v48 = vld [vmem:[#allocation2 + $0x74] sm:$0x1] }
 0x233   : > { %v1825_v5 = vrot.slane %v1823_v37, 7  ;;  %v1866_v53 = vshrl.u32 %v5287_v54, 16  ;;  %v1869_v10 = vshll.u32 %v5287_v54, 16  ;;  %v1570_v23 = vmul.f32 %v5893_v41, %v6845_v1  ;;  %3277 = vrot.lane.b32.xlu1 %v3234_v47, %s6072_s18  ;;  %v6973_v51 = vld [vmem:[#allocation2 + $0x2c] ss:$0 sps:$4 sm:$0x11]   ;;  %v1246_v47 = vpop.f32.mrf.mxu1 }
 0x234   : > { %v2061_v4 = vsel %vm6716_vm11, %v1820_v61, %v2060_v24  ;;  %v1845_v18 = vor.u32 %v1843_v43, %v1842_v60  ;;  %v1847_v26 = vrot.slane %v1842_v60, 4  ;;  %v5285_v19 = vpack.c.bf16 %v1567_v16, %v1567_v16  ;;  %v2081_v24 = vld [vmem:[#allocation2 + $0x90] sm:$0xf]  ;;  %v6980_v1 = vld [vmem:[#allocation2 + $0x24] sm:$0xe] }
 0x235   : > { %2062 = vst [vmem:[#allocation2 + $0x6c] sm:$0xf] %v2061_v4  ;;  %v1828_v63 = vor.u32 %v1826_v17, %v1825_v5  ;;  %v1830_v20 = vrot.slane %v1825_v5, 4  ;;  %v1868_v39 = vrot.slane %v1866_v53, 7  ;;  %v5288_v43 = vpack.c.bf16 %v1570_v23, %v1570_v23  ;;  %v6989_v17 = vld [vmem:[#allocation2 + $0x28] sm:$0xf]  ;;  %v5445_v49 = vpop.f32.mrf.mxu1 }
 0x236   : > { %3143 = vrot.lane.b32.xlu0 %v2962_v36, %s6074_s20  ;;  %v1846_v11 = vsel %vm6726_vm12, %v1838_v9, %v1845_v18  ;;  %v2072_v22 = vsel %vm6732_vm13, %v1847_v26, %v2071_v32  ;;  %5894 = vrcp.f32 %v1472_v58  ;;  %v5161_v9 = vcombine.low %v6980_v1, %v6919_v35  ;;  %v2074_v32 = vld [vmem:[#allocation2 + $0x84] sm:$0xf]  ;;  %v2085_v18 = vld [vmem:[#allocation2 + $0x98] sm:$0x1] }
 0x237   : > { %2070 = vst.msk [vmem:[#allocation2 + $0x7c] sm:$0xf] %vm1006_vm3, %v1846_v11  ;;  %2073 = vst [vmem:[#allocation2 + $0x80] sm:$0x1] %v2072_v22  ;;  %v1829_v41 = vsel %vm6726_vm12, %v1821_v8, %v1828_v63  ;;  %v2065_v36 = vsel %vm6732_vm13, %v1830_v20, %v2064_v48  ;;  %v1871_v37 = vor.u32 %v1869_v10, %v1868_v39  ;;  %v1849_v58 = vshrl.u32 %v5285_v19, 16 }
 0x238   : > { %2063 = vst.msk [vmem:[#allocation2 + $0x70] sm:$0xf] %vm1006_vm3, %v1829_v41  ;;  %2066 = vst [vmem:[#allocation2 + $0x74] sm:$0x1] %v2065_v36  ;;  %v1852_v54 = vshll.u32 %v5285_v19, 16  ;;  %v1874_v34 = vshrl.u32 %v5288_v43, 16 }
 0x239   : > { %v1877_v61 = vshll.u32 %v5288_v43, 16  ;;  %v1872_v60 = vrot.slane %v1868_v39, 4  ;;  %v2082_v8 = vsel %vm6716_vm11, %v1871_v37, %v2081_v24  ;;  %v2720_v5 = vrot.slane %v5067_v56, 1  ;;  %v2184_v10 = vld [vmem:[#allocation2 + $0x24] sm:$0xf] }
 0x23a   : > { %v2721_v53 = vrot.slane %v6973_v51, 1  ;;  %2083 = vst [vmem:[#allocation2 + $0x90] sm:$0xf] %v2082_v8  ;;  %v6998_v16 = vrot.slane %v1849_v58, 7  ;;  %v1876_v4 = vrot.slane %v1874_v34, 7  ;;  %v7007_v63 = vcombine.low %v2184_v10, %v6989_v17 }
 0x23b   : > { %v2122_v26 = vld [vmem:[#allocation2 + $0x24] sm:$0xf]  ;;  %v7003_v48 = vld [vmem:[%s8277_s5] ss:$0 sm:$0xff]  ;;  %v3490_v56 = vshll.u32 %v6927_v13, 16  ;;  %v2988_v39 = vshrl.u32 %v6917_v28, 16 }
 0x23c   : > { %v1310_v23 = vmul.f32 %v7003_v48, %v5444_v55  ;;  %v2722_v20 = vsel %vm2710_vm6, %v2720_v5, %v2721_v53  ;;  %v2992_v19 = vrot.slane %v2990_v30, 1  ;;  %v1854_v11 = vor.u32 %v1852_v54, %v6998_v16  ;;  %2875 = vrot.lane.b32.xlu0 %v7007_v63, %s6071_s16  ;;  %v7019_v55 = vld [vmem:[#allocation2 + $0x38] ss:$0 sps:$4 sm:$0x11]   ;;  %v7027_v28 = vld [vmem:[%s8278_s6] ss:$0 sm:$0xff]  ;;  %v1249_v53 = vpop.f32.mrf.mxu1 }
 0x23d   : > { %v1879_v22 = vor.u32 %v1877_v61, %v1876_v4  ;;  %v1881_v24 = vrot.slane %v1876_v4, 4  ;;  %v3478_v43 = vshll.u32 %v6934_v2, 16  ;;  %2765 = vrot.lane.b32.xlu1 %v2722_v20, %s6069_s28  ;;  %v7022_v41 = vcombine.low %v2122_v26, %v6942_v27  ;;  %v7032_v36 = vld [vmem:[#allocation2 + $0x24] sm:$0xe]  ;;  %v2125_v54 = vld [vmem:[#allocation2 + $0x34] sm:$0xf] }
 0x23e   : > { %v7030_v30 = vadd.f32 %v7027_v28, %v1310_v23  ;;  %v2993_v37 = vor.u32 %v2992_v19, %v2988_v39  ;;  %v2995_v58 = vshll.u32 %v6923_v57, 16  ;;  %v2075_v34 = vsel %vm6716_vm11, %v1854_v11, %v2074_v32  ;;  %v5561_v5 = vld [vmem:[#allocation2 + $0x38] ss:$0 sps:$4 sm:$0x11]   ;;  %v2124_v32 = vld [vmem:[#allocation2 + $0x30] sm:$0xf] }
 0x23f   : > { %v1880_v27 = vsel %vm6726_vm12, %v1872_v60, %v1879_v22  ;;  %v2086_v61 = vsel %vm6732_vm13, %v1881_v24, %v2085_v18  ;;  %v1308_v8 = vmul.f32 %v7003_v48, %v1246_v47  ;;  %2076 = vst [vmem:[#allocation2 + $0x84] sm:$0xf] %v2075_v34  ;;  %v1311_v4 = vmul.f32 %v7003_v48, %v5445_v49  ;;  %v7065_v11 = vld [vmem:[#allocation2 + $0x4c] sm:$0xf]  ;;  %v7374_v42 = vld [vmem:[#allocation2 + $0x7c] sm:$0xf] }
 0x240   : > { %2084 = vst.msk [vmem:[#allocation2 + $0x94] sm:$0xf] %vm1006_vm3, %v1880_v27  ;;  %2087 = vst [vmem:[#allocation2 + $0x98] sm:$0x1] %v2086_v61  ;;  %v4994_v57 = vmul.f32 -1.442695, %v7030_v30  ;;  %v5114_v18 = vcombine.low %v7032_v36, %v6989_v17  ;;  %v7054_v23 = vcombine.low %v2124_v32, %v2125_v54  ;;  %v1309_v52 = vmul.f32 %v7003_v48, %v1249_v53 }
 0x241   : > { %v2997_v10 = vrot.slane %v2995_v58, 1  ;;  %v3741_v60 = vrot.slane %v5162_v44, 1  ;;  %v7051_v47 = vadd.f32 %v7027_v28, %v1308_v8  ;;  %v3742_v26 = vrot.slane %v7019_v55, 1  ;;  %v5564_v34 = vld [vmem:[#allocation2 + $0x2c] ss:$0 sps:$4 sm:$0x11]  }
 0x242   : > { %5896 = vpow2.f32 %v4994_v57  ;;  %v7058_v49 = vadd.f32 %v7027_v28, %v1311_v4  ;;  %v2489_v39 = vshll.u32 %v7054_v23, 16  ;;  %v2494_v19 = vshll.u32 %v5561_v5, 16  ;;  %v2190_v53 = vld [vmem:[#allocation2 + $0x48] sm:$0xf] }
 0x243   : > { %v2998_v20 = vsel %vm2437_vm7, %v2993_v37, %v2997_v10  ;;  %v4992_v44 = vmul.f32 -1.442695, %v7051_v47  ;;  %v3743_v17 = vsel %vm2710_vm6, %v3741_v60, %v3742_v26  ;;  %v5895_v22 = vpop.eup %5894  ;;  %v2487_v36 = vshrl.u32 %v7054_v23, 16 }
 0x244   : > { %3149 = vrot.lane.b32.xlu1 %v2998_v20, %s6074_s20  ;;  %v4995_v24 = vmul.f32 -1.442695, %v7058_v49  ;;  %3787 = vrot.lane.b32.xlu0 %v3743_v17, %s6073_s19  ;;  %v7071_v37 = vadd.f32 %v7027_v28, %v1309_v52  ;;  %v5068_v58 = vcombine.low %v2168_v45, %v2125_v54  ;;  %v1568_v27 = vmul.f32 %v5895_v22, %v6873_v31  ;;  %v7078_v20 = vld [vmem:[#allocation2 + $0x48] sm:$0xe] }
 0x245   : > { %5898 = vpow2.f32 %v4992_v44  ;;  %v2491_v61 = vrot.slane %v2489_v39, 1  ;;  %v2724_v8 = vrot.slane %v5561_v5, 1  ;;  %v7076_v4 = vcombine.low %v2190_v53, %v7065_v11  ;;  %v7085_v45 = vld [vmem:[#allocation2 + $0x2c] ss:$0 sps:$4 sm:$0x11]  }
 0x246   : > { %5900 = vpow2.f32 %v4995_v24  ;;  %v4993_v57 = vmul.f32 -1.442695, %v7071_v37  ;;  %v2723_v10 = vrot.slane %v5068_v58, 1  ;;  %v5286_v60 = vpack.c.bf16 %v1568_v27, %v1568_v27  ;;  %v2078_v24 = vld [vmem:[#allocation2 + $0x8c] sm:$0x1] }
 0x247   : > { %v2492_v32 = vor.u32 %v2491_v61, %v2487_v36  ;;  %v2496_v26 = vrot.slane %v2494_v19, 1  ;;  %v3738_v31 = vrot.slane %v5161_v9, 1  ;;  %v1855_v54 = vrot.slane %v6998_v16, 4 }
 0x248   : > { %5902 = vpow2.f32 %v4993_v57  ;;  %v2725_v5 = vsel %vm2710_vm6, %v2723_v10, %v2724_v8  ;;  %v3739_v52 = vrot.slane %v5564_v34, 1  ;;  %v1857_v44 = vshrl.u32 %v5286_v60, 16  ;;  %v7102_v57 = vld [vmem:[#allocation2 + $0x40] sm:$0xf] }
 0x249   : > { %v1860_v17 = vshll.u32 %v5286_v60, 16  ;;  %v2978_v39 = vshll.u32 %v7007_v63, 16  ;;  %v2497_v19 = vsel %vm2437_vm7, %v2492_v32, %v2496_v26  ;;  %2767 = vrot.lane.b32.xlu0 %v2725_v5, %s6069_s28  ;;  %v5117_v35 = vcombine.low %v7078_v20, %v7065_v11  ;;  %v7104_v10 = vld [vmem:[#allocation2 + $0x50] ss:$0 sps:$4 sm:$0x11]   ;;  %v7107_v26 = vpop.f32.mrf.mxu1 }
 0x24a   : > { %2638 = vrot.lane.b32.xlu1 %v2497_v19, %s6070_s29  ;;  %v3014_v1 = vshll.u32 %v7076_v4, 16  ;;  %v3480_v9 = vrot.slane %v3478_v43, 1  ;;  %v3483_v16 = vshll.u32 %v5564_v34, 16  ;;  %v1859_v22 = vrot.slane %v1857_v44, 7  ;;  %v7115_v5 = vld [vmem:[#allocation2 + $0x4c] sm:$0xf] }
 0x24b   : > { %v3740_v36 = vsel %vm2710_vm6, %v3738_v31, %v3739_v52  ;;  %v3476_v58 = vshrl.u32 %v6934_v2, 16  ;;  %v2477_v27 = vshll.u32 %v7022_v41, 16  ;;  %v3229_v61 = vrot.slane %v5114_v18, 1  ;;  %v2251_v2 = vld [vmem:[#allocation2 + $0x3c] sm:$0xf] }
 0x24c   : > { %v3230_v8 = vrot.slane %v7085_v45, 1  ;;  %v2475_v53 = vshrl.u32 %v7022_v41, 16  ;;  %v2482_v11 = vshll.u32 %v6973_v51, 16  ;;  %v1862_v43 = vor.u32 %v1860_v17, %v1859_v22 }
 0x24d   : > { %v1864_v34 = vrot.slane %v1859_v22, 4  ;;  %3785 = vrot.lane.b32.xlu0 %v3740_v36, %s6073_s19  ;;  %v3481_v60 = vor.u32 %v3480_v9, %v3476_v58  ;;  %v2479_v32 = vrot.slane %v2477_v27, 1  ;;  %v3485_v18 = vrot.slane %v3483_v16, 1  ;;  %v7121_v9 = vld [vmem:[#allocation2 + $0x3c] sm:$0xe] }
 0x24e   : > { %2881 = vrot.lane.b32.xlu1 %v7076_v4, %s6071_s16  ;;  %v3488_v20 = vshrl.u32 %v6927_v13, 16  ;;  %v3492_v51 = vrot.slane %v3490_v56, 1  ;;  %v3495_v31 = vshll.u32 %v7019_v55, 16  ;;  %v1863_v44 = vsel %vm6726_vm12, %v1855_v54, %v1862_v43  ;;  %v2253_v36 = vld [vmem:[#allocation2 + $0x48] sm:$0xf] }
 0x24f   : > { %v5897_v52 = vpop.eup %5896  ;;  %v2079_v17 = vsel %vm6732_vm13, %v1864_v34, %v2078_v24  ;;  %v2480_v19 = vor.u32 %v2479_v32, %v2475_v53  ;;  %v7124_v16 = vcombine.low %v2251_v2, %v7102_v57  ;;  %2077 = vst.msk [vmem:[#allocation2 + $0x88] sm:$0xf] %vm1006_vm3, %v1863_v44  ;;  %v3231_v56 = vsel %vm2710_vm6, %v3229_v61, %v3230_v8  ;;  %v2127_v53 = vld [vmem:[#allocation2 + $0x40] sm:$0xf]  ;;  %v1262_v34 = vpop.f32.mrf.mxu1  ;;  %v2297_v8 = vld [vmem:[#allocation2 + $0x48] sm:$0xe] }
 0x250   : > { %2080 = vst [vmem:[#allocation2 + $0x8c] sm:$0x1] %v2079_v17  ;;  %v1477_v13 = vadd.f32 1.0, %v5897_v52  ;;  %v2484_v55 = vrot.slane %v2482_v11, 1  ;;  %v3493_v22 = vor.u32 %v3492_v51, %v3488_v20  ;;  %v3486_v54 = vsel %vm2437_vm7, %v3481_v60, %v3485_v18  ;;  %v2169_v52 = vld [vmem:[#allocation2 + $0x3c] sm:$0xe] }
 0x251   : > { %3275 = vrot.lane.b32.xlu0 %v3231_v56, %s6072_s18  ;;  %v3497_v24 = vrot.slane %v3495_v31, 1  ;;  %v7133_v27 = vcombine.low %v2253_v36, %v7115_v5  ;;  %v7135_v43 = vld [vmem:[#allocation2 + $0x44] ss:$0 sps:$4 sm:$0x11]   ;;  %v3238_v11 = vrot.slane %v5117_v35, 1  ;;  %v3239_v60 = vrot.slane %v7104_v10, 1 }
 0x252   : > { %v5899_v32 = vpop.eup %5898  ;;  %5904 = vrcp.f32 %v1477_v13  ;;  %3657 = vrot.lane.b32.xlu1 %v3486_v54, %s6075_s21  ;;  %v2485_v61 = vsel %vm2437_vm7, %v2480_v19, %v2484_v55  ;;  %v2980_v31 = vrot.slane %v2978_v39, 1  ;;  %v2976_v17 = vshrl.u32 %v7007_v63, 16  ;;  %v2126_v19 = vld [vmem:[#allocation2 + $0x3c] sm:$0xf]  ;;  %v7150_v54 = vld [vmem:[#allocation2 + $0x40] sm:$0xf]  ;;  %v5449_v39 = vpop.f32.mrf.mxu1 }
 0x253   : > { %v5901_v2 = vpop.eup %5900  ;;  %v1475_v18 = vadd.f32 1.0, %v5899_v32  ;;  %v3498_v20 = vsel %vm2437_vm7, %v3493_v22, %v3497_v24  ;;  %v2983_v13 = vshll.u32 %v7085_v45, 16  ;;  %v5069_v56 = vcombine.low %v2169_v52, %v2127_v53  ;;  %v7152_v24 = vld [vmem:[#allocation2 + $0x50] ss:$0 sps:$4 sm:$0x11]  }
 0x254   : > { %v1478_v44 = vadd.f32 1.0, %v5901_v2  ;;  %v5164_v55 = vcombine.low %v2297_v8, %v7115_v5  ;;  %v3240_v36 = vsel %vm2710_vm6, %v3238_v11, %v3239_v60  ;;  %v2981_v45 = vor.u32 %v2980_v31, %v2976_v17  ;;  %v2188_v2 = vld [vmem:[#allocation2 + $0x3c] sm:$0xf]  ;;  %v2128_v52 = vld [vmem:[#allocation2 + $0x48] sm:$0xf] }
 0x255   : > { %v5903_v35 = vpop.eup %5902  ;;  %5906 = vrcp.f32 %v1475_v18  ;;  %3659 = vrot.lane.b32.xlu0 %v3498_v20, %s6075_s21  ;;  %v2727_v32 = vrot.slane %v7135_v43, 1  ;;  %v2985_v18 = vrot.slane %v2983_v13, 1  ;;  %v2726_v20 = vrot.slane %v5069_v56, 1  ;;  %v7160_v11 = vld [vmem:[#allocation2 + $0x3c] sm:$0xe]  ;;  %v1265_v56 = vpop.f32.mrf.mxu1 }
 0x256   : > { %5908 = vrcp.f32 %v1478_v44  ;;  %v1476_v63 = vadd.f32 1.0, %v5903_v35  ;;  %2636 = vrot.lane.b32.xlu1 %v2485_v61, %s6070_s29  ;;  %v7156_v5 = vcombine.low %v2126_v19, %v2127_v53  ;;  %v1314_v8 = vmul.f32 %v7003_v48, %v7107_v26  ;;  %v2129_v44 = vld [vmem:[#allocation2 + $0x4c] sm:$0xf]  ;;  %v5578_v19 = vld [vmem:[#allocation2 + $0x50] ss:$0 sps:$4 sm:$0x11]  }
 0x257   : > { %v7163_v60 = vcombine.low %v2188_v2, %v7150_v54  ;;  %v3016_v31 = vrot.slane %v3014_v1, 1  ;;  %v3012_v26 = vshrl.u32 %v7076_v4, 16  ;;  %v3019_v17 = vshll.u32 %v7104_v10, 16  ;;  %v7185_v4 = vld [vmem:[%s8279_s7 + $0x10] ss:$0 sps:$4 sm:$0x33]  }
 0x258   : > { %5910 = vrcp.f32 %v1476_v63  ;;  %v7172_v53 = vadd.f32 %v7027_v28, %v1314_v8  ;;  %v1312_v13 = vmul.f32 %v7003_v48, %v1262_v34  ;;  %v2986_v1 = vsel %vm2437_vm7, %v2981_v45, %v2985_v18  ;;  %v2170_v61 = vld [vmem:[#allocation2 + $0x48] sm:$0xe]  ;;  %5493 = vmatprep.subr.msk.bf16.mxu0 %vm1112_vm2, %v7185_v4  ;;  %v5581_v51 = vld [vmem:[#allocation2 + $0x44] ss:$0 sps:$4 sm:$0x11]  }
 0x259   : > { %3391 = vrot.lane.b32.xlu0 %v7133_v27, %s6068_s27  ;;  %v1315_v35 = vmul.f32 %v7003_v48, %v5449_v39  ;;  %v3747_v63 = vrot.slane %v5164_v55, 1  ;;  %v3748_v2 = vrot.slane %v7152_v24, 1  ;;  %v2728_v10 = vsel %vm2710_vm6, %v2726_v20, %v2727_v32 }
 0x25a   : > { %3389 = vrot.lane.b32.xlu1 %v7124_v16, %s6068_s27  ;;  %v4998_v34 = vmul.f32 -1.442695, %v7172_v53  ;;  %v7190_v8 = vadd.f32 %v7027_v28, %v1312_v13  ;;  %v7192_v22 = vcombine.low %v2128_v52, %v2129_v44  ;;  %v3017_v39 = vor.u32 %v3016_v31, %v3012_v26 }
 0x25b   : > { %v7196_v55 = vadd.f32 %v7027_v28, %v1315_v35  ;;  %v1313_v18 = vmul.f32 %v7003_v48, %v1265_v56  ;;  %v3021_v32 = vrot.slane %v3019_v17, 1  ;;  %v2518_v52 = vshll.u32 %v5578_v19, 16  ;;  %v2194_v56 = vld [vmem:[#allocation2 + $0x60] sm:$0xf]  ;;  %v7210_v35 = vld [vmem:[#allocation2 + $0x64] sm:$0xf] }
 0x25c   : > { %5912 = vpow2.f32 %v4998_v34  ;;  %v4996_v20 = vmul.f32 -1.442695, %v7190_v8  ;;  %v3749_v26 = vsel %vm2710_vm6, %v3747_v63, %v3748_v2  ;;  %v2513_v13 = vshll.u32 %v7192_v22, 16 }
 0x25d   : > { %3147 = vrot.lane.b32.xlu0 %v2986_v1, %s6074_s20  ;;  %v4999_v31 = vmul.f32 -1.442695, %v7196_v55  ;;  %v7208_v48 = vadd.f32 %v7027_v28, %v1313_v18  ;;  %v2511_v17 = vshrl.u32 %v7192_v22, 16  ;;  %v5070_v34 = vcombine.low %v2170_v61, %v2129_v44 }
 0x25e   : > { %3281 = vrot.lane.b32.xlu1 %v3240_v36, %s6072_s18  ;;  %5914 = vpow2.f32 %v4996_v20  ;;  %v2730_v45 = vrot.slane %v5578_v19, 1  ;;  %v2515_v58 = vrot.slane %v2513_v13, 1  ;;  %v3022_v28 = vsel %vm2437_vm7, %v3017_v39, %v3021_v32 }
 0x25f   : > { %v5905_v1 = vpop.eup %5904  ;;  %5916 = vpow2.f32 %v4999_v31  ;;  %v4997_v63 = vmul.f32 -1.442695, %v7208_v48  ;;  %v2520_v2 = vrot.slane %v2518_v52, 1  ;;  %v2729_v18 = vrot.slane %v5070_v34, 1 }
 0x260   : > { %v1573_v36 = vmul.f32 %v5905_v1, %v7030_v30  ;;  %v7219_v20 = vcombine.low %v2194_v56, %v7210_v35  ;;  %v2516_v44 = vor.u32 %v2515_v58, %v2511_v17  ;;  %v8327_v30 = vcombine.low %v7121_v9, %v7102_v57  ;;  %v7229_v56 = vld [vmem:[#allocation2 + $0x44] ss:$0 sps:$4 sm:$0x11]  }
 0x261   : > { %2879 = vrot.lane.b32.xlu0 %v7163_v60, %s6071_s16  ;;  %5918 = vpow2.f32 %v4997_v63  ;;  %v3745_v1 = vrot.slane %v5581_v51, 1  ;;  %v3500_v39 = vshrl.u32 %v7124_v16, 16  ;;  %v8328_v32 = vshll.u32 %v7124_v16, 16 }
 0x262   : > { %v5907_v33 = vpop.eup %5906  ;;  %v5291_v61 = vpack.c.bf16 %v1573_v36, %v1573_v36  ;;  %2769 = vrot.lane.b32.xlu1 %v2728_v10, %s6069_s28  ;;  %v3744_v19 = vrot.slane %v8327_v30, 1  ;;  %v2731_v10 = vsel %vm2710_vm6, %v2729_v18, %v2730_v45  ;;  %v3507_v9 = vshll.u32 %v5581_v51, 16  ;;  %v2095_v30 = vld [vmem:[#allocation2 + $0xa8] sm:$0xf] }
 0x263   : > { %v5909_v31 = vpop.eup %5908  ;;  %v1571_v13 = vmul.f32 %v5907_v33, %v7051_v47  ;;  %v3504_v52 = vrot.slane %v8328_v32, 1  ;;  %v2521_v33 = vsel %vm2437_vm7, %v2516_v44, %v2520_v2 }
 0x264   : > { %v1900_v34 = vshrl.u32 %v5291_v61, 16  ;;  %v1903_v36 = vshll.u32 %v5291_v61, 16  ;;  %v1574_v58 = vmul.f32 %v5909_v31, %v7058_v49  ;;  %v8329_v49 = vcombine.low %v7160_v11, %v7150_v54  ;;  %v2088_v11 = vld [vmem:[#allocation2 + $0x9c] sm:$0xf] }
 0x265   : > { %v5911_v17 = vpop.eup %5910  ;;  %v5289_v57 = vpack.c.bf16 %v1571_v13, %v1571_v13  ;;  %3791 = vrot.lane.b32.xlu0 %v3749_v26, %s6073_s19  ;;  %v3505_v47 = vor.u32 %v3504_v52, %v3500_v39  ;;  %v3509_v31 = vrot.slane %v3507_v9, 1  ;;  %v3236_v26 = vrot.slane %v7229_v56, 1 }
 0x266   : > { %v1902_v63 = vrot.slane %v1900_v34, 7  ;;  %v5292_v16 = vpack.c.bf16 %v1574_v58, %v1574_v58  ;;  %v1572_v32 = vmul.f32 %v5911_v17, %v7071_v37  ;;  %3153 = vrot.lane.b32.xlu1 %v3022_v28, %s6074_s20  ;;  %v3235_v61 = vrot.slane %v8329_v49, 1 }
 0x267   : > { %v1883_v45 = vshrl.u32 %v5289_v57, 16  ;;  %v1886_v18 = vshll.u32 %v5289_v57, 16  ;;  %v3746_v51 = vsel %vm2710_vm6, %v3744_v19, %v3745_v1  ;;  %v3510_v37 = vsel %vm2437_vm7, %v3505_v47, %v3509_v31  ;;  %v2099_v1 = vld [vmem:[#allocation2 + $0xb0] sm:$0x1] }
 0x268   : > { %v1905_v13 = vor.u32 %v1903_v36, %v1902_v63  ;;  %v1908_v2 = vshrl.u32 %v5292_v16, 16  ;;  %v1911_v44 = vshll.u32 %v5292_v16, 16  ;;  %v1906_v39 = vrot.slane %v1902_v63, 4 }
 0x269   : > { %v1885_v52 = vrot.slane %v1883_v45, 7  ;;  %v5290_v34 = vpack.c.bf16 %v1572_v32, %v1572_v32  ;;  %2771 = vrot.lane.b32.xlu0 %v2731_v10, %s6069_s28  ;;  %v5913_v28 = vpop.eup %5912  ;;  %v3237_v36 = vsel %vm2710_vm6, %v3235_v61, %v3236_v26  ;;  %v2501_v17 = vshll.u32 %v7156_v5, 16 }
 0x26a   : > { %v2096_v54 = vsel %vm6716_vm11, %v1905_v13, %v2095_v30  ;;  %v1910_v58 = vrot.slane %v1908_v2, 7  ;;  %2642 = vrot.lane.b32.xlu1 %v2521_v33, %s6070_s29  ;;  %v2499_v10 = vshrl.u32 %v7156_v5, 16  ;;  %v1481_v32 = vadd.f32 1.0, %v5913_v28  ;;  %v2092_v13 = vld [vmem:[#allocation2 + $0xa4] sm:$0x1] }
 0x26b   : > { %2097 = vst [vmem:[#allocation2 + $0xa8] sm:$0xf] %v2096_v54  ;;  %v1888_v19 = vor.u32 %v1886_v18, %v1885_v52  ;;  %v1891_v57 = vshrl.u32 %v5290_v34, 16  ;;  %v1894_v9 = vshll.u32 %v5290_v34, 16  ;;  %v5915_v47 = vpop.eup %5914  ;;  %v2503_v30 = vrot.slane %v2501_v17, 1 }
 0x26c   : > { %v1913_v63 = vor.u32 %v1911_v44, %v1910_v58  ;;  %v1915_v16 = vrot.slane %v1910_v58, 4  ;;  %v5917_v49 = vpop.eup %5916  ;;  %v1889_v45 = vrot.slane %v1885_v52, 4  ;;  %v1479_v31 = vadd.f32 1.0, %v5915_v47  ;;  %v2235_v17 = vld [vmem:[#allocation2 + $0x60] sm:$0xe] }
 0x26d   : > { %v2089_v33 = vsel %vm6716_vm11, %v1888_v19, %v2088_v11  ;;  %v1893_v61 = vrot.slane %v1891_v57, 7  ;;  %3789 = vrot.lane.b32.xlu0 %v3746_v51, %s6073_s19  ;;  %5920 = vrcp.f32 %v1481_v32  ;;  %v1482_v2 = vadd.f32 1.0, %v5917_v49  ;;  %v2258_v32 = vld [vmem:[#allocation2 + $0x64] sm:$0xf] }
 0x26e   : > { %2090 = vst [vmem:[#allocation2 + $0x9c] sm:$0xf] %v2089_v33  ;;  %v1914_v18 = vsel %vm6726_vm12, %v1906_v39, %v1913_v63  ;;  %v2100_v26 = vsel %vm6732_vm13, %v1915_v16, %v2099_v1  ;;  %2885 = vrot.lane.b32.xlu1 %v7219_v20, %s6071_s16  ;;  %v5919_v44 = vpop.eup %5918  ;;  %5922 = vrcp.f32 %v1479_v31  ;;  %v2506_v51 = vshll.u32 %v7135_v43, 16  ;;  %v2131_v16 = vld [vmem:[#allocation2 + $0x58] sm:$0xf] }
 0x26f   : > { %2098 = vst.msk [vmem:[#allocation2 + $0xac] sm:$0xf] %vm1006_vm3, %v1914_v18  ;;  %2101 = vst [vmem:[#allocation2 + $0xb0] sm:$0x1] %v2100_v26  ;;  %v1896_v52 = vor.u32 %v1894_v9, %v1893_v61  ;;  %v1898_v34 = vrot.slane %v1893_v61, 4  ;;  %5924 = vrcp.f32 %v1482_v2  ;;  %v1480_v39 = vadd.f32 1.0, %v5919_v44 }
 0x270   : > { %v2504_v28 = vor.u32 %v2503_v30, %v2499_v10  ;;  %v3512_v54 = vshrl.u32 %v7133_v27, 16  ;;  %v8330_v19 = vshll.u32 %v7133_v27, 16  ;;  %v3519_v57 = vshll.u32 %v7152_v24, 16  ;;  %v7273_v9 = vld [vmem:[#allocation2 + $0x58] sm:$0xf] }
 0x271   : > { %v1897_v11 = vsel %vm6726_vm12, %v1889_v45, %v1896_v52  ;;  %v2093_v58 = vsel %vm6732_vm13, %v1898_v34, %v2092_v13  ;;  %3279 = vrot.lane.b32.xlu0 %v3237_v36, %s6072_s18  ;;  %5926 = vrcp.f32 %v1480_v39  ;;  %v5119_v43 = vcombine.low %v2235_v17, %v7210_v35  ;;  %v7275_v10 = vld [vmem:[#allocation2 + $0x68] ss:$0 sps:$4 sm:$0x11]   ;;  %v2255_v27 = vld [vmem:[#allocation2 + $0x54] sm:$0xf] }
 0x272   : > { %v3516_v1 = vrot.slane %v8330_v19, 1  ;;  %2091 = vst.msk [vmem:[#allocation2 + $0xa0] sm:$0xf] %vm1006_vm3, %v1897_v11  ;;  %2094 = vst [vmem:[#allocation2 + $0xa4] sm:$0x1] %v2093_v58  ;;  %3661 = vrot.lane.b32.xlu1 %v3510_v37, %s6075_s21  ;;  %v2508_v47 = vrot.slane %v2506_v51, 1  ;;  %v7282_v35 = vcombine.low %v2255_v27, %v7273_v9  ;;  %v7304_v19 = vpop.permute.xlu1 %3413 }
 0x273   : > { %v3521_v36 = vrot.slane %v3519_v57, 1  ;;  %v2299_v30 = vld [vmem:[#allocation2 + $0x60] sm:$0xe]  ;;  %v7279_v45 = vld [vmem:[#allocation2 + $0x54] sm:$0xe]  ;;  %v8331_v33 = vshll.u32 %v7163_v60, 16 }
 0x274   : > { %v3517_v63 = vor.u32 %v3516_v1, %v3512_v54  ;;  %v2509_v24 = vsel %vm2437_vm7, %v2504_v28, %v2508_v47  ;;  %v2257_v37 = vld [vmem:[#allocation2 + $0x60] sm:$0xf]  ;;  %v2171_v31 = vld [vmem:[#allocation2 + $0x54] sm:$0xe]  ;;  %v3038_v26 = vshll.u32 %v7219_v20, 16  ;;  %v3244_v13 = vrot.slane %v5119_v43, 1  ;;  %v7306_v1 = vpop.permute.xlu0 %2630 }
 0x275   : > { %v3004_v61 = vrot.slane %v8331_v33, 1  ;;  %v7286_v18 = vld [vmem:[#allocation2 + $0x5c] ss:$0 sps:$4 sm:$0x11]   ;;  %v3245_v2 = vrot.slane %v7275_v10, 1  ;;  %v5071_v44 = vcombine.low %v2171_v31, %v2131_v16  ;;  %v5166_v34 = vcombine.low %v2299_v30, %v2258_v32 }
 0x276   : > { %v3522_v49 = vsel %vm2437_vm7, %v3517_v63, %v3521_v36  ;;  %2640 = vrot.lane.b32.xlu1 %v2509_v24, %s6070_s29  ;;  %v7292_v52 = vld [vmem:[#allocation2 + $0x68] ss:$0 sps:$4 sm:$0x11]   ;;  %v3000_v51 = vshrl.u32 %v7163_v60, 16  ;;  %v3007_v39 = vshll.u32 %v7229_v56, 16  ;;  %v7300_v11 = vcombine.low %v2257_v37, %v2258_v32 }
 0x277   : > { %3663 = vrot.lane.b32.xlu0 %v3522_v49, %s6075_s21  ;;  %v7296_v28 = vld [vmem:[#allocation2 + $0x64] sm:$0xf]  ;;  %v2130_v58 = vld [vmem:[#allocation2 + $0x54] sm:$0xf]  ;;  %v7302_v17 = vld [vmem:[#allocation2 + $0x58] sm:$0xf]  ;;  %v3246_v27 = vsel %vm2710_vm6, %v3244_v13, %v3245_v2 }
 0x278   : > { %v3005_v43 = vor.u32 %v3004_v61, %v3000_v51  ;;  %v2732_v60 = vrot.slane %v5071_v44, 1  ;;  %v2733_v56 = vrot.slane %v7286_v18, 1  ;;  %v2192_v47 = vld [vmem:[#allocation2 + $0x54] sm:$0xf]  ;;  %v2132_v36 = vld [vmem:[#allocation2 + $0x60] sm:$0xf]  ;;  %v7323_v61 = vcombine.low %v2130_v58, %v2131_v16 }
 0x279   : > { %v7310_v63 = vld [vmem:[#allocation2 + $0x54] sm:$0xe]  ;;  %v3040_v32 = vrot.slane %v3038_v26, 1  ;;  %v3043_v30 = vshll.u32 %v7275_v10, 16  ;;  %v7319_v24 = vcombine.low %v2132_v36, %v7296_v28  ;;  %v3009_v33 = vrot.slane %v3007_v39, 1 }
 0x27a   : > { %3393 = vrot.lane.b32.xlu1 %v7282_v35, %s6068_s27  ;;  %v7321_v49 = vld [vmem:[#allocation2 + $0x68] ss:$0 sps:$4 sm:$0x11]   ;;  %v5921_v37 = vpop.eup %5920  ;;  %v3753_v31 = vrot.slane %v5166_v34, 1  ;;  %v3754_v44 = vrot.slane %v7292_v52, 1  ;;  %v7328_v13 = vcombine.low %v2192_v47, %v7302_v17  ;;  %v3036_v26 = vshrl.u32 %v7219_v20, 16  ;;  %v7340_v20 = vpop.permute.xlu1 %2759 }
 0x27b   : > { %3395 = vrot.lane.b32.xlu0 %v7300_v11, %s6068_s27  ;;  %v5923_v51 = vpop.eup %5922  ;;  %v1577_v57 = vmul.f32 %v5921_v37, %v7172_v53  ;;  %v3010_v16 = vsel %vm2437_vm7, %v3005_v43, %v3009_v33  ;;  %v2734_v34 = vsel %vm2710_vm6, %v2732_v60, %v2733_v56  ;;  %v2537_v39 = vshll.u32 %v7319_v24, 16  ;;  %v2172_v10 = vld [vmem:[#allocation2 + $0x60] sm:$0xe]  ;;  %v7342_v54 = vpop.permute.xlu0 %3383 }
 0x27c   : > { %v5925_v2 = vpop.eup %5924  ;;  %v1575_v36 = vmul.f32 %v5923_v51, %v7190_v8  ;;  %v3041_v47 = vor.u32 %v3040_v32, %v3036_v26  ;;  %v3045_v37 = vrot.slane %v3043_v30, 1  ;;  %v3755_v60 = vsel %vm2710_vm6, %v3753_v31, %v3754_v44  ;;  %v2109_v32 = vld [vmem:[#allocation2 + $0xc0] sm:$0xf] }
 0x27d   : > { %v5295_v58 = vpack.c.bf16 %v1577_v57, %v1577_v57  ;;  %v1578_v53 = vmul.f32 %v5925_v2, %v7196_v55  ;;  %v2542_v56 = vshll.u32 %v7321_v49, 16  ;;  %v5072_v57 = vcombine.low %v2172_v10, %v7296_v28  ;;  %v7352_v28 = vld [vmem:[#allocation2 + $0x5c] ss:$0 sps:$4 sm:$0x11]  }
 0x27e   : > { %3285 = vrot.lane.b32.xlu1 %v3246_v27, %s6072_s18  ;;  %v5927_v8 = vpop.eup %5926  ;;  %v5293_v43 = vpack.c.bf16 %v1575_v36, %v1575_v36  ;;  %v2539_v2 = vrot.slane %v2537_v39, 1  ;;  %v2535_v44 = vshrl.u32 %v7319_v24, 16  ;;  %v3524_v38 = vshrl.u32 %v7282_v35, 16 }
 0x27f   : > { %3151 = vrot.lane.b32.xlu0 %v3010_v16, %s6074_s20  ;;  %v1934_v55 = vshrl.u32 %v5295_v58, 16  ;;  %v1937_v33 = vshll.u32 %v5295_v58, 16  ;;  %v5296_v27 = vpack.c.bf16 %v1578_v53, %v1578_v53  ;;  %v1576_v51 = vmul.f32 %v5927_v8, %v7208_v48 }
 0x280   : > { %v1917_v30 = vshrl.u32 %v5293_v43, 16  ;;  %v1920_v26 = vshll.u32 %v5293_v43, 16  ;;  %v2736_v16 = vrot.slane %v7321_v49, 1  ;;  %v3046_v48 = vsel %vm2437_vm7, %v3041_v47, %v3045_v37  ;;  %v2102_v49 = vld [vmem:[#allocation2 + $0xb4] sm:$0xf]  ;;  %v7356_v43 = vpop.permute.xlu1 %2873 }
 0x281   : > { %v1936_v62 = vrot.slane %v1934_v55, 7  ;;  %v1942_v59 = vshrl.u32 %v5296_v27, 16  ;;  %v1945_v36 = vshll.u32 %v5296_v27, 16  ;;  %v5294_v15 = vpack.c.bf16 %v1576_v51, %v1576_v51  ;;  %v7358_v55 = vpop.permute.xlu0 %2871  ;;  %v2113_v51 = vld [vmem:[#allocation2 + $0xc8] sm:$0x1] }
 0x282   : > { %2773 = vrot.lane.b32.xlu1 %v2734_v34, %s6069_s28  ;;  %v1919_v31 = vrot.slane %v1917_v30, 7  ;;  %v2735_v10 = vrot.slane %v5072_v57, 1  ;;  %v2540_v46 = vor.u32 %v2539_v2, %v2535_v44  ;;  %v3751_v2 = vrot.slane %v7352_v28, 1 }
 0x283   : > { %2883 = vrot.lane.b32.xlu0 %v7328_v13, %s6071_s16  ;;  %v1939_v39 = vor.u32 %v1937_v33, %v1936_v62  ;;  %v1940_v58 = vrot.slane %v1936_v62, 4  ;;  %v1944_v53 = vrot.slane %v1942_v59, 7  ;;  %v1925_v8 = vshrl.u32 %v5294_v15, 16  ;;  %v2106_v59 = vld [vmem:[#allocation2 + $0xbc] sm:$0x1] }
 0x284   : > { %v1922_v34 = vor.u32 %v1920_v26, %v1919_v31  ;;  %v1923_v27 = vrot.slane %v1919_v31, 4  ;;  %v1928_v7 = vshll.u32 %v5294_v15, 16  ;;  %v2544_v33 = vrot.slane %v2542_v56, 1 }
 0x285   : > { %v2110_v47 = vsel %vm6716_vm11, %v1939_v39, %v2109_v32  ;;  %v1947_v37 = vor.u32 %v1945_v36, %v1944_v53  ;;  %v1949_v30 = vrot.slane %v1944_v53, 4  ;;  %v1927_v57 = vrot.slane %v1925_v8, 7 }
 0x286   : > { %3157 = vrot.lane.b32.xlu1 %v3046_v48, %s6074_s20  ;;  %2111 = vst [vmem:[#allocation2 + $0xc0] sm:$0xf] %v2110_v47  ;;  %v2103_v62 = vsel %vm6716_vm11, %v1922_v34, %v2102_v49  ;;  %v8332_v15 = vcombine.low %v7279_v45, %v7273_v9  ;;  %v2198_v48 = vld [vmem:[#allocation2 + $0x78] sm:$0xf]  ;;  %v3538_v9 = vshll.u32 %v7300_v11, 16  ;;  %v2545_v45 = vsel %vm2437_vm7, %v2540_v46, %v2544_v33 }
 0x287   : > { %3795 = vrot.lane.b32.xlu0 %v3755_v60, %s6073_s19  ;;  %2104 = vst [vmem:[#allocation2 + $0xb4] sm:$0xf] %v2103_v62  ;;  %v1948_v32 = vsel %vm6726_vm12, %v1940_v58, %v1947_v37  ;;  %v2114_v36 = vsel %vm6732_vm13, %v1949_v30, %v2113_v51  ;;  %v1930_v60 = vor.u32 %v1928_v7, %v1927_v57  ;;  %v1932_v31 = vrot.slane %v1927_v57, 4  ;;  %v7382_v58 = vld [vmem:[#allocation2 + $0x5c] ss:$0 sps:$4 sm:$0x11]  }
 0x288   : > { %v3750_v26 = vrot.slane %v8332_v15, 1  ;;  %2112 = vst.msk [vmem:[#allocation2 + $0xc4] sm:$0xf] %vm1006_vm3, %v1948_v32  ;;  %2115 = vst [vmem:[#allocation2 + $0xc8] sm:$0x1] %v2114_v36  ;;  %v2737_v56 = vsel %vm2710_vm6, %v2735_v10, %v2736_v16  ;;  %v8333_v44 = vshll.u32 %v7282_v35, 16  ;;  %v7392_v16 = vpop.permute.xlu1 %3273  ;;  %v7394_v10 = vpop.permute.xlu0 %3783  ;;  %v7399_v6 = vcombine.low %v2198_v48, %v7374_v42 }
 0x289   : > { %v1931_v7 = vsel %vm6726_vm12, %v1923_v27, %v1930_v60  ;;  %v2107_v49 = vsel %vm6732_vm13, %v1932_v31, %v2106_v59  ;;  %v3531_v53 = vshll.u32 %v7352_v28, 16  ;;  %v2525_v46 = vshll.u32 %v7323_v61, 16  ;;  %v2237_v15 = vld [vmem:[#allocation2 + $0x78] sm:$0xe]  ;;  %v7422_v60 = vld [vmem:[#allocation2 + $0x70] sm:$0xf] }
 0x28a   : > { %v3528_v39 = vrot.slane %v8333_v44, 1  ;;  %2646 = vrot.lane.b32.xlu1 %v2545_v45, %s6070_s29  ;;  %2105 = vst.msk [vmem:[#allocation2 + $0xb8] sm:$0xf] %vm1006_vm3, %v1931_v7  ;;  %2108 = vst [vmem:[#allocation2 + $0xbc] sm:$0x1] %v2107_v49  ;;  %v3752_v8 = vsel %vm2710_vm6, %v3750_v26, %v3751_v2  ;;  %v8334_v34 = vcombine.low %v7310_v63, %v7302_v17  ;;  %v3242_v51 = vrot.slane %v7382_v58, 1 }
 0x28b   : > { %2775 = vrot.lane.b32.xlu0 %v2737_v56, %s6069_s28  ;;  %v2527_v47 = vrot.slane %v2525_v46, 1  ;;  %v3540_v37 = vrot.slane %v3538_v9, 1  ;;  %v3533_v35 = vrot.slane %v3531_v53, 1  ;;  %v2523_v30 = vshrl.u32 %v7323_v61, 16  ;;  %v2261_v48 = vld [vmem:[#allocation2 + $0x78] sm:$0xf] }
 0x28c   : > { %v3241_v28 = vrot.slane %v8334_v34, 1  ;;  %v3529_v27 = vor.u32 %v3528_v39, %v3524_v38  ;;  %v2530_v57 = vshll.u32 %v7286_v18, 16  ;;  %v3536_v62 = vshrl.u32 %v7300_v11, 16  ;;  %v7414_v59 = vpop.permute.xlu1 %2761  ;;  %v5605_v9 = vld [vmem:[#allocation2 + $0x80] ss:$0 sps:$4 sm:$0x11]  }
 0x28d   : > { %v3543_v17 = vshll.u32 %v7292_v52, 16  ;;  %v3026_v63 = vshll.u32 %v7328_v13, 16  ;;  %v2528_v32 = vor.u32 %v2527_v47, %v2523_v30  ;;  %v2259_v52 = vld [vmem:[#allocation2 + $0x6c] sm:$0xf]  ;;  %v5121_v31 = vcombine.low %v2237_v15, %v7374_v42  ;;  %v2262_v44 = vld [vmem:[#allocation2 + $0x7c] sm:$0xf] }
 0x28e   : > { %2889 = vrot.lane.b32.xlu1 %v7399_v6, %s6071_s16  ;;  %v7416_v33 = vpop.permute.xlu0 %2763  ;;  %v3534_v26 = vsel %vm2437_vm7, %v3529_v27, %v3533_v35  ;;  %v3243_v2 = vsel %vm2710_vm6, %v3241_v28, %v3242_v51  ;;  %v3541_v36 = vor.u32 %v3540_v37, %v3536_v62  ;;  %v2532_v18 = vrot.slane %v2530_v57, 1  ;;  %v2173_v49 = vld [vmem:[#allocation2 + $0x6c] sm:$0xe]  ;;  %v2136_v46 = vld [vmem:[#allocation2 + $0x78] sm:$0xf] }
 0x28f   : > { %3793 = vrot.lane.b32.xlu0 %v3752_v8, %s6073_s19  ;;  %v3545_v11 = vrot.slane %v3543_v17, 1  ;;  %v3028_v39 = vrot.slane %v3026_v63, 1  ;;  %v7433_v38 = vld [vmem:[#allocation2 + $0x7c] sm:$0xf]  ;;  %v3062_v42 = vshll.u32 %v7399_v6, 16  ;;  %v3024_v34 = vshrl.u32 %v7328_v13, 16 }
 0x290   : > { %v2533_v45 = vsel %vm2437_vm7, %v2528_v32, %v2532_v18  ;;  %v2301_v8 = vld [vmem:[#allocation2 + $0x78] sm:$0xe]  ;;  %v3031_v28 = vshll.u32 %v7382_v58, 16  ;;  %v7439_v27 = vcombine.low %v2259_v52, %v7422_v60  ;;  %v7441_v51 = vcombine.low %v2261_v48, %v2262_v44  ;;  %v2135_v35 = vld [vmem:[#allocation2 + $0x70] sm:$0xf] }
 0x291   : > { %v3546_v56 = vsel %vm2437_vm7, %v3541_v36, %v3545_v11  ;;  %v3250_v47 = vrot.slane %v5121_v31, 1  ;;  %v3251_v37 = vrot.slane %v5605_v9, 1  ;;  %v3029_v30 = vor.u32 %v3028_v39, %v3024_v34  ;;  %v7443_v57 = vld [vmem:[#allocation2 + $0x74] ss:$0 sps:$4 sm:$0x11]  }
 0x292   : > { %3665 = vrot.lane.b32.xlu1 %v3534_v26, %s6075_s21  ;;  %v5073_v62 = vcombine.low %v2173_v49, %v2135_v35  ;;  %v7446_v17 = vcombine.low %v2136_v46, %v7433_v38  ;;  %v2300_v63 = vld [vmem:[#allocation2 + $0x6c] sm:$0xe]  ;;  %v7452_v58 = vld [vmem:[#allocation2 + $0x70] sm:$0xf]  ;;  %v5168_v26 = vcombine.low %v2301_v8, %v2262_v44  ;;  %v2174_v36 = vld [vmem:[#allocation2 + $0x78] sm:$0xe] }
 0x293   : > { %3283 = vrot.lane.b32.xlu0 %v3243_v2, %s6072_s18  ;;  %v2196_v13 = vld [vmem:[#allocation2 + $0x6c] sm:$0xf]  ;;  %v7454_v15 = vld [vmem:[#allocation2 + $0x80] ss:$0 sps:$4 sm:$0x11]   ;;  %v3033_v2 = vrot.slane %v3031_v28, 1  ;;  %v3252_v18 = vsel %vm2710_vm6, %v3250_v47, %v3251_v37 }
 0x294   : > { %v7429_v7 = vpop.permute.xlu1 %3145  ;;  %v3060_v11 = vshrl.u32 %v7399_v6, 16  ;;  %v3064_v52 = vrot.slane %v3062_v42, 1  ;;  %v3067_v31 = vshll.u32 %v5605_v9, 16  ;;  %v2738_v39 = vrot.slane %v5073_v62, 1  ;;  %v2134_v34 = vld [vmem:[#allocation2 + $0x6c] sm:$0xf] }
 0x295   : > { %v2739_v49 = vrot.slane %v7443_v57, 1  ;;  %v2561_v44 = vshll.u32 %v7446_v17, 16  ;;  %v3816_v6 = vsel %vm1063_vm4, %v6587_v14, %v7306_v1  ;;  %v5167_v9 = vcombine.low %v2300_v63, %v7422_v60  ;;  %v5625_v14 = vld [vmem:[%s8279_s7 + $0x8] sm:$0xff]  }
 0x296   : > { %2644 = vrot.lane.b32.xlu1 %v2533_v45, %s6070_s29  ;;  %v7431_v53 = vpop.permute.xlu0 %3271  ;;  %v5613_v45 = vld [vmem:[#allocation2 + $0x80] ss:$0 sps:$4 sm:$0x11]   ;;  %v7472_v46 = vcombine.low %v2196_v13, %v7452_v58  ;;  %v3759_v8 = vrot.slane %v5168_v26, 1  ;;  %v3065_v28 = vor.u32 %v3064_v52, %v3060_v11  ;;  %v3069_v47 = vrot.slane %v3067_v31, 1 }
 0x297   : > { %3667 = vrot.lane.b32.xlu0 %v3546_v56, %s6075_s21  ;;  %v3034_v56 = vsel %vm2437_vm7, %v3029_v30, %v3033_v2  ;;  %v3760_v37 = vrot.slane %v7454_v15, 1  ;;  %v5074_v62 = vcombine.low %v2174_v36, %v7433_v38  ;;  %v2740_v1 = vsel %vm2710_vm6, %v2738_v39, %v2739_v49  ;;  %v5617_v26 = vld [vmem:[#allocation2 + $0x74] ss:$0 sps:$4 sm:$0x11]   ;;  %v5629_v11 = vld [vmem:[%s8279_s7] sm:$0xff]  }
 0x298   : > { %v2559_v60 = vshrl.u32 %v7446_v17, 16  ;;  %v2563_v63 = vrot.slane %v2561_v44, 1  ;;  %v2566_v13 = vshll.u32 %v5613_v45, 16  ;;  %v3550_v2 = vshll.u32 %v7439_v27, 16  ;;  %v2236_v52 = vld [vmem:[#allocation2 + $0x6c] sm:$0xe] }
 0x299   : > { %v7456_v32 = vpop.permute.xlu1 %2634  ;;  %v4131_v38 = vsel %vm1112_vm2, %v7185_v4, 0  ;;  %v3848_v36 = vsel %vm474_vm1, %v3816_v6, %v7340_v20  ;;  %v3070_v31 = vsel %vm2437_vm7, %v3065_v28, %v3069_v47  ;;  %v2741_v49 = vrot.slane %v5074_v62, 1  ;;  %v2202_v44 = vld [vmem:[#allocation2 + $0x90] sm:$0xf]  ;;  %v7504_v6 = vld [vmem:[#allocation2 + $0x94] sm:$0xf] }
 0x29a   : > { %3397 = vrot.lane.b32.xlu1 %v7439_v27, %s6068_s27  ;;  %5451 = vmatpush3.bf16.msra.mxu0 %v4131_v38  ;;  %v2742_v4 = vrot.slane %v5613_v45, 1  ;;  %v2564_v20 = vor.u32 %v2563_v63, %v2559_v60  ;;  %v3757_v38 = vrot.slane %v5617_v26, 1  ;;  %v3552_v28 = vrot.slane %v3550_v2, 1  ;;  %v7513_v60 = vld [vmem:[#allocation2 + $0x74] ss:$0 sps:$4 sm:$0x11]  }
 0x29b   : > { %3399 = vrot.lane.b32.xlu0 %v7441_v51, %s6068_s27  ;;  %5452 = vmatprep.subr.bf16.mxu0 %v5625_v14  ;;  %v3555_v47 = vshll.u32 %v5617_v26, 16  ;;  %v3881_v45 = vsel %vm3879_vm14, %v3848_v36, %v7358_v55  ;;  %v5120_v62 = vcombine.low %v2236_v52, %v7452_v58  ;;  %v7517_v63 = vcombine.low %v2202_v44, %v7504_v6 }
 0x29c   : > { %v7460_v48 = vpop.permute.xlu0 %3655  ;;  %vm3978_vm2 = vcmask 195584  }
 0x29d   : > { %v7474_v42 = vpop.permute.xlu1 %2877  ;;  %v3557_v36 = vrot.slane %v3555_v47, 1 }
 0x29e   : > { %3289 = vrot.lane.b32.xlu1 %v3252_v18, %s6072_s18  ;;  %v7493_v18 = vcombine.low %v2134_v34, %v2135_v35  ;;  %v2568_v35 = vrot.slane %v2566_v13, 1  ;;  %v3756_v34 = vrot.slane %v5167_v9, 1  ;;  %5453 = vmatpush3.bf16.msra.mxu0 %v5625_v14  ;;  %v2743_v9 = vsel %vm2710_vm6, %v2741_v49, %v2742_v4 }
 0x29f   : > { %3155 = vrot.lane.b32.xlu0 %v3034_v56, %s6074_s20  ;;  %v3761_v56 = vsel %vm2710_vm6, %v3759_v8, %v3760_v37  ;;  %v3548_v8 = vshrl.u32 %v7439_v27, 16  ;;  %v3562_v37 = vshll.u32 %v7441_v51, 16  ;;  %5454 = vmatprep.subr.bf16.mxu0 %v5629_v11  ;;  %v3248_v49 = vrot.slane %v7513_v60, 1 }
 0x2a0   : > { %v7477_v30 = vpop.permute.xlu0 %3387  ;;  %v2549_v13 = vshll.u32 %v7493_v18, 16  ;;  %v2569_v55 = vsel %vm2437_vm7, %v2564_v20, %v2568_v35  ;;  %v3758_v26 = vsel %vm2710_vm6, %v3756_v34, %v3757_v38  ;;  %v2547_v4 = vshrl.u32 %v7493_v18, 16 }
 0x2a1   : > { %v7500_v39 = vpop.permute.xlu1 %3385  ;;  %v3553_v2 = vor.u32 %v3552_v28, %v3548_v8  ;;  %v2554_v20 = vshll.u32 %v7443_v57, 16  ;;  %v3560_v34 = vshrl.u32 %v7441_v51, 16  ;;  %v3564_v38 = vrot.slane %v3562_v37, 1 }
 0x2a2   : > { %2777 = vrot.lane.b32.xlu1 %v2740_v1, %s6069_s28  ;;  %5455 = vmatpush3.bf16.msra.mxu0 %v5629_v11  ;;  %v2551_v44 = vrot.slane %v2549_v13, 1  ;;  %v3050_v57 = vshll.u32 %v7472_v46, 16 }
 0x2a3   : > { %2887 = vrot.lane.b32.xlu0 %v7472_v46, %s6071_s16  ;;  %v2556_v8 = vrot.slane %v2554_v20, 1  ;;  %v3558_v51 = vsel %vm2437_vm7, %v3553_v2, %v3557_v36  ;;  %v3565_v47 = vor.u32 %v3564_v38, %v3560_v34  ;;  %v2266_v36 = vld [vmem:[#allocation2 + $0x94] sm:$0xf]  ;;  %v7574_v20 = vld [vmem:[#allocation2 + $0x8c] ss:$0 sps:$4 sm:$0x11]  }
 0x2a4   : > { %v7502_v1 = vpop.permute.xlu0 %2632 }
 0x2a5   : > { %v7525_v14 = vpop.permute.xlu1 %3277  ;;  %v3818_v37 = vsel %vm1063_vm4, %v6901_v0, %v7502_v1 }
 0x2a6   : > { %3161 = vrot.lane.b32.xlu1 %v3070_v31, %s6074_s20  ;;  %v3850_v0 = vsel %vm474_vm1, %v3818_v37, %v7414_v59  ;;  %v2303_v59 = vld [vmem:[#allocation2 + $0x90] sm:$0xe]  ;;  %v7593_v37 = vld [vmem:[#allocation2 + $0x88] sm:$0xf] }
 0x2a7   : > { %3799 = vrot.lane.b32.xlu0 %v3761_v56, %s6073_s19  ;;  %v3247_v56 = vrot.slane %v5120_v62, 1  ;;  %v2263_v62 = vld [vmem:[#allocation2 + $0x84] sm:$0xf] }
 0x2a8   : > { %v3144_v27 = vpop.permute.xlu0 %3143 }
 0x2a9   : > { %v3914_v58 = vsel %vm3912_vm15, %v3881_v45, %v3144_v27  ;;  %v2265_v27 = vld [vmem:[#allocation2 + $0x90] sm:$0xf] }
 0x2aa   : > { %2650 = vrot.lane.b32.xlu1 %v2569_v55, %s6070_s29  ;;  %v3947_v52 = vsel %vm3945_vm0, %v3914_v58, %v7431_v53  ;;  %v2175_v58 = vld [vmem:[#allocation2 + $0x84] sm:$0xe] }
 0x2ab   : > { %2779 = vrot.lane.b32.xlu0 %v2743_v9, %s6069_s28  ;;  %v3980_v31 = vsel %vm3978_vm2, %v3947_v52, %v7342_v54  ;;  %v3567_v54 = vshll.u32 %v7454_v15, 16  ;;  %v3249_v15 = vsel %vm2710_vm6, %v3247_v56, %v3248_v49  ;;  %v7556_v9 = vld [vmem:[#allocation2 + $0x88] sm:$0xf]  ;;  %v3048_v52 = vshrl.u32 %v7472_v46, 16 }
 0x2ac   : > { %v4013_v35 = vsel %vm4011_vm5, %v3980_v31, %v7460_v48  ;;  %v2552_v48 = vor.u32 %v2551_v44, %v2547_v4  ;;  %v3052_v31 = vrot.slane %v3050_v57, 1  ;;  %v3055_v56 = vshll.u32 %v7513_v60, 16  ;;  %v2139_v49 = vld [vmem:[#allocation2 + $0x88] sm:$0xf]  ;;  %v2140_v4 = vld [vmem:[#allocation2 + $0x90] sm:$0xf] }
 0x2ad   : > { %v4046_v53 = vsel %vm4044_vm8, %v4013_v35, %v7394_v10  ;;  %v2239_v10 = vld [vmem:[#allocation2 + $0x90] sm:$0xe]  ;;  %v3569_v45 = vrot.slane %v3567_v54, 1  ;;  %v7571_v44 = vld [vmem:[#allocation2 + $0x94] sm:$0xf]  ;;  %v3086_v46 = vshll.u32 %v7517_v63, 16  ;;  %v5075_v60 = vcombine.low %v2175_v58, %v2139_v49 }
 0x2ae   : > { %2893 = vrot.lane.b32.xlu1 %v7517_v63, %s6071_s16  ;;  %5456 = vmatprep.mubr.msk.bf16.mxu0 %vm4097_vm9, %v4046_v53  ;;  %v7547_v28 = vpop.permute.xlu0 %2875  ;;  %v5123_v13 = vcombine.low %v2239_v10, %v7504_v6  ;;  %v2557_v55 = vsel %vm2437_vm7, %v2552_v48, %v2556_v8  ;;  %v7577_v35 = vcombine.low %v2263_v62, %v7556_v9  ;;  %v3057_v48 = vrot.slane %v3055_v56, 1  ;;  %v7600_v58 = vld [vmem:[#allocation2 + $0x98] ss:$0 sps:$4 sm:$0x11]   ;;  %v2176_v56 = vld [vmem:[#allocation2 + $0x90] sm:$0xe] }
 0x2af   : > { %3797 = vrot.lane.b32.xlu0 %v3758_v26, %s6073_s19  ;;  %v7545_v11 = vpop.permute.xlu1 %2765  ;;  %v5624_v26 = vld [vmem:[#allocation2 + $0x98] ss:$0 sps:$4 sm:$0x11]   ;;  %v3570_v2 = vsel %vm2437_vm7, %v3565_v47, %v3569_v45  ;;  %v7579_v53 = vcombine.low %v2265_v27, %v2266_v36  ;;  %v3883_v54 = vsel %vm3879_vm14, %v3850_v0, %v7356_v43  ;;  %v3053_v57 = vor.u32 %v3052_v31, %v3048_v52  ;;  %v2200_v45 = vld [vmem:[#allocation2 + $0x84] sm:$0xf] }
 0x2b0   : > { %v3256_v34 = vrot.slane %v5123_v13, 1  ;;  %v3257_v38 = vrot.slane %v5624_v26, 1  ;;  %v7584_v8 = vcombine.low %v2140_v4, %v7571_v44  ;;  %v5170_v10 = vcombine.low %v2303_v59, %v2266_v36  ;;  %v5634_v52 = vld [vmem:[#allocation2 + $0x98] ss:$0 sps:$4 sm:$0x11]  }
 0x2b1   : > { %v2745_v47 = vrot.slane %v7574_v20, 1  ;;  %v3916_v62 = vsel %vm3912_vm15, %v3883_v54, %v7429_v7  ;;  %v3084_v27 = vshrl.u32 %v7517_v63, 16  ;;  %v3088_v13 = vrot.slane %v3086_v46, 1  ;;  %v2302_v0 = vld [vmem:[#allocation2 + $0x84] sm:$0xe] }
 0x2b2   : > { %3669 = vrot.lane.b32.xlu1 %v3558_v51, %s6075_s21  ;;  %v3058_v36 = vsel %vm2437_vm7, %v3053_v57, %v3057_v48  ;;  %v2585_v31 = vshll.u32 %v7584_v8, 16  ;;  %v7611_v4 = vcombine.low %v2200_v45, %v7593_v37  ;;  %v3766_v54 = vrot.slane %v7600_v58, 1 }
 0x2b3   : > { %3287 = vrot.lane.b32.xlu0 %v3249_v15, %s6072_s18  ;;  %v2744_v15 = vrot.slane %v5075_v60, 1  ;;  %v2138_v60 = vld [vmem:[#allocation2 + $0x84] sm:$0xf]  ;;  %v3089_v59 = vor.u32 %v3088_v13, %v3084_v27  ;;  %v2583_v57 = vshrl.u32 %v7584_v8, 16 }
 0x2b4   : > { %v2587_v48 = vrot.slane %v2585_v31, 1  ;;  %v7623_v45 = vcombine.low %v2138_v60, %v2139_v49  ;;  %v2748_v31 = vrot.slane %v5634_v52, 1  ;;  %v7633_v60 = vld [vmem:[#allocation2 + $0x8c] ss:$0 sps:$4 sm:$0x11]  }
 0x2b5   : > { %v2746_v7 = vsel %vm2710_vm6, %v2744_v15, %v2745_v47  ;;  %v5076_v15 = vcombine.low %v2176_v56, %v7571_v44  ;;  %v3574_v47 = vshll.u32 %v7577_v35, 16 }
 0x2b6   : > { %2648 = vrot.lane.b32.xlu1 %v2557_v55, %s6070_s29  ;;  %v7566_v1 = vpop.permute.xlu1 %3149  ;;  %v7569_v6 = vpop.permute.xlu0 %3787  ;;  %v3091_v55 = vshll.u32 %v5624_v26, 16  ;;  %v3949_v26 = vsel %vm3945_vm0, %v3916_v62, %v7392_v16  ;;  %v5169_v16 = vcombine.low %v2302_v0, %v7556_v9  ;;  %v5638_v62 = vld [vmem:[#allocation2 + $0x8c] ss:$0 sps:$4 sm:$0x11]  }
 0x2b7   : > { %3671 = vrot.lane.b32.xlu0 %v3570_v2, %s6075_s21  ;;  %v3258_v2 = vsel %vm2710_vm6, %v3256_v34, %v3257_v38  ;;  %v3765_v38 = vrot.slane %v5170_v10, 1  ;;  %v3982_v27 = vsel %vm3978_vm2, %v3949_v26, %v7500_v39  ;;  %v2747_v0 = vrot.slane %v5076_v15, 1 }
 0x2b8   : > { %v3093_v34 = vrot.slane %v3091_v55, 1  ;;  %v2238_v55 = vld [vmem:[#allocation2 + $0x84] sm:$0xe] }
 0x2b9   : > { %v5122_v39 = vcombine.low %v2238_v55, %v7593_v37  ;;  %v2573_v37 = vshll.u32 %v7623_v45, 16  ;;  %v3254_v55 = vrot.slane %v7633_v60, 1 }
 0x2ba   : > { %3401 = vrot.lane.b32.xlu1 %v7577_v35, %s6068_s27  ;;  %v3094_v44 = vsel %vm2437_vm7, %v3089_v59, %v3093_v34  ;;  %v2206_v59 = vld [vmem:[#allocation2 + $0xa8] sm:$0xf]  ;;  %v3763_v34 = vrot.slane %v5638_v62, 1 }
 0x2bb   : > { %3403 = vrot.lane.b32.xlu0 %v7579_v53, %s6068_s27  ;;  %v7590_v51 = vpop.permute.xlu0 %2767 }
 0x2bc   : > { %v7595_v43 = vpop.permute.xlu1 %2638 }
 0x2be   : > { %3293 = vrot.lane.b32.xlu1 %v3258_v2, %s6072_s18  ;;  %v2590_v2 = vshll.u32 %v5634_v52, 16  ;;  %v3762_v52 = vrot.slane %v5169_v16, 1  ;;  %v3820_v16 = vsel %vm1063_vm4, %v6863_v40, %v7456_v32  ;;  %v2571_v40 = vshrl.u32 %v7623_v45, 16 }
 0x2bf   : > { %3159 = vrot.lane.b32.xlu0 %v3058_v36, %s6074_s20  ;;  %v3786_v63 = vpop.permute.xlu0 %3785  ;;  %v3767_v36 = vsel %vm2710_vm6, %v3765_v38, %v3766_v54  ;;  %v7637_v54 = vld [vmem:[#allocation2 + $0xac] sm:$0xf]  ;;  %v2578_v32 = vshll.u32 %v7574_v20, 16 }
 0x2c0   : > { %v7613_v46 = vpop.permute.xlu1 %2881  ;;  %v2592_v9 = vrot.slane %v2590_v2, 1  ;;  %v3586_v2 = vshll.u32 %v7579_v53, 16 }
 0x2c2   : > { %2781 = vrot.lane.b32.xlu1 %v2746_v7, %s6069_s28  ;;  %v2588_v7 = vor.u32 %v2587_v48, %v2583_v57  ;;  %v3572_v57 = vshrl.u32 %v7577_v35, 16  ;;  %v3579_v48 = vshll.u32 %v5638_v62, 16  ;;  %v7650_v35 = vcombine.low %v2206_v59, %v7637_v54 }
 0x2c3   : > { %2891 = vrot.lane.b32.xlu0 %v7611_v4, %s6071_s16  ;;  %v3276_v10 = vpop.permute.xlu0 %3275  ;;  %v3764_v62 = vsel %vm2710_vm6, %v3762_v52, %v3763_v34  ;;  %v3074_v59 = vshll.u32 %v7611_v4, 16  ;;  %v2241_v52 = vld [vmem:[#allocation2 + $0xa8] sm:$0xe] }
 0x2c4   : > { %v3658_v13 = vpop.permute.xlu1 %3657  ;;  %v2593_v15 = vsel %vm2437_vm7, %v2588_v7, %v2592_v9  ;;  %v3584_v7 = vshrl.u32 %v7579_v53, 16  ;;  %v3588_v9 = vrot.slane %v3586_v2, 1 }
 0x2c5   : > { %v4015_v56 = vsel %vm4011_vm5, %v3982_v27, %v3658_v13  ;;  %v2749_v27 = vsel %vm2710_vm6, %v2747_v0, %v2748_v31  ;;  %v3253_v13 = vrot.slane %v5122_v39, 1  ;;  %v3581_v31 = vrot.slane %v3579_v48, 1 }
 0x2c6   : > { %v4048_v49 = vsel %vm4044_vm8, %v4015_v56, %v3786_v63  ;;  %3165 = vrot.lane.b32.xlu1 %v3094_v44, %s6074_s20  ;;  %v3576_v63 = vrot.slane %v3574_v47, 1  ;;  %v2575_v56 = vrot.slane %v2573_v37, 1  ;;  %v3591_v0 = vshll.u32 %v7600_v58, 16 }
 0x2c7   : > { %3803 = vrot.lane.b32.xlu0 %v3767_v36, %s6073_s19  ;;  %5457 = vmatmul.mubr.msk.bf16.vlgmr.msra.gmra.mxu0 %vm4097_vm9, %v4048_v49  ;;  %v3660_v26 = vpop.permute.xlu0 %3659  ;;  %v3852_v49 = vsel %vm474_vm1, %v3820_v16, %v7416_v33  ;;  %v3255_v33 = vsel %vm2710_vm6, %v3253_v13, %v3254_v55  ;;  %v3589_v2 = vor.u32 %v3588_v9, %v3584_v7  ;;  %v2269_v13 = vld [vmem:[#allocation2 + $0xa8] sm:$0xf]  ;;  %v3076_v55 = vrot.slane %v3074_v59, 1  ;;  %v2177_v7 = vld [vmem:[#allocation2 + $0x9c] sm:$0xe] }
 0x2c8   : > { %v2637_v38 = vpop.permute.xlu1 %2636  ;;  %v3577_v36 = vor.u32 %v3576_v63, %v3572_v57  ;;  %v3885_v39 = vsel %vm3879_vm14, %v3852_v49, %v7547_v28  ;;  %v2580_v57 = vrot.slane %v2578_v32, 1  ;;  %v2576_v48 = vor.u32 %v2575_v56, %v2571_v40  ;;  %v7689_v40 = vld [vmem:[#allocation2 + $0xa0] sm:$0xf]  ;;  %v5644_v56 = vld [vmem:[#allocation2 + $0xb0] ss:$0 sps:$4 sm:$0x11]  }
 0x2c9   : > { %v7699_v9 = vld [vmem:[#allocation2 + $0xac] sm:$0xf]  ;;  %v2143_v49 = vld [vmem:[#allocation2 + $0xa0] sm:$0xf] }
 0x2ca   : > { %2654 = vrot.lane.b32.xlu1 %v2593_v15, %s6070_s29  ;;  %v3582_v53 = vsel %vm2437_vm7, %v3577_v36, %v3581_v31  ;;  %v3593_v15 = vrot.slane %v3591_v0, 1  ;;  %v2581_v32 = vsel %vm2437_vm7, %v2576_v48, %v2580_v57 }
 0x2cb   : > { %2783 = vrot.lane.b32.xlu0 %v2749_v27, %s6069_s28  ;;  %v7652_v47 = vpop.permute.xlu0 %3391  ;;  %v5125_v27 = vcombine.low %v2241_v52, %v7637_v54  ;;  %v3822_v54 = vsel %vm1063_vm4, %v7022_v41, %v2637_v38  ;;  %v3110_v41 = vshll.u32 %v7650_v35, 16 }
 0x2cc   : > { %v7656_v44 = vpop.permute.xlu1 %3389 }
 0x2cd   : > { %v3262_v0 = vrot.slane %v5125_v27, 1  ;;  %v3112_v27 = vrot.slane %v3110_v41, 1 }
 0x2ce   : > { %2897 = vrot.lane.b32.xlu1 %v7650_v35, %s6071_s16 }
 0x2cf   : > { %3801 = vrot.lane.b32.xlu0 %v3764_v62, %s6073_s19  ;;  %v3148_v20 = vpop.permute.xlu0 %3147  ;;  %v2267_v62 = vld [vmem:[#allocation2 + $0x9c] sm:$0xf] }
 0x2d0   : > { %v7670_v34 = vpop.permute.xlu1 %3281  ;;  %v3918_v58 = vsel %vm3912_vm15, %v3885_v39, %v3148_v20  ;;  %v3854_v39 = vsel %vm474_vm1, %v3822_v54, %v7545_v11  ;;  %v2305_v20 = vld [vmem:[#allocation2 + $0xa8] sm:$0xe]  ;;  %v2204_v11 = vld [vmem:[#allocation2 + $0x9c] sm:$0xf] }
 0x2d1   : > { %v3951_v63 = vsel %vm3945_vm0, %v3918_v58, %v3276_v10  ;;  %v3072_v10 = vshrl.u32 %v7611_v4, 16  ;;  %v3079_v4 = vshll.u32 %v7633_v60, 16  ;;  %v7709_v60 = vcombine.low %v2267_v62, %v7689_v40  ;;  %v5651_v54 = vld [vmem:[#allocation2 + $0xb0] ss:$0 sps:$4 sm:$0x11]  }
 0x2d2   : > { %3673 = vrot.lane.b32.xlu1 %v3582_v53, %s6075_s21  ;;  %v3984_v28 = vsel %vm3978_vm2, %v3951_v63, %v7477_v30  ;;  %v2270_v30 = vld [vmem:[#allocation2 + $0xac] sm:$0xf]  ;;  %v7713_v53 = vld [vmem:[#allocation2 + $0xa4] ss:$0 sps:$4 sm:$0x11]   ;;  %v5077_v58 = vcombine.low %v2177_v7, %v2143_v49 }
 0x2d3   : > { %3291 = vrot.lane.b32.xlu0 %v3255_v33, %s6072_s18  ;;  %v7681_v37 = vpop.permute.xlu0 %2879  ;;  %v4017_v16 = vsel %vm4011_vm5, %v3984_v28, %v3660_v26  ;;  %v3594_v26 = vsel %vm2437_vm7, %v3589_v2, %v3593_v15  ;;  %v7711_v52 = vcombine.low %v2269_v13, %v2270_v30  ;;  %v3263_v33 = vrot.slane %v5644_v56, 1  ;;  %v7722_v2 = vld [vmem:[#allocation2 + $0xa0] sm:$0xf]  ;;  %v7729_v13 = vld [vmem:[#allocation2 + $0xb0] ss:$0 sps:$4 sm:$0x11]  }
 0x2d4   : > { %v7685_v36 = vpop.permute.xlu1 %2769  ;;  %v4050_v31 = vsel %vm4044_vm8, %v4017_v16, %v7569_v6  ;;  %v2144_v6 = vld [vmem:[#allocation2 + $0xa8] sm:$0xf]  ;;  %v3077_v57 = vor.u32 %v3076_v55, %v3072_v10  ;;  %v3081_v63 = vrot.slane %v3079_v4, 1  ;;  %v3887_v15 = vsel %vm3879_vm14, %v3854_v39, %v7474_v42 }
 0x2d5   : > { %5460 = vmatprep.mubr.msk.bf16.mxu0 %vm4097_vm9, %v4050_v31  ;;  %v7716_v48 = vcombine.low %v2144_v6, %v7699_v9  ;;  %v3108_v28 = vshrl.u32 %v7650_v35, 16  ;;  %v5172_v16 = vcombine.low %v2305_v20, %v2270_v30  ;;  %v2750_v55 = vrot.slane %v5077_v58, 1  ;;  %v2178_v35 = vld [vmem:[#allocation2 + $0xa8] sm:$0xe] }
 0x2d6   : > { %2652 = vrot.lane.b32.xlu1 %v2581_v32, %s6070_s29  ;;  %v2751_v31 = vrot.slane %v7713_v53, 1  ;;  %v3264_v32 = vsel %vm2710_vm6, %v3262_v0, %v3263_v33  ;;  %v3115_v4 = vshll.u32 %v5644_v56, 16  ;;  %v3920_v30 = vsel %vm3912_vm15, %v3887_v15, %v7566_v1  ;;  %v2304_v0 = vld [vmem:[#allocation2 + $0x9c] sm:$0xe] }
 0x2d7   : > { %3675 = vrot.lane.b32.xlu0 %v3594_v26, %s6075_s21  ;;  %v7702_v38 = vpop.permute.xlu0 %3791  ;;  %v3082_v26 = vsel %vm2437_vm7, %v3077_v57, %v3081_v63  ;;  %v2609_v42 = vshll.u32 %v7716_v48, 16  ;;  %v3771_v7 = vrot.slane %v5172_v16, 1  ;;  %v7742_v41 = vcombine.low %v2204_v11, %v7722_v2  ;;  %v2142_v56 = vld [vmem:[#allocation2 + $0x9c] sm:$0xf] }
 0x2d8   : > { %v7706_v59 = vpop.permute.xlu1 %3153  ;;  %v3113_v39 = vor.u32 %v3112_v27, %v3108_v28  ;;  %v2752_v58 = vsel %vm2710_vm6, %v2750_v55, %v2751_v31  ;;  %v3772_v33 = vrot.slane %v7729_v13, 1  ;;  %v2614_v57 = vshll.u32 %v5651_v54, 16 }
 0x2d9   : > { %v5078_v1 = vcombine.low %v2178_v35, %v7699_v9  ;;  %v3953_v63 = vsel %vm3945_vm0, %v3920_v30, %v7525_v14  ;;  %v3117_v15 = vrot.slane %v3115_v4, 1  ;;  %v2607_v16 = vshrl.u32 %v7716_v48, 16 }
 0x2da   : > { %3405 = vrot.lane.b32.xlu1 %v7709_v60, %s6068_s27  ;;  %v2611_v11 = vrot.slane %v2609_v42, 1  ;;  %v5171_v28 = vcombine.low %v2304_v0, %v7689_v40  ;;  %v3598_v27 = vshll.u32 %v7709_v60, 16  ;;  %v7757_v55 = vcombine.low %v2142_v56, %v2143_v49  ;;  %v5654_v42 = vld [vmem:[#allocation2 + $0xa4] ss:$0 sps:$4 sm:$0x11]  }
 0x2db   : > { %3407 = vrot.lane.b32.xlu0 %v7711_v52, %s6068_s27  ;;  %v7727_v62 = vpop.permute.xlu0 %2771  ;;  %v3986_v9 = vsel %vm3978_vm2, %v3953_v63, %v7656_v44  ;;  %v2754_v4 = vrot.slane %v5651_v54, 1  ;;  %v3118_v30 = vsel %vm2437_vm7, %v3113_v39, %v3117_v15  ;;  %v2753_v40 = vrot.slane %v5078_v1, 1  ;;  %v2240_v0 = vld [vmem:[#allocation2 + $0x9c] sm:$0xe]  ;;  %v7771_v63 = vld [vmem:[#allocation2 + $0xc4] sm:$0xf] }
 0x2dc   : > { %v7731_v10 = vpop.permute.xlu1 %2642  ;;  %v3596_v44 = vshrl.u32 %v7709_v60, 16  ;;  %v7769_v54 = vld [vmem:[#allocation2 + $0xa4] ss:$0 sps:$4 sm:$0x11]   ;;  %v3768_v56 = vrot.slane %v5171_v28, 1  ;;  %v3769_v1 = vrot.slane %v5654_v42, 1 }
 0x2dd   : > { %v3603_v15 = vshll.u32 %v5654_v42, 16  ;;  %v2597_v60 = vshll.u32 %v7757_v55, 16 }
 0x2de   : > { %3297 = vrot.lane.b32.xlu1 %v3264_v32, %s6072_s18  ;;  %v3773_v32 = vsel %vm2710_vm6, %v3771_v7, %v3772_v33  ;;  %v2210_v7 = vld [vmem:[#allocation2 + $0xc0] sm:$0xf]  ;;  %v3600_v33 = vrot.slane %v3598_v27, 1 }
 0x2df   : > { %3163 = vrot.lane.b32.xlu0 %v3082_v26, %s6074_s20  ;;  %v3790_v6 = vpop.permute.xlu0 %3789  ;;  %v2616_v26 = vrot.slane %v2614_v57, 1  ;;  %v7781_v28 = vcombine.low %v2210_v7, %v7771_v63 }
 0x2e0   : > { %v7744_v20 = vpop.permute.xlu1 %2885 }
 0x2e2   : > { %2785 = vrot.lane.b32.xlu1 %v2752_v58, %s6069_s28  ;;  %v2612_v58 = vor.u32 %v2611_v11, %v2607_v16  ;;  %v2755_v16 = vsel %vm2710_vm6, %v2753_v40, %v2754_v4  ;;  %v5124_v11 = vcombine.low %v2240_v0, %v7722_v2  ;;  %v3605_v4 = vrot.slane %v3603_v15, 1 }
 0x2e3   : > { %2895 = vrot.lane.b32.xlu0 %v7742_v41, %s6071_s16  ;;  %v3280_v31 = vpop.permute.xlu0 %3279  ;;  %v3260_v2 = vrot.slane %v7769_v54, 1  ;;  %v3824_v40 = vsel %vm1063_vm4, %v7054_v23, %v7595_v43 }
 0x2e4   : > { %v3662_v14 = vpop.permute.xlu1 %3661  ;;  %v3259_v42 = vrot.slane %v5124_v11, 1  ;;  %v3856_v7 = vsel %vm474_vm1, %v3824_v40, %v7590_v51  ;;  %v3096_v40 = vshrl.u32 %v7742_v41, 16 }
 0x2e5   : > { %v4019_v35 = vsel %vm4011_vm5, %v3986_v9, %v3662_v14  ;;  %v3610_v9 = vshll.u32 %v7711_v52, 16 }
 0x2e6   : > { %3169 = vrot.lane.b32.xlu1 %v3118_v30, %s6074_s20  ;;  %v4052_v49 = vsel %vm4044_vm8, %v4019_v35, %v3790_v6  ;;  %v2617_v6 = vsel %vm2437_vm7, %v2612_v58, %v2616_v26  ;;  %v3601_v26 = vor.u32 %v3600_v33, %v3596_v44  ;;  %v2595_v35 = vshrl.u32 %v7757_v55, 16 }
 0x2e7   : > { %3807 = vrot.lane.b32.xlu0 %v3773_v32, %s6073_s19  ;;  %5461 = vmatmul.mubr.msk.bf16.gmra.mxu0 %vm4097_vm9, %v4052_v49  ;;  %v3770_v32 = vsel %vm2710_vm6, %v3768_v56, %v3769_v1  ;;  %v2599_v30 = vrot.slane %v2597_v60, 1  ;;  %v2602_v58 = vshll.u32 %v7713_v53, 16  ;;  %v3608_v49 = vshrl.u32 %v7711_v52, 16 }
 0x2e8   : > { %v2641_v57 = vpop.permute.xlu1 %2640  ;;  %v3612_v0 = vrot.slane %v3610_v9, 1  ;;  %v3615_v44 = vshll.u32 %v7729_v13, 16  ;;  %v3889_v53 = vsel %vm3879_vm14, %v3856_v7, %v7681_v37  ;;  %v3606_v23 = vsel %vm2437_vm7, %v3601_v26, %v3605_v4  ;;  %v2243_v37 = vld [vmem:[#allocation2 + $0xc0] sm:$0xe]  ;;  %v2271_v26 = vld [vmem:[#allocation2 + $0xb4] sm:$0xf] }
 0x2e9   : > { %v3664_v39 = vpop.permute.xlu0 %3663  ;;  %v3261_v33 = vsel %vm2710_vm6, %v3259_v42, %v3260_v2  ;;  %v2600_v1 = vor.u32 %v2599_v30, %v2595_v35  ;;  %v2604_v15 = vrot.slane %v2602_v58, 1  ;;  %v2273_v4 = vld [vmem:[#allocation2 + $0xc0] sm:$0xf]  ;;  %v7819_v2 = vld [vmem:[#allocation2 + $0xc4] sm:$0xf]  ;;  %v5127_v58 = vcombine.low %v2243_v37, %v7771_v63 }
 0x2ea   : > { %2658 = vrot.lane.b32.xlu1 %v2617_v6, %s6070_s29  ;;  %v3613_v51 = vor.u32 %v3612_v0, %v3608_v49  ;;  %v3617_v6 = vrot.slane %v3615_v44, 1  ;;  %v2272_v30 = vld [vmem:[#allocation2 + $0xb8] sm:$0xf] }
 0x2eb   : > { %2787 = vrot.lane.b32.xlu0 %v2755_v16, %s6069_s28  ;;  %v3098_v16 = vshll.u32 %v7742_v41, 16  ;;  %v2605_v42 = vsel %vm2437_vm7, %v2600_v1, %v2604_v15  ;;  %v7838_v44 = vcombine.low %v2271_v26, %v2272_v30  ;;  %v2306_v41 = vld [vmem:[#allocation2 + $0xb4] sm:$0xe] }
 0x2ec   : > { %v7783_v27 = vpop.permute.xlu1 %3393 }
 0x2ed   : > { %v7785_v14 = vpop.permute.xlu0 %3395  ;;  %v3100_v49 = vrot.slane %v3098_v16, 1 }
 0x2ee   : > { %2901 = vrot.lane.b32.xlu1 %v7781_v28, %s6071_s16 }
 0x2ef   : > { %3805 = vrot.lane.b32.xlu0 %v3770_v32, %s6073_s19 }
 0x2f0   : > { %v7803_v56 = vpop.permute.xlu1 %3285 }
 0x2f1   : > { %v3152_v43 = vpop.permute.xlu0 %3151 }
 0x2f2   : > { %v3922_v52 = vsel %vm3912_vm15, %v3889_v53, %v3152_v43  ;;  %3677 = vrot.lane.b32.xlu1 %v3606_v23, %s6075_s21  ;;  %v2146_v53 = vld [vmem:[#allocation2 + $0xb4] sm:$0xf]  ;;  %v2147_v23 = vld [vmem:[#allocation2 + $0xb8] sm:$0xf]  ;;  %v7843_v43 = vcombine.low %v2273_v4, %v7819_v2  ;;  %v3622_v4 = vshll.u32 %v7838_v44, 16 }
 0x2f3   : > { %v3955_v13 = vsel %vm3945_vm0, %v3922_v52, %v3280_v31  ;;  %3295 = vrot.lane.b32.xlu0 %v3261_v33, %s6072_s18  ;;  %v3826_v31 = vsel %vm1063_vm4, %v7156_v5, %v2641_v57  ;;  %v3103_v5 = vshll.u32 %v7769_v54, 16  ;;  %v2179_v57 = vld [vmem:[#allocation2 + $0xb4] sm:$0xe]  ;;  %v3268_v54 = vrot.slane %v5127_v58, 1 }
 0x2f4   : > { %v3988_v11 = vsel %vm3978_vm2, %v3955_v13, %v7652_v47  ;;  %v7814_v60 = vpop.permute.xlu1 %2773  ;;  %v5659_v47 = vld [vmem:[#allocation2 + $0xc8] ss:$0 sps:$4 sm:$0x11]   ;;  %v3858_v0 = vsel %vm474_vm1, %v3826_v31, %v7685_v36  ;;  %v7845_v33 = vld [vmem:[#allocation2 + $0xbc] ss:$0 sps:$4 sm:$0x11]   ;;  %v5079_v1 = vcombine.low %v2179_v57, %v2147_v23  ;;  %v3101_v36 = vor.u32 %v3100_v49, %v3096_v40 }
 0x2f5   : > { %v7816_v9 = vpop.permute.xlu0 %2883  ;;  %v4021_v32 = vsel %vm4011_vm5, %v3988_v11, %v3664_v39  ;;  %v3618_v39 = vsel %vm2437_vm7, %v3613_v51, %v3617_v6  ;;  %v3269_v52 = vrot.slane %v5659_v47, 1  ;;  %v3105_v15 = vrot.slane %v3103_v5, 1  ;;  %v5665_v51 = vld [vmem:[#allocation2 + $0xbc] ss:$0 sps:$4 sm:$0x11]  }
 0x2f6   : > { %v4054_v35 = vsel %vm4044_vm8, %v4021_v32, %v7702_v38  ;;  %2656 = vrot.lane.b32.xlu1 %v2605_v42, %s6070_s29  ;;  %v3134_v38 = vshll.u32 %v7781_v28, 16  ;;  %v3132_v13 = vshrl.u32 %v7781_v28, 16  ;;  %v3891_v6 = vsel %vm3879_vm14, %v3858_v0, %v7613_v46  ;;  %v2242_v46 = vld [vmem:[#allocation2 + $0xb4] sm:$0xe] }
 0x2f7   : > { %5464 = vmatprep.mubr.msk.bf16.mxu0 %vm4097_vm9, %v4054_v35  ;;  %3679 = vrot.lane.b32.xlu0 %v3618_v39, %s6075_s21  ;;  %v3139_v16 = vshll.u32 %v5659_v47, 16  ;;  %v5173_v11 = vcombine.low %v2306_v41, %v2272_v30  ;;  %v3270_v31 = vsel %vm2710_vm6, %v3268_v54, %v3269_v52  ;;  %v2756_v42 = vrot.slane %v5079_v1, 1  ;;  %v2208_v47 = vld [vmem:[#allocation2 + $0xb4] sm:$0xf]  ;;  %v2209_v39 = vld [vmem:[#allocation2 + $0xb8] sm:$0xf] }
 0x2f8   : > { %v7836_v63 = vpop.permute.xlu1 %3157  ;;  %v3136_v37 = vrot.slane %v3134_v38, 1  ;;  %v2757_v28 = vrot.slane %v7845_v33, 1  ;;  %v7861_v35 = vcombine.low %v2146_v53, %v2147_v23  ;;  %v3924_v58 = vsel %vm3912_vm15, %v3891_v6, %v7706_v59  ;;  %v7868_v0 = vld [vmem:[#allocation2 + $0xbc] ss:$0 sps:$4 sm:$0x11]  }
 0x2f9   : > { %v7840_v7 = vpop.permute.xlu0 %3795  ;;  %v3106_v30 = vsel %vm2437_vm7, %v3101_v36, %v3105_v15  ;;  %v3775_v40 = vrot.slane %v5665_v51, 1  ;;  %v3141_v5 = vrot.slane %v3139_v16, 1  ;;  %v3774_v57 = vrot.slane %v5173_v11, 1  ;;  %v7886_v11 = vld [vmem:[#allocation2 + $0xd4] ss:$0 sps:$4 sm:$0x11]  }
 0x2fa   : > { %3409 = vrot.lane.b32.xlu1 %v7838_v44, %s6068_s27  ;;  %v3137_v49 = vor.u32 %v3136_v37, %v3132_v13  ;;  %v3627_v38 = vshll.u32 %v5665_v51, 16  ;;  %v3620_v59 = vshrl.u32 %v7838_v44, 16  ;;  %v3624_v41 = vrot.slane %v3622_v4, 1  ;;  %v7877_v13 = vld [vmem:[#allocation2 + $0xc8] ss:$0 sps:$4 sm:$0x11]  }
 0x2fb   : > { %3411 = vrot.lane.b32.xlu0 %v7843_v43, %s6068_s27  ;;  %v5126_v54 = vcombine.low %v2242_v46, %v2209_v39  ;;  %v3957_v52 = vsel %vm3945_vm0, %v3924_v58, %v7670_v34  ;;  %v2758_v1 = vsel %vm2710_vm6, %v2756_v42, %v2757_v28  ;;  %v5094_v36 = vcombine.low %v2208_v47, %v2209_v39 }
 0x2fc   : > { %v7854_v32 = vpop.permute.xlu1 %2646  ;;  %v2621_v15 = vshll.u32 %v7861_v35, 16  ;;  %v3646_v51 = vshll.u32 %v6590_v3, 16  ;;  %v3634_v6 = vshll.u32 %v7843_v43, 16  ;;  %v3142_v44 = vsel %vm2437_vm7, %v3137_v49, %v3141_v5 }
 0x2fd   : > { %v7856_v26 = vpop.permute.xlu0 %2775  ;;  %v3776_v37 = vsel %vm2710_vm6, %v3774_v57, %v3775_v40  ;;  %v3629_v34 = vrot.slane %v3627_v38, 1  ;;  %v3266_v16 = vrot.slane %v7868_v0, 1  ;;  %v3990_v4 = vsel %vm3978_vm2, %v3957_v52, %v7783_v27 }
 0x2fe   : > { %3301 = vrot.lane.b32.xlu1 %v3270_v31, %s6072_s18  ;;  %v3625_v28 = vor.u32 %v3624_v41, %v3620_v59  ;;  %v3265_v46 = vrot.slane %v5126_v54, 1  ;;  %v2619_v58 = vshrl.u32 %v7861_v35, 16  ;;  %v2623_v47 = vrot.slane %v2621_v15, 1 }
 0x2ff   : > { %3167 = vrot.lane.b32.xlu0 %v3106_v30, %s6074_s20  ;;  %v2626_v39 = vshll.u32 %v7845_v33, 16  ;;  %v3639_v40 = vshll.u32 %v7877_v13, 16  ;;  %v3632_v5 = vshrl.u32 %v7843_v43, 16  ;;  %v3636_v27 = vrot.slane %v3634_v6, 1  ;;  %v2308_v33 = vld [vmem:[#allocation2 + $0xcc] sm:$0xe] }
 0x300   : > { %v7870_v53 = vpop.permute.xlu1 %2889  ;;  %v3122_v57 = vshll.u32 %v5094_v36, 16  ;;  %v3644_v38 = vshrl.u32 %v6590_v3, 16  ;;  %v3648_v59 = vrot.slane %v3646_v51, 1  ;;  %v3651_v41 = vshll.u32 %v7886_v11, 16 }
 0x301   : > { %v3794_v23 = vpop.permute.xlu0 %3793  ;;  %v3630_v52 = vsel %vm2437_vm7, %v3625_v28, %v3629_v34  ;;  %v2624_v15 = vor.u32 %v2623_v47, %v2619_v58  ;;  %v2628_v43 = vrot.slane %v2626_v39, 1  ;;  %v3641_v6 = vrot.slane %v3639_v40, 1 }
 0x302   : > { %2789 = vrot.lane.b32.xlu1 %v2758_v1, %s6069_s28  ;;  %v3637_v3 = vor.u32 %v3636_v27, %v3632_v5  ;;  %v3120_v51 = vshrl.u32 %v5094_v36, 16  ;;  %v3653_v34 = vrot.slane %v3651_v41, 1  ;;  %v3778_v41 = vrot.slane %v7877_v13, 1 }
 0x303   : > { %2899 = vrot.lane.b32.xlu0 %v5094_v36, %s6071_s16  ;;  %v3828_v36 = vsel %vm1063_vm4, %v7192_v22, %v7731_v10 }
 0x304   : > { %v3666_v31 = vpop.permute.xlu1 %3665  ;;  %v3860_v40 = vsel %vm474_vm1, %v3828_v36, %v7727_v62 }
 0x305   : > { %v3284_v42 = vpop.permute.xlu0 %3283  ;;  %v4023_v30 = vsel %vm4011_vm5, %v3990_v4, %v3666_v31  ;;  %v3127_v4 = vshll.u32 %v7868_v0, 16  ;;  %v6058_v31 = vld [vmem:[#allocation2 + $0xd0] sm:$0xf]  ;;  %v3642_v0 = vsel %vm2437_vm7, %v3637_v3, %v3641_v6  ;;  %v3893_v27 = vsel %vm3879_vm14, %v3860_v40, %v7816_v9 }
 0x306   : > { %3173 = vrot.lane.b32.xlu1 %v3142_v44, %s6074_s20  ;;  %v4056_v49 = vsel %vm4044_vm8, %v4023_v30, %v3794_v23  ;;  %v3267_v23 = vsel %vm2710_vm6, %v3265_v46, %v3266_v16  ;;  %v3124_v44 = vrot.slane %v3122_v57, 1  ;;  %v5175_v30 = vcombine.low %v2308_v33, %v6058_v31 }
 0x307   : > { %5465 = vmatmul.mubr.msk.bf16.gmra.mxu0 %vm4097_vm9, %v4056_v49  ;;  %3809 = vrot.lane.b32.xlu0 %v3776_v37, %s6073_s19  ;;  %v2307_v37 = vld [vmem:[#allocation2 + $0xc0] sm:$0xe]  ;;  %v3649_v49 = vor.u32 %v3648_v59, %v3644_v38  ;;  %v2629_v16 = vsel %vm2437_vm7, %v2624_v15, %v2628_v43  ;;  %v3129_v47 = vrot.slane %v3127_v4, 1 }
 0x308   : > { %v2645_v54 = vpop.permute.xlu1 %2644  ;;  %v5174_v46 = vcombine.low %v2307_v37, %v7819_v2  ;;  %v3125_v58 = vor.u32 %v3124_v44, %v3120_v51  ;;  %v3780_v39 = vrot.slane %v5175_v30, 1  ;;  %v3781_v2 = vrot.slane %v7886_v11, 1 }
 0x309   : > { %v3668_v1 = vpop.permute.xlu0 %3667  ;;  %v3654_v5 = vsel %vm2437_vm7, %v3649_v49, %v3653_v34  ;;  %v3830_v15 = vsel %vm1063_vm4, %v7323_v61, %v2645_v54 }
 0x30a   : > { %3681 = vrot.lane.b32.xlu1 %v3630_v52, %s6075_s21  ;;  %v3130_v62 = vsel %vm2437_vm7, %v3125_v58, %v3129_v47  ;;  %v3777_v59 = vrot.slane %v5174_v46, 1  ;;  %v3782_v9 = vsel %vm2710_vm6, %v3780_v39, %v3781_v2  ;;  %v3862_v13 = vsel %vm474_vm1, %v3830_v15, %v7814_v60 }
 0x30b   : > { %3299 = vrot.lane.b32.xlu0 %v3267_v23, %s6072_s18 }
 0x30c   : > { %v3398_v28 = vpop.permute.xlu1 %3397 }
 0x30d   : > { %v3400_v50 = vpop.permute.xlu0 %3399 }
 0x30e   : > { %2660 = vrot.lane.b32.xlu1 %v2629_v16, %s6070_s29  ;;  %v3832_v16 = vsel %vm1063_vm4, %v7319_v24, %v7854_v32 }
 0x30f   : > { %3683 = vrot.lane.b32.xlu0 %v3642_v0, %s6075_s21 }
 0x310   : > { %v7920_v22 = vpop.permute.xlu1 %3289 }
 0x311   : > { %v3156_v10 = vpop.permute.xlu0 %3155 }
 0x312   : > { %v3926_v57 = vsel %vm3912_vm15, %v3893_v27, %v3156_v10  ;;  %3685 = vrot.lane.b32.xlu1 %v3654_v5, %s6075_s21 }
 0x313   : > { %v3959_v38 = vsel %vm3945_vm0, %v3926_v57, %v3284_v42  ;;  %3171 = vrot.lane.b32.xlu0 %v3130_v62, %s6074_s20  ;;  %s8073_s20 = scalar_lea.vmem %s8282_s10, %s5263_s17 }
 0x314   : > { %v3992_v11 = vsel %vm3978_vm2, %v3959_v38, %v7785_v14  ;;  %v2778_v33 = vpop.permute.xlu1 %2777  ;;  %v3779_v14 = vsel %vm2710_vm6, %v3777_v59, %v3778_v41 }
 0x315   : > { %v2888_v52 = vpop.permute.xlu0 %2887  ;;  %v4025_v23 = vsel %vm4011_vm5, %v3992_v11, %v3668_v1  ;;  %v3895_v1 = vsel %vm3879_vm14, %v3862_v13, %v7744_v20 }
 0x316   : > { %v4058_v42 = vsel %vm4044_vm8, %v4025_v23, %v7840_v7  ;;  %3813 = vrot.lane.b32.xlu1 %v3782_v9, %s6073_s19  ;;  %v3928_v7 = vsel %vm3912_vm15, %v3895_v1, %v7836_v63 }
 0x317   : > { %5468 = vmatprep.mubr.msk.bf16.mxu0 %vm4097_vm9, %v4058_v42  ;;  %3811 = vrot.lane.b32.xlu0 %v3779_v14, %s6073_s19  ;;  %v3961_v44 = vsel %vm3945_vm0, %v3928_v7, %v7803_v56  ;;  %v3864_v56 = vsel %vm474_vm1, %v3832_v16, %v7856_v26 }
 0x318   : > { %v3162_v43 = vpop.permute.xlu1 %3161  ;;  %v3994_v4 = vsel %vm3978_vm2, %v3961_v44, %v3398_v28  ;;  %v3897_v28 = vsel %vm3879_vm14, %v3864_v56, %v2888_v52 }
 0x319   : > { %v3800_v6 = vpop.permute.xlu0 %3799 }
 0x31c   : > { %v2651_v61 = vpop.permute.xlu1 %2650 }
 0x31d   : > { %v2780_v54 = vpop.permute.xlu0 %2779  ;;  %v3836_v14 = vsel %vm1063_vm4, %v7446_v17, %v2651_v61 }
 0x31e   : > { %v3868_v13 = vsel %vm474_vm1, %v3836_v14, %v2780_v54 }
 0x320   : > { %v7946_v3 = vpop.permute.xlu1 %2893 }
 0x321   : > { %v3798_v51 = vpop.permute.xlu0 %3797 }
 0x324   : > { %v3670_v37 = vpop.permute.xlu1 %3669 }
 0x325   : > { %v3288_v60 = vpop.permute.xlu0 %3287  ;;  %v4027_v31 = vsel %vm4011_vm5, %v3994_v4, %v3670_v37 }
 0x326   : > { %v4060_v30 = vsel %vm4044_vm8, %v4027_v31, %v3798_v51 }
 0x327   : > { %5469 = vmatmul.mubr.msk.bf16.gmra.mxu0 %vm4097_vm9, %v4060_v30 }
 0x328   : > { %v2649_v20 = vpop.permute.xlu1 %2648 }
 0x329   : > { %v3672_v49 = vpop.permute.xlu0 %3671  ;;  %v3834_v24 = vsel %vm1063_vm4, %v7493_v18, %v2649_v20 }
 0x32a   : > { %v3866_v26 = vsel %vm474_vm1, %v3834_v24, %v2778_v33 }
 0x32b   : > { %v3899_v10 = vsel %vm3879_vm14, %v3866_v26, %v7870_v53 }
 0x32c   : > { %v3402_v34 = vpop.permute.xlu1 %3401  ;;  %v3932_v38 = vsel %vm3912_vm15, %v3899_v10, %v3162_v43 }
 0x32d   : > { %v3404_v63 = vpop.permute.xlu0 %3403  ;;  %v3965_v18 = vsel %vm3945_vm0, %v3932_v38, %v7920_v22 }
 0x32e   : > { %v3998_v41 = vsel %vm3978_vm2, %v3965_v18, %v3402_v34 }
 0x330   : > { %v3294_v46 = vpop.permute.xlu1 %3293 }
 0x331   : > { %v3160_v36 = vpop.permute.xlu0 %3159 }
 0x332   : > { %v3930_v0 = vsel %vm3912_vm15, %v3897_v28, %v3160_v36 }
 0x333   : > { %v3963_v58 = vsel %vm3945_vm0, %v3930_v0, %v3288_v60 }
 0x334   : > { %v3996_v47 = vsel %vm3978_vm2, %v3963_v58, %v3400_v50  ;;  %v2782_v39 = vpop.permute.xlu1 %2781 }
 0x335   : > { %v2892_v40 = vpop.permute.xlu0 %2891  ;;  %v4029_v5 = vsel %vm4011_vm5, %v3996_v47, %v3672_v49 }
 0x336   : > { %v4062_v32 = vsel %vm4044_vm8, %v4029_v5, %v3800_v6  ;;  %v3901_v22 = vsel %vm3879_vm14, %v3868_v13, %v2892_v40 }
 0x337   : > { %5472 = vmatprep.mubr.msk.bf16.mxu0 %vm4097_vm9, %v4062_v32 }
 0x338   : > { %v3166_v2 = vpop.permute.xlu1 %3165 }
 0x339   : > { %v3804_v27 = vpop.permute.xlu0 %3803 }
 0x33c   : > { %v2655_v57 = vpop.permute.xlu1 %2654 }
 0x33d   : > { %v2784_v50 = vpop.permute.xlu0 %2783 }
 0x340   : > { %v2898_v62 = vpop.permute.xlu1 %2897 }
 0x341   : > { %v3802_v59 = vpop.permute.xlu0 %3801 }
 0x344   : > { %v3674_v11 = vpop.permute.xlu1 %3673 }
 0x345   : > { %v3292_v9 = vpop.permute.xlu0 %3291  ;;  %v4031_v33 = vsel %vm4011_vm5, %v3998_v41, %v3674_v11 }
 0x346   : > { %v4064_v52 = vsel %vm4044_vm8, %v4031_v33, %v3802_v59 }
 0x347   : > { %5473 = vmatmul.mubr.msk.bf16.gmra.mxu0 %vm4097_vm9, %v4064_v52 }
 0x348   : > { %v2653_v53 = vpop.permute.xlu1 %2652 }
 0x349   : > { %v3676_v23 = vpop.permute.xlu0 %3675  ;;  %v3838_v60 = vsel %vm1063_vm4, %v7623_v45, %v2653_v53 }
 0x34a   : > { %v3870_v61 = vsel %vm474_vm1, %v3838_v60, %v2782_v39 }
 0x34b   : > { %v3903_v30 = vsel %vm3879_vm14, %v3870_v61, %v7946_v3  ;;  %v8040_v61 = vld [vmem:[%s8281_s9] ss:$0 sm:$0xff] }
 0x34c   : > { %v3406_v15 = vpop.permute.xlu1 %3405  ;;  %v3936_v34 = vsel %vm3912_vm15, %v3903_v30, %v3166_v2 }
 0x34d   : > { %v3408_v42 = vpop.permute.xlu0 %3407  ;;  %v3969_v56 = vsel %vm3945_vm0, %v3936_v34, %v3294_v46  ;;  %v3840_v46 = vsel %vm1063_vm4, %v7584_v8, %v2655_v57 }
 0x34e   : > { %v4002_v45 = vsel %vm3978_vm2, %v3969_v56, %v3406_v15  ;;  %v3872_v24 = vsel %vm474_vm1, %v3840_v46, %v2784_v50 }
 0x350   : > { %v3298_v43 = vpop.permute.xlu1 %3297 }
 0x351   : > { %v3164_v6 = vpop.permute.xlu0 %3163 }
 0x352   : > { %v3934_v1 = vsel %vm3912_vm15, %v3901_v22, %v3164_v6 }
 0x353   : > { %v3967_v7 = vsel %vm3945_vm0, %v3934_v1, %v3292_v9 }
 0x354   : > { %v4000_v51 = vsel %vm3978_vm2, %v3967_v7, %v3404_v63  ;;  %v2786_v44 = vpop.permute.xlu1 %2785 }
 0x355   : > { %v2896_v4 = vpop.permute.xlu0 %2895  ;;  %v4033_v37 = vsel %vm4011_vm5, %v4000_v51, %v3676_v23 }
 0x356   : > { %v4066_v17 = vsel %vm4044_vm8, %v4033_v37, %v3804_v27  ;;  %v3905_v2 = vsel %vm3879_vm14, %v3872_v24, %v2896_v4 }
 0x357   : > { %5476 = vmatprep.mubr.msk.bf16.mxu0 %vm4097_vm9, %v4066_v17 }
 0x358   : > { %v3170_v54 = vpop.permute.xlu1 %3169 }
 0x359   : > { %v3808_v31 = vpop.permute.xlu0 %3807 }
 0x35c   : > { %v2659_v20 = vpop.permute.xlu1 %2658 }
 0x35d   : > { %v2788_v49 = vpop.permute.xlu0 %2787 }
 0x360   : > { %v2902_v63 = vpop.permute.xlu1 %2901 }
 0x361   : > { %v3806_v16 = vpop.permute.xlu0 %3805 }
 0x364   : > { %v3678_v28 = vpop.permute.xlu1 %3677 }
 0x365   : > { %v3296_v36 = vpop.permute.xlu0 %3295  ;;  %v4035_v0 = vsel %vm4011_vm5, %v4002_v45, %v3678_v28 }
 0x366   : > { %v4068_v58 = vsel %vm4044_vm8, %v4035_v0, %v3806_v16 }
 0x367   : > { %5477 = vmatmul.mubr.msk.bf16.gmra.mxu0 %vm4097_vm9, %v4068_v58 }
 0x368   : > { %v2657_v47 = vpop.permute.xlu1 %2656 }
 0x369   : > { %v3680_v3 = vpop.permute.xlu0 %3679  ;;  %v3842_v40 = vsel %vm1063_vm4, %v7757_v55, %v2657_v47 }
 0x36a   : > { %v3874_v32 = vsel %vm474_vm1, %v3842_v40, %v2786_v44 }
 0x36b   : > { %v3907_v38 = vsel %vm3879_vm14, %v3874_v32, %v2898_v62 }
 0x36c   : > { %v3410_v39 = vpop.permute.xlu1 %3409  ;;  %v3940_v57 = vsel %vm3912_vm15, %v3907_v38, %v3170_v54 }
 0x36d   : > { %v3412_v5 = vpop.permute.xlu0 %3411  ;;  %v3973_v9 = vsel %vm3945_vm0, %v3940_v57, %v3298_v43  ;;  %v3844_v43 = vsel %vm1063_vm4, %v7716_v48, %v2659_v20 }
 0x36e   : > { %v4006_v62 = vsel %vm3978_vm2, %v3973_v9, %v3410_v39  ;;  %v3876_v1 = vsel %vm474_vm1, %v3844_v43, %v2788_v49 }
 0x370   : > { %v3302_v26 = vpop.permute.xlu1 %3301 }
 0x371   : > { %v3168_v27 = vpop.permute.xlu0 %3167 }
 0x372   : > { %v3938_v10 = vsel %vm3912_vm15, %v3905_v2, %v3168_v27 }
 0x373   : > { %v3971_v59 = vsel %vm3945_vm0, %v3938_v10, %v3296_v36 }
 0x374   : > { %v4004_v55 = vsel %vm3978_vm2, %v3971_v59, %v3408_v42  ;;  %v2790_v18 = vpop.permute.xlu1 %2789 }
 0x375   : > { %v2900_v41 = vpop.permute.xlu0 %2899  ;;  %v4037_v8 = vsel %vm4011_vm5, %v4004_v55, %v3680_v3 }
 0x376   : > { %v4070_v50 = vsel %vm4044_vm8, %v4037_v8, %v3808_v31  ;;  %v3909_v44 = vsel %vm3879_vm14, %v3876_v1, %v2900_v41 }
 0x377   : > { %5480 = vmatprep.mubr.msk.bf16.mxu0 %vm4097_vm9, %v4070_v50 }
 0x378   : > { %v3174_v11 = vpop.permute.xlu1 %3173 }
 0x379   : > { %v3810_v33 = vpop.permute.xlu0 %3809 }
 0x37c   : > { %v3682_v52 = vpop.permute.xlu1 %3681 }
 0x37d   : > { %v4039_v53 = vsel %vm4011_vm5, %v4006_v62, %v3682_v52  ;;  %v3300_v23 = vpop.permute.xlu0 %3299 }
 0x37e   : > { %v4072_v15 = vsel %vm4044_vm8, %v4039_v53, %v3810_v33  ;;  %v4598_v33 = vunpack.c.l.bf16 %v6426_v29 }
 0x37f   : > { %5481 = vmatmul.mubr.msk.bf16.gmra.mxu0 %vm4097_vm9, %v4072_v15 }
 0x380   : > { %v2661_v42 = vpop.permute.xlu1 %2660 }
 0x381   : > { %v3846_v14 = vsel %vm1063_vm4, %v7861_v35, %v2661_v42  ;;  %v3684_v13 = vpop.permute.xlu0 %3683  ;;  %v8032_v35 = vld [vmem:[%s8280_s8] ss:$0 sm:$0xff] }
 0x382   : > { %v3878_v22 = vsel %vm474_vm1, %v3846_v14, %v2790_v18  ;;  %v4596_v14 = vunpack.c.l.bf16 %v6420_v25 }
 0x383   : > { %v3911_v6 = vsel %vm3879_vm14, %v3878_v22, %v2902_v63 }
 0x384   : > { %v3944_v7 = vsel %vm3912_vm15, %v3911_v6, %v3174_v11  ;;  %v3686_v51 = vpop.permute.xlu1 %3685 }
 0x385   : > { %v3977_v4 = vsel %vm3945_vm0, %v3944_v7, %v3302_v26  ;;  %v3172_v37 = vpop.permute.xlu0 %3171  ;;  %v4599_v7 = vunpack.c.h.bf16 %v6426_v29 }
 0x386   : > { %v4010_v48 = vsel %vm3978_vm2, %v3977_v4, %v7304_v19  ;;  %v3942_v60 = vsel %vm3912_vm15, %v3909_v44, %v3172_v37 }
 0x387   : > { %v5458_v17 = vpop.f32.mrf.mxu0  ;;  %v3975_v54 = vsel %vm3945_vm0, %v3942_v60, %v3300_v23  ;;  %v4043_v31 = vsel %vm4011_vm5, %v4010_v48, %v3686_v51 }
 0x388   : > { %v4303_v30 = vmul.f32 %v5458_v17, %v8032_v35  ;;  %v3814_v20 = vpop.permute.xlu1 %3813  ;;  %v4008_v49 = vsel %vm3978_vm2, %v3975_v54, %v3412_v5 }
 0x389   : > { %v4167_v34 = vpop.f32.mrf.mxu0  ;;  %v4041_v19 = vsel %vm4011_vm5, %v4008_v49, %v3684_v13  ;;  %v3812_v63 = vpop.permute.xlu0 %3811  ;;  %v4076_v28 = vsel %vm4044_vm8, %v4043_v31, %v3814_v20  ;;  %v4597_v20 = vunpack.c.h.bf16 %v6420_v25 }
 0x38a   : > { %v4342_v16 = vadd.f32 %v8040_v61, %v4303_v30  ;;  %v4301_v56 = vmul.f32 %v8032_v35, %v4167_v34  ;;  %v4074_v45 = vsel %vm4044_vm8, %v4041_v19, %v3812_v63 }
 0x38b   : > { %v5459_v36 = vpop.f32.mrf.mxu0  ;;  %5484 = vmatprep.mubr.msk.bf16.mxu0 %vm4097_vm9, %v4074_v45 }
 0x38c   : > { %v5199_v0 = vmul.f32 -1.442695, %v4342_v16  ;;  %v4340_v58 = vadd.f32 %v8040_v61, %v4301_v56  ;;  %v4304_v47 = vmul.f32 %v5459_v36, %v8032_v35  ;;  %5485 = vmatmul.mubr.msk.bf16.gmra.mxu0 %vm4097_vm9, %v4076_v28 }
 0x38d   : > { %v4170_v3 = vpop.f32.mrf.mxu0 }
 0x38e   : > { %5928 = vpow2.f32 %v5199_v0  ;;  %v5197_v39 = vmul.f32 -1.442695, %v4340_v58  ;;  %v4343_v40 = vadd.f32 %v8040_v61, %v4304_v47  ;;  %v4302_v5 = vmul.f32 %v8032_v35, %v4170_v3 }
 0x390   : > { %5930 = vpow2.f32 %v5197_v39  ;;  %v5200_v46 = vmul.f32 -1.442695, %v4343_v40  ;;  %v4341_v24 = vadd.f32 %v8040_v61, %v4302_v5 }
 0x392   : > { %5932 = vpow2.f32 %v5200_v46  ;;  %v5198_v32 = vmul.f32 -1.442695, %v4341_v24 }
 0x394   : > { %5934 = vpow2.f32 %v5198_v32 }
 0x39b   : > { %v5929_v26 = vpop.eup %5928 }
 0x39c   : > { %v4470_v2 = vadd.f32 1.0, %v5929_v26 }
 0x39d   : > { %v5931_v27 = vpop.eup %5930 }
 0x39e   : > { %5936 = vrcp.f32 %v4470_v2  ;;  %v4468_v10 = vadd.f32 1.0, %v5931_v27 }
 0x39f   : > { %v5933_v38 = vpop.eup %5932 }
 0x3a0   : > { %5938 = vrcp.f32 %v4468_v10  ;;  %v4471_v59 = vadd.f32 1.0, %v5933_v38 }
 0x3a1   : > { %v5935_v55 = vpop.eup %5934 }
 0x3a2   : > { %5940 = vrcp.f32 %v4471_v59  ;;  %v4469_v18 = vadd.f32 1.0, %v5935_v55  ;;  %v4600_v59 = vunpack.c.l.bf16 %v6458_v21 }
 0x3a4   : > { %5942 = vrcp.f32 %v4469_v18 }
 0x3a7   : > { %v5462_v41 = vpop.f32.mrf.mxu0 }
 0x3a8   : > { %v4307_v8 = vmul.f32 %v5462_v41, %v8032_v35 }
 0x3a9   : > { %v4183_v57 = vpop.f32.mrf.mxu0 }
 0x3aa   : > { %v4346_v50 = vadd.f32 %v8040_v61, %v4307_v8  ;;  %v4305_v11 = vmul.f32 %v8032_v35, %v4183_v57 }
 0x3ab   : > { %v5937_v9 = vpop.eup %5936  ;;  %v5463_v62 = vpop.f32.mrf.mxu0 }
 0x3ac   : > { %v4566_v52 = vmul.f32 %v5937_v9, %v4342_v16  ;;  %v5203_v53 = vmul.f32 -1.442695, %v4346_v50  ;;  %v8063_v23 = vadd.f32 %v8040_v61, %v4305_v11  ;;  %v4308_v15 = vmul.f32 %v5463_v62, %v8032_v35 }
 0x3ad   : > { %v5939_v42 = vpop.eup %5938  ;;  %v4186_v13 = vpop.f32.mrf.mxu0 }
 0x3ae   : > { %v4630_v22 = vadd.f32 %v4598_v33, %v4566_v52  ;;  %v4564_v43 = vmul.f32 %v5939_v42, %v4340_v58  ;;  %5944 = vpow2.f32 %v5203_v53  ;;  %v5201_v6 = vmul.f32 -1.442695, %v8063_v23 }
 0x3af   : > { %v5941_v1 = vpop.eup %5940  ;;  %v4347_v51 = vadd.f32 %v8040_v61, %v4308_v15  ;;  %v4306_v44 = vmul.f32 %v8032_v35, %v4186_v13  ;;  %v4603_v52 = vunpack.c.h.bf16 %v6464_v12 }
 0x3b0   : > { %v5299_v4 = vpack.c.bf16 %v4630_v22, %v4630_v22  ;;  %v4628_v37 = vadd.f32 %v4596_v14, %v4564_v43  ;;  %v4567_v48 = vmul.f32 %v5941_v1, %v4343_v40  ;;  %5946 = vpow2.f32 %v5201_v6 }
 0x3b1   : > { %v5943_v60 = vpop.eup %5942  ;;  %v5204_v17 = vmul.f32 -1.442695, %v4347_v51  ;;  %v4345_v54 = vadd.f32 %v8040_v61, %v4306_v44  ;;  %v4601_v14 = vunpack.c.h.bf16 %v6458_v21 }
 0x3b2   : > { %4790 = vst.msk [vmem:[%s8073_s20 + $0x8] sm:$0xf] %vm1006_vm3, %v5299_v4  ;;  %v5297_v31 = vpack.c.bf16 %v4628_v37, %v4628_v37  ;;  %v4631_v30 = vadd.f32 %v4599_v7, %v4567_v48  ;;  %v4565_v29 = vmul.f32 %v5943_v60, %v4341_v24  ;;  %v4602_v24 = vunpack.c.l.bf16 %v6464_v12 }
 0x3b3   : > { %5948 = vpow2.f32 %v5204_v17  ;;  %v5202_v49 = vmul.f32 -1.442695, %v4345_v54 }
 0x3b4   : > { %4788 = vst.msk [vmem:[%s8073_s20] sm:$0xf] %vm1006_vm3, %v5297_v31  ;;  %v5300_v34 = vpack.c.bf16 %v4631_v30, %v4631_v30  ;;  %v4629_v19 = vadd.f32 %v4597_v20, %v4565_v29 }
 0x3b5   : > { %5950 = vpow2.f32 %v5202_v49  ;;  %v8335_v49 = vld [vmem:[#allocation4_spill] sm:$0xff] }
 0x3b6   : > { %4791 = vst.msk [vmem:[%s8073_s20 + $0xc] sm:$0xf] %vm1006_vm3, %v5300_v34  ;;  %v5298_v63 = vpack.c.bf16 %v4629_v19, %v4629_v19  ;;  %v4606_v34 = vunpack.c.l.bf16 %v8335_v49 }
 0x3b8   : > { %4789 = vst.msk [vmem:[%s8073_s20 + $0x4] sm:$0xf] %vm1006_vm3, %v5298_v63 }
 0x3bb   : > { %v5945_v16 = vpop.eup %5944 }
 0x3bc   : > { %v4474_v56 = vadd.f32 1.0, %v5945_v16 }
 0x3bd   : > { %v5947_v45 = vpop.eup %5946 }
 0x3be   : > { %5952 = vrcp.f32 %v4474_v56  ;;  %v4472_v28 = vadd.f32 1.0, %v5947_v45 }
 0x3c0   : > { %v5949_v36 = vpop.eup %5948  ;;  %5954 = vrcp.f32 %v4472_v28 }
 0x3c1   : > { %v4475_v25 = vadd.f32 1.0, %v5949_v36  ;;  %v8336_v36 = vld [vmem:[#allocation3_spill] sm:$0xff] }
 0x3c2   : > { %v5951_v0 = vpop.eup %5950 }
 0x3c3   : > { %5956 = vrcp.f32 %v4475_v25  ;;  %v4473_v58 = vadd.f32 1.0, %v5951_v0  ;;  %v4604_v25 = vunpack.c.l.bf16 %v8336_v36 }
 0x3c5   : > { %5958 = vrcp.f32 %v4473_v58 }
 0x3c7   : > { %v5466_v47 = vpop.f32.mrf.mxu0 }
 0x3c8   : > { %v4311_v3 = vmul.f32 %v5466_v47, %v8032_v35 }
 0x3c9   : > { %v4199_v39 = vpop.f32.mrf.mxu0 }
 0x3ca   : > { %v4350_v40 = vadd.f32 %v8040_v61, %v4311_v3  ;;  %v4309_v5 = vmul.f32 %v8032_v35, %v4199_v39 }
 0x3cb   : > { %v5953_v46 = vpop.eup %5952  ;;  %v5467_v32 = vpop.f32.mrf.mxu0 }
 0x3cc   : > { %v4570_v26 = vmul.f32 %v5953_v46, %v4346_v50  ;;  %v5207_v2 = vmul.f32 -1.442695, %v4350_v40  ;;  %v4348_v27 = vadd.f32 %v8040_v61, %v4309_v5  ;;  %v4312_v10 = vmul.f32 %v5467_v32, %v8032_v35 }
 0x3cd   : > { %v5955_v38 = vpop.eup %5954  ;;  %v4202_v55 = vpop.f32.mrf.mxu0 }
 0x3ce   : > { %v4634_v18 = vadd.f32 %v4602_v24, %v4570_v26  ;;  %v4568_v41 = vmul.f32 %v5955_v38, %v8063_v23  ;;  %5960 = vpow2.f32 %v5207_v2  ;;  %v5205_v8 = vmul.f32 -1.442695, %v4348_v27 }
 0x3cf   : > { %v4351_v57 = vadd.f32 %v8040_v61, %v4312_v10  ;;  %v4310_v11 = vmul.f32 %v8032_v35, %v4202_v55  ;;  %v4607_v26 = vunpack.c.h.bf16 %v8335_v49 }
 0x3d0   : > { %v5957_v50 = vpop.eup %5956  ;;  %v5303_v9 = vpack.c.bf16 %v4634_v18, %v4634_v18  ;;  %v4632_v33 = vadd.f32 %v4600_v59, %v4568_v41  ;;  %5962 = vpow2.f32 %v5205_v8  ;;  %v4605_v59 = vunpack.c.h.bf16 %v8336_v36 }
 0x3d1   : > { %v4571_v62 = vmul.f32 %v5957_v50, %v4347_v51  ;;  %v5208_v53 = vmul.f32 -1.442695, %v4351_v57  ;;  %v4349_v15 = vadd.f32 %v8040_v61, %v4310_v11 }
 0x3d2   : > { %v5959_v23 = vpop.eup %5958  ;;  %4794 = vst.msk [vmem:[%s8073_s20 + $0x18] sm:$0xf] %vm1006_vm3, %v5303_v9  ;;  %v5301_v42 = vpack.c.bf16 %v4632_v33, %v4632_v33 }
 0x3d3   : > { %v4635_v13 = vadd.f32 %v4603_v52, %v4571_v62  ;;  %v4569_v22 = vmul.f32 %v5959_v23, %v4345_v54  ;;  %5964 = vpow2.f32 %v5208_v53  ;;  %v5206_v43 = vmul.f32 -1.442695, %v4349_v15 }
 0x3d4   : > { %4792 = vst.msk [vmem:[%s8073_s20 + $0x10] sm:$0xf] %vm1006_vm3, %v5301_v42 }
 0x3d5   : > { %v5304_v6 = vpack.c.bf16 %v4635_v13, %v4635_v13  ;;  %v4633_v1 = vadd.f32 %v4601_v14, %v4569_v22  ;;  %5966 = vpow2.f32 %v5206_v43 }
 0x3d7   : > { %4795 = vst.msk [vmem:[%s8073_s20 + $0x1c] sm:$0xf] %vm1006_vm3, %v5304_v6  ;;  %v5302_v12 = vpack.c.bf16 %v4633_v1, %v4633_v1  ;;  %v8337_v1 = vld [vmem:[#allocation5_spill] sm:$0xff] }
 0x3d9   : > { %4793 = vst.msk [vmem:[%s8073_s20 + $0x14] sm:$0xf] %vm1006_vm3, %v5302_v12  ;;  %v4610_v12 = vunpack.c.l.bf16 %v8337_v1 }
 0x3db   : > { %v5961_v7 = vpop.eup %5960 }
 0x3dc   : > { %v4478_v51 = vadd.f32 1.0, %v5961_v7 }
 0x3dd   : > { %v5963_v44 = vpop.eup %5962 }
 0x3de   : > { %5968 = vrcp.f32 %v4478_v51  ;;  %v4476_v4 = vadd.f32 1.0, %v5963_v44 }
 0x3e0   : > { %v5965_v21 = vpop.eup %5964  ;;  %5970 = vrcp.f32 %v4476_v4 }
 0x3e1   : > { %v4479_v37 = vadd.f32 1.0, %v5965_v21 }
 0x3e2   : > { %v5967_v48 = vpop.eup %5966 }
 0x3e3   : > { %5972 = vrcp.f32 %v4479_v37  ;;  %v4477_v60 = vadd.f32 1.0, %v5967_v48  ;;  %v8338_v48 = vld [vmem:[#allocation6_spill] sm:$0xff] }
 0x3e5   : > { %5974 = vrcp.f32 %v4477_v60  ;;  %v4608_v60 = vunpack.c.l.bf16 %v8338_v48 }
 0x3e7   : > { %v5470_v17 = vpop.f32.mrf.mxu0 }
 0x3e8   : > { %v4315_v54 = vmul.f32 %v5470_v17, %v8032_v35 }
 0x3e9   : > { %v4215_v31 = vpop.f32.mrf.mxu0 }
 0x3ea   : > { %v4354_v30 = vadd.f32 %v8040_v61, %v4315_v54  ;;  %v4313_v29 = vmul.f32 %v8032_v35, %v4215_v31 }
 0x3eb   : > { %v5969_v20 = vpop.eup %5968  ;;  %v5471_v19 = vpop.f32.mrf.mxu0 }
 0x3ec   : > { %v4574_v63 = vmul.f32 %v5969_v20, %v4350_v40  ;;  %v5211_v16 = vmul.f32 -1.442695, %v4354_v30  ;;  %v4352_v56 = vadd.f32 %v8040_v61, %v4313_v29  ;;  %v4316_v45 = vmul.f32 %v5471_v19, %v8032_v35 }
 0x3ed   : > { %v5971_v28 = vpop.eup %5970  ;;  %v4218_v0 = vpop.f32.mrf.mxu0 }
 0x3ee   : > { %v4638_v58 = vadd.f32 %v4606_v34, %v4574_v63  ;;  %v4572_v47 = vmul.f32 %v5971_v28, %v4348_v27  ;;  %5976 = vpow2.f32 %v5211_v16  ;;  %v5209_v3 = vmul.f32 -1.442695, %v4352_v56 }
 0x3ef   : > { %v4355_v39 = vadd.f32 %v8040_v61, %v4316_v45  ;;  %v4314_v5 = vmul.f32 %v8032_v35, %v4218_v0  ;;  %v4611_v16 = vunpack.c.h.bf16 %v8337_v1 }
 0x3f0   : > { %v5973_v46 = vpop.eup %5972  ;;  %v5307_v40 = vpack.c.bf16 %v4638_v58, %v4638_v58  ;;  %v4636_v24 = vadd.f32 %v4604_v25, %v4572_v47  ;;  %5978 = vpow2.f32 %v5209_v3  ;;  %v4609_v25 = vunpack.c.h.bf16 %v8338_v48 }
 0x3f1   : > { %v4575_v32 = vmul.f32 %v5973_v46, %v4351_v57  ;;  %v5212_v2 = vmul.f32 -1.442695, %v4355_v39  ;;  %v4353_v10 = vadd.f32 %v8040_v61, %v4314_v5 }
 0x3f2   : > { %v5975_v27 = vpop.eup %5974  ;;  %4798 = vst.msk [vmem:[%s8073_s20 + $0x28] sm:$0xf] %vm1006_vm3, %v5307_v40  ;;  %v5305_v38 = vpack.c.bf16 %v4636_v24, %v4636_v24 }
 0x3f3   : > { %v4639_v55 = vadd.f32 %v4607_v26, %v4575_v32  ;;  %v4573_v18 = vmul.f32 %v5975_v27, %v4349_v15  ;;  %5980 = vpow2.f32 %v5212_v2  ;;  %v5210_v41 = vmul.f32 -1.442695, %v4353_v10 }
 0x3f4   : > { %4796 = vst.msk [vmem:[%s8073_s20 + $0x20] sm:$0xf] %vm1006_vm3, %v5305_v38 }
 0x3f5   : > { %v5308_v8 = vpack.c.bf16 %v4639_v55, %v4639_v55  ;;  %v4637_v57 = vadd.f32 %v4605_v59, %v4573_v18  ;;  %5982 = vpow2.f32 %v5210_v41 }
 0x3f7   : > { %4799 = vst.msk [vmem:[%s8073_s20 + $0x2c] sm:$0xf] %vm1006_vm3, %v5308_v8  ;;  %v5306_v11 = vpack.c.bf16 %v4637_v57, %v4637_v57  ;;  %v8339_v57 = vld [vmem:[#allocation8_spill] sm:$0xff] }
 0x3f9   : > { %4797 = vst.msk [vmem:[%s8073_s20 + $0x24] sm:$0xf] %vm1006_vm3, %v5306_v11  ;;  %v4614_v11 = vunpack.c.l.bf16 %v8339_v57 }
 0x3fb   : > { %v5977_v50 = vpop.eup %5976 }
 0x3fc   : > { %v4482_v9 = vadd.f32 1.0, %v5977_v50 }
 0x3fd   : > { %v5979_v33 = vpop.eup %5978 }
 0x3fe   : > { %5984 = vrcp.f32 %v4482_v9  ;;  %v4480_v62 = vadd.f32 1.0, %v5979_v33 }
 0x400   : > { %v5981_v52 = vpop.eup %5980  ;;  %5986 = vrcp.f32 %v4480_v62 }
 0x401   : > { %v4483_v53 = vadd.f32 1.0, %v5981_v52 }
 0x402   : > { %v5983_v15 = vpop.eup %5982 }
 0x403   : > { %5988 = vrcp.f32 %v4483_v53  ;;  %v4481_v23 = vadd.f32 1.0, %v5983_v15  ;;  %v8340_v15 = vld [vmem:[#allocation7_spill] sm:$0xff] }
 0x405   : > { %5990 = vrcp.f32 %v4481_v23  ;;  %v4612_v23 = vunpack.c.l.bf16 %v8340_v15 }
 0x407   : > { %v5474_v42 = vpop.f32.mrf.mxu0 }
 0x408   : > { %v4319_v14 = vmul.f32 %v5474_v42, %v8032_v35 }
 0x409   : > { %v4231_v13 = vpop.f32.mrf.mxu0 }
 0x40a   : > { %v4358_v22 = vadd.f32 %v8040_v61, %v4319_v14  ;;  %v4317_v43 = vmul.f32 %v8032_v35, %v4231_v13 }
 0x40b   : > { %v5985_v6 = vpop.eup %5984  ;;  %v5475_v7 = vpop.f32.mrf.mxu0 }
 0x40c   : > { %v4578_v51 = vmul.f32 %v5985_v6, %v4354_v30  ;;  %v5215_v44 = vmul.f32 -1.442695, %v4358_v22  ;;  %v4356_v4 = vadd.f32 %v8040_v61, %v4317_v43  ;;  %v4320_v21 = vmul.f32 %v5475_v7, %v8032_v35 }
 0x40d   : > { %v5987_v37 = vpop.eup %5986  ;;  %v4234_v17 = vpop.f32.mrf.mxu0 }
 0x40e   : > { %v4642_v54 = vadd.f32 %v4610_v12, %v4578_v51  ;;  %v4576_v31 = vmul.f32 %v5987_v37, %v4352_v56  ;;  %5992 = vpow2.f32 %v5215_v44  ;;  %v5213_v29 = vmul.f32 -1.442695, %v4356_v4 }
 0x40f   : > { %v4359_v20 = vadd.f32 %v8040_v61, %v4320_v21  ;;  %v4318_v49 = vmul.f32 %v8032_v35, %v4234_v17  ;;  %v4615_v44 = vunpack.c.h.bf16 %v8339_v57 }
 0x410   : > { %v5989_v34 = vpop.eup %5988  ;;  %v5311_v30 = vpack.c.bf16 %v4642_v54, %v4642_v54  ;;  %v4640_v19 = vadd.f32 %v4608_v60, %v4576_v31  ;;  %5994 = vpow2.f32 %v5213_v29  ;;  %v4613_v60 = vunpack.c.h.bf16 %v8340_v15 }
 0x411   : > { %v4579_v63 = vmul.f32 %v5989_v34, %v4355_v39  ;;  %v5216_v45 = vmul.f32 -1.442695, %v4359_v20  ;;  %v4357_v28 = vadd.f32 %v8040_v61, %v4318_v49 }
 0x412   : > { %v5991_v56 = vpop.eup %5990  ;;  %4802 = vst.msk [vmem:[%s8073_s20 + $0x38] sm:$0xf] %vm1006_vm3, %v5311_v30  ;;  %v5309_v36 = vpack.c.bf16 %v4640_v19, %v4640_v19 }
 0x413   : > { %v4643_v0 = vadd.f32 %v4611_v16, %v4579_v63  ;;  %v4577_v58 = vmul.f32 %v5991_v56, %v4353_v10  ;;  %5996 = vpow2.f32 %v5216_v45  ;;  %v5214_v47 = vmul.f32 -1.442695, %v4357_v28 }
 0x414   : > { %4800 = vst.msk [vmem:[%s8073_s20 + $0x30] sm:$0xf] %vm1006_vm3, %v5309_v36 }
 0x415   : > { %v5312_v3 = vpack.c.bf16 %v4643_v0, %v4643_v0  ;;  %v4641_v39 = vadd.f32 %v4609_v25, %v4577_v58  ;;  %5998 = vpow2.f32 %v5214_v47 }
 0x417   : > { %4803 = vst.msk [vmem:[%s8073_s20 + $0x3c] sm:$0xf] %vm1006_vm3, %v5312_v3  ;;  %v5310_v5 = vpack.c.bf16 %v4641_v39, %v4641_v39 }
 0x419   : > { %4801 = vst.msk [vmem:[%s8073_s20 + $0x34] sm:$0xf] %vm1006_vm3, %v5310_v5 }
 0x41b   : > { %v5993_v46 = vpop.eup %5992 }
 0x41c   : > { %v4486_v40 = vadd.f32 1.0, %v5993_v46 }
 0x41d   : > { %v5995_v24 = vpop.eup %5994 }
 0x41e   : > { %6000 = vrcp.f32 %v4486_v40  ;;  %v4484_v32 = vadd.f32 1.0, %v5995_v24 }
 0x420   : > { %v5997_v26 = vpop.eup %5996  ;;  %6002 = vrcp.f32 %v4484_v32 }
 0x421   : > { %v4487_v2 = vadd.f32 1.0, %v5997_v26 }
 0x422   : > { %v5999_v10 = vpop.eup %5998 }
 0x423   : > { %6004 = vrcp.f32 %v4487_v2  ;;  %v4485_v27 = vadd.f32 1.0, %v5999_v10 }
 0x425   : > { %6006 = vrcp.f32 %v4485_v27 }
 0x427   : > { %v5478_v38 = vpop.f32.mrf.mxu0 }
 0x428   : > { %v4323_v59 = vmul.f32 %v5478_v38, %v8032_v35 }
 0x429   : > { %v4247_v55 = vpop.f32.mrf.mxu0 }
 0x42a   : > { %v8151_v18 = vadd.f32 %v8040_v61, %v4323_v59  ;;  %v4321_v41 = vmul.f32 %v8032_v35, %v4247_v55  ;;  %v8341_v55 = vld [vmem:[#allocation9_spill] sm:$0xff] }
 0x42b   : > { %v6001_v8 = vpop.eup %6000  ;;  %v5479_v50 = vpop.f32.mrf.mxu0 }
 0x42c   : > { %v4582_v9 = vmul.f32 %v6001_v8, %v4358_v22  ;;  %v5219_v33 = vmul.f32 -1.442695, %v8151_v18  ;;  %v8157_v62 = vadd.f32 %v8040_v61, %v4321_v41  ;;  %v4324_v52 = vmul.f32 %v5479_v50, %v8032_v35 }
 0x42d   : > { %v6003_v53 = vpop.eup %6002  ;;  %v4250_v42 = vpop.f32.mrf.mxu0  ;;  %v4618_v41 = vunpack.c.l.bf16 %v8341_v55 }
 0x42e   : > { %v4646_v14 = vadd.f32 %v4614_v11, %v4582_v9  ;;  %v4580_v13 = vmul.f32 %v6003_v53, %v4356_v4  ;;  %6008 = vpow2.f32 %v5219_v33  ;;  %v5217_v43 = vmul.f32 -1.442695, %v8157_v62  ;;  %v8342_v33 = vld [vmem:[#allocation10_spill] sm:$0xff] }
 0x42f   : > { %v8163_v6 = vadd.f32 %v8040_v61, %v4324_v52  ;;  %v4322_v22 = vmul.f32 %v8032_v35, %v4250_v42  ;;  %v4616_v52 = vunpack.c.l.bf16 %v8342_v33 }
 0x430   : > { %v6005_v1 = vpop.eup %6004  ;;  %v5315_v12 = vpack.c.bf16 %v4646_v14, %v4646_v14  ;;  %v4644_v7 = vadd.f32 %v4612_v23, %v4580_v13  ;;  %6010 = vpow2.f32 %v5217_v43  ;;  %v4619_v13 = vunpack.c.h.bf16 %v8341_v55 }
 0x431   : > { %v4583_v51 = vmul.f32 %v6005_v1, %v4359_v20  ;;  %v5220_v21 = vmul.f32 -1.442695, %v8163_v6  ;;  %v8169_v4 = vadd.f32 %v8040_v61, %v4322_v22 }
 0x432   : > { %v6007_v37 = vpop.eup %6006  ;;  %4806 = vst.msk [vmem:[%s8073_s20 + $0x48] sm:$0xf] %vm1006_vm3, %v5315_v12  ;;  %v5313_v48 = vpack.c.bf16 %v4644_v7, %v4644_v7 }
 0x433   : > { %v4647_v17 = vadd.f32 %v4615_v44, %v4583_v51  ;;  %v4581_v54 = vmul.f32 %v6007_v37, %v4357_v28  ;;  %6012 = vpow2.f32 %v5220_v21  ;;  %v5218_v31 = vmul.f32 -1.442695, %v8169_v4 }
 0x434   : > { %4804 = vst.msk [vmem:[%s8073_s20 + $0x40] sm:$0xf] %vm1006_vm3, %v5313_v48  ;;  %v4617_v44 = vunpack.c.h.bf16 %v8342_v33 }
 0x435   : > { %v5316_v29 = vpack.c.bf16 %v4647_v17, %v4647_v17  ;;  %v4645_v20 = vadd.f32 %v4613_v60, %v4581_v54  ;;  %6014 = vpow2.f32 %v5218_v31 }
 0x437   : > { %4807 = vst.msk [vmem:[%s8073_s20 + $0x4c] sm:$0xf] %vm1006_vm3, %v5316_v29  ;;  %v5314_v49 = vpack.c.bf16 %v4645_v20, %v4645_v20 }
 0x439   : > { %4805 = vst.msk [vmem:[%s8073_s20 + $0x44] sm:$0xf] %vm1006_vm3, %v5314_v49 }
 0x43b   : > { %v6009_v34 = vpop.eup %6008 }
 0x43c   : > { %v4490_v30 = vadd.f32 1.0, %v6009_v34 }
 0x43d   : > { %v6011_v19 = vpop.eup %6010 }
 0x43e   : > { %6016 = vrcp.f32 %v4490_v30  ;;  %v4488_v63 = vadd.f32 1.0, %v6011_v19 }
 0x43f   : > { %v5482_v16 = vpop.f32.mrf.mxu0 }
 0x440   : > { %v6013_v45 = vpop.eup %6012  ;;  %6018 = vrcp.f32 %v4488_v63  ;;  %v4327_v28 = vmul.f32 %v5482_v16, %v8032_v35 }
 0x441   : > { %v4491_v56 = vadd.f32 1.0, %v6013_v45  ;;  %v4263_v36 = vpop.f32.mrf.mxu0 }
 0x442   : > { %v6015_v25 = vpop.eup %6014  ;;  %v8183_v0 = vadd.f32 %v8040_v61, %v4327_v28  ;;  %v4325_v58 = vmul.f32 %v8032_v35, %v4263_v36 }
 0x443   : > { %6020 = vrcp.f32 %v4491_v56  ;;  %v4489_v47 = vadd.f32 1.0, %v6015_v25  ;;  %v5483_v3 = vpop.f32.mrf.mxu0 }
 0x444   : > { %v5223_v39 = vmul.f32 -1.442695, %v8183_v0  ;;  %v8188_v5 = vadd.f32 %v8040_v61, %v4325_v58  ;;  %v4328_v46 = vmul.f32 %v5483_v3, %v8032_v35  ;;  %v8343_v3 = vld [vmem:[#allocation12_spill] sm:$0xff] }
 0x445   : > { %6022 = vrcp.f32 %v4489_v47  ;;  %v4266_v40 = vpop.f32.mrf.mxu0 }
 0x446   : > { %6024 = vpow2.f32 %v5223_v39  ;;  %v5221_v24 = vmul.f32 -1.442695, %v8188_v5  ;;  %v8193_v32 = vadd.f32 %v8040_v61, %v4328_v46  ;;  %v4326_v26 = vmul.f32 %v8032_v35, %v4266_v40 }
 0x447   : > { %v4622_v39 = vunpack.c.l.bf16 %v8343_v3 }
 0x448   : > { %6026 = vpow2.f32 %v5221_v24  ;;  %v5224_v2 = vmul.f32 -1.442695, %v8193_v32  ;;  %v8198_v10 = vadd.f32 %v8040_v61, %v4326_v26 }
 0x44a   : > { %6028 = vpow2.f32 %v5224_v2  ;;  %v5222_v27 = vmul.f32 -1.442695, %v8198_v10  ;;  %v8344_v2 = vld [vmem:[#allocation11_spill] sm:$0xff] }
 0x44b   : > { %v6017_v38 = vpop.eup %6016 }
 0x44c   : > { %v4586_v59 = vmul.f32 %v6017_v38, %v8151_v18  ;;  %6030 = vpow2.f32 %v5222_v27  ;;  %v5486_v8 = vpop.f32.mrf.mxu0  ;;  %v4620_v27 = vunpack.c.l.bf16 %v8344_v2 }
 0x44d   : > { %v6019_v57 = vpop.eup %6018  ;;  %v4331_v11 = vmul.f32 %v5486_v8, %v8032_v35 }
 0x44e   : > { %v4650_v50 = vadd.f32 %v4618_v41, %v4586_v59  ;;  %v4584_v9 = vmul.f32 %v6019_v57, %v8157_v62  ;;  %v4279_v53 = vpop.f32.mrf.mxu0  ;;  %v4623_v57 = vunpack.c.h.bf16 %v8343_v3 }
 0x44f   : > { %v8207_v15 = vadd.f32 %v8040_v61, %v4331_v11  ;;  %v4329_v23 = vmul.f32 %v8032_v35, %v4279_v53 }
 0x450   : > { %v6021_v18 = vpop.eup %6020  ;;  %v5319_v42 = vpack.c.bf16 %v4650_v50, %v4650_v50  ;;  %v4648_v14 = vadd.f32 %v4616_v52, %v4584_v9  ;;  %v5487_v43 = vpop.f32.mrf.mxu0  ;;  %v4621_v52 = vunpack.c.h.bf16 %v8344_v2 }
 0x451   : > { %v4587_v22 = vmul.f32 %v6021_v18, %v8163_v6  ;;  %v5227_v1 = vmul.f32 -1.442695, %v8207_v15  ;;  %v8214_v62 = vadd.f32 %v8040_v61, %v4329_v23  ;;  %v4332_v12 = vmul.f32 %v5487_v43, %v8032_v35 }
 0x452   : > { %v6023_v7 = vpop.eup %6022  ;;  %4810 = vst.msk [vmem:[%s8073_s20 + $0x58] sm:$0xf] %vm1006_vm3, %v5319_v42  ;;  %v5317_v51 = vpack.c.bf16 %v4648_v14, %v4648_v14  ;;  %v4282_v21 = vpop.f32.mrf.mxu0  ;;  %v8345_v14 = vld [vmem:[#allocation14_spill] sm:$0xff] }
 0x453   : > { %v6025_v37 = vpop.eup %6024  ;;  %v4651_v48 = vadd.f32 %v4619_v13, %v4587_v22  ;;  %v4585_v60 = vmul.f32 %v6023_v7, %v8169_v4  ;;  %6032 = vpow2.f32 %v5227_v1  ;;  %v5225_v6 = vmul.f32 -1.442695, %v8214_v62  ;;  %v8346_v1 = vld [vmem:[#allocation13_spill] sm:$0xff] }
 0x454   : > { %4808 = vst.msk [vmem:[%s8073_s20 + $0x50] sm:$0xf] %vm1006_vm3, %v5317_v51  ;;  %v4494_v17 = vadd.f32 1.0, %v6025_v37  ;;  %v8225_v54 = vadd.f32 %v8040_v61, %v4332_v12  ;;  %v4330_v31 = vmul.f32 %v8032_v35, %v4282_v21  ;;  %v4626_v13 = vunpack.c.l.bf16 %v8345_v14 }
 0x455   : > { %v6027_v29 = vpop.eup %6026  ;;  %v5320_v20 = vpack.c.bf16 %v4651_v48, %v4651_v48  ;;  %v4649_v49 = vadd.f32 %v4617_v44, %v4585_v60  ;;  %6034 = vpow2.f32 %v5225_v6  ;;  %v4624_v12 = vunpack.c.l.bf16 %v8346_v1 }
 0x456   : > { %6036 = vrcp.f32 %v4494_v17  ;;  %v4492_v34 = vadd.f32 1.0, %v6027_v29  ;;  %v5228_v4 = vmul.f32 -1.442695, %v8225_v54  ;;  %v8230_v30 = vadd.f32 %v8040_v61, %v4330_v31 }
 0x457   : > { %v6029_v19 = vpop.eup %6028  ;;  %4811 = vst.msk [vmem:[%s8073_s20 + $0x5c] sm:$0xf] %vm1006_vm3, %v5320_v20  ;;  %v5318_v63 = vpack.c.bf16 %v4649_v49, %v4649_v49  ;;  %v4625_v6 = vunpack.c.h.bf16 %v8346_v1 }
 0x458   : > { %6038 = vrcp.f32 %v4492_v34  ;;  %v4495_v16 = vadd.f32 1.0, %v6029_v19  ;;  %v5226_v35 = vmul.f32 -1.442695, %v8230_v30 }
 0x459   : > { %v6031_v45 = vpop.eup %6030  ;;  %4809 = vst.msk [vmem:[%s8073_s20 + $0x54] sm:$0xf] %vm1006_vm3, %v5318_v63  ;;  %6040 = vpow2.f32 %v5228_v4 }
 0x45a   : > { %6042 = vrcp.f32 %v4495_v16  ;;  %v4493_v28 = vadd.f32 1.0, %v6031_v45 }
 0x45b   : > { %6044 = vpow2.f32 %v5226_v35 }
 0x45c   : > { %6046 = vrcp.f32 %v4493_v28 }
 0x460   : > { %v6033_v56 = vpop.eup %6032 }
 0x461   : > { %v4498_v36 = vadd.f32 1.0, %v6033_v56 }
 0x462   : > { %v6035_v61 = vpop.eup %6034 }
 0x463   : > { %v6037_v25 = vpop.eup %6036  ;;  %6048 = vrcp.f32 %v4498_v36  ;;  %v4496_v58 = vadd.f32 1.0, %v6035_v61 }
 0x464   : > { %v4590_v47 = vmul.f32 %v6037_v25, %v8183_v0 }
 0x465   : > { %v6039_v46 = vpop.eup %6038  ;;  %6050 = vrcp.f32 %v4496_v58 }
 0x466   : > { %v6041_v40 = vpop.eup %6040  ;;  %v4654_v24 = vadd.f32 %v4622_v39, %v4590_v47  ;;  %v4588_v26 = vmul.f32 %v6039_v46, %v8188_v5 }
 0x467   : > { %v6043_v38 = vpop.eup %6042  ;;  %v4499_v59 = vadd.f32 1.0, %v6041_v40 }
 0x468   : > { %v6045_v55 = vpop.eup %6044  ;;  %v5323_v41 = vpack.c.bf16 %v4654_v24, %v4654_v24  ;;  %v4652_v8 = vadd.f32 %v4620_v27, %v4588_v26  ;;  %v4591_v0 = vmul.f32 %v6043_v38, %v8193_v32 }
 0x469   : > { %v6047_v11 = vpop.eup %6046  ;;  %6052 = vrcp.f32 %v4499_v59  ;;  %v4497_v50 = vadd.f32 1.0, %v6045_v55 }
 0x46a   : > { %4814 = vst.msk [vmem:[%s8073_s20 + $0x68] sm:$0xf] %vm1006_vm3, %v5323_v41  ;;  %v5321_v5 = vpack.c.bf16 %v4652_v8, %v4652_v8  ;;  %v4655_v9 = vadd.f32 %v4623_v57, %v4591_v0  ;;  %v4589_v33 = vmul.f32 %v6047_v11, %v8198_v10 }
 0x46b   : > { %6054 = vrcp.f32 %v4497_v50 }
 0x46c   : > { %4812 = vst.msk [vmem:[%s8073_s20 + $0x60] sm:$0xf] %vm1006_vm3, %v5321_v5  ;;  %v5324_v53 = vpack.c.bf16 %v4655_v9, %v4655_v9  ;;  %v4653_v32 = vadd.f32 %v4621_v52, %v4589_v33 }
 0x46e   : > { %4815 = vst.msk [vmem:[%s8073_s20 + $0x6c] sm:$0xf] %vm1006_vm3, %v5324_v53  ;;  %v5322_v23 = vpack.c.bf16 %v4653_v32, %v4653_v32 }
 0x470   : > { %v6049_v18 = vpop.eup %6048  ;;  %4813 = vst.msk [vmem:[%s8073_s20 + $0x64] sm:$0xf] %vm1006_vm3, %v5322_v23 }
 0x471   : > { %v4594_v42 = vmul.f32 %v6049_v18, %v8207_v15  ;;  %v4627_v15 = vunpack.c.h.bf16 %v8345_v14 }
 0x472   : > { %v6051_v10 = vpop.eup %6050 }
 0x473   : > { %v4658_v43 = vadd.f32 %v4626_v13, %v4594_v42  ;;  %v4592_v22 = vmul.f32 %v6051_v10, %v8214_v62 }
 0x475   : > { %v5327_v7 = vpack.c.bf16 %v4658_v43, %v4658_v43  ;;  %v4656_v51 = vadd.f32 %v4624_v12, %v4592_v22 }
 0x476   : > { %v6053_v44 = vpop.eup %6052 }
 0x477   : > { %4818 = vst.msk [vmem:[%s8073_s20 + $0x78] sm:$0xf] %vm1006_vm3, %v5327_v7  ;;  %v5325_v21 = vpack.c.bf16 %v4656_v51, %v4656_v51  ;;  %v4595_v37 = vmul.f32 %v6053_v44, %v8225_v54 }
 0x478   : > { %v6055_v48 = vpop.eup %6054 }
 0x479   : > { %4816 = vst.msk [vmem:[%s8073_s20 + $0x70] sm:$0xf] %vm1006_vm3, %v5325_v21  ;;  %v4659_v60 = vadd.f32 %v4627_v15, %v4595_v37  ;;  %v4593_v62 = vmul.f32 %v6055_v48, %v8230_v30 }
 0x47b   : > { %v5328_v17 = vpack.c.bf16 %v4659_v60, %v4659_v60  ;;  %v4657_v31 = vadd.f32 %v4625_v6, %v4593_v62 }
 0x47d   : > { %4819 = vst.msk [vmem:[%s8073_s20 + $0x7c] sm:$0xf] %vm1006_vm3, %v5328_v17  ;;  %v5326_v29 = vpack.c.bf16 %v4657_v31, %v4657_v31 }
 0x47f   : > { %4817 = vst.msk [vmem:[%s8073_s20 + $0x74] sm:$0xf] %vm1006_vm3, %v5326_v29 }
 0x480 PF: > { %s20_s13 = sadd.s32 1, %s6065_s13  }
 0x481   : > { %p17_p4 = scmp.ge.s32.totalorder %s20_s13, 4  }
 0x483   :  { %19 = sbr.rel (!%p17_p4) target bundleno = 1 (0x1), region = 92 }

</bundles_post_ra>
